<compile_context>
chip_gen: v7x
topology: tpu7x:2x2x1
jax: 0.10.0
libtpu: 0.0.40
codegen_flags: <defaults>
</compile_context>

<pallas_src>
import math
import numpy as np
import jax
import jax.numpy as jnp
from jax.experimental import pallas as pl
from jax.experimental.pallas import tpu as pltpu

F_IN = 7            # len(FEATURE_COLS)
CONV_CH = 32
K_SIZE = 5
LSTM_H = 64
D_MODEL = 2 * LSTM_H      # 128
N_HEADS = 4
HEAD_D = D_MODEL // N_HEADS
HEAD_HIDDEN = 64
N_CLASSES = 2
BN_EPS = 1e-5
LN_EPS = 1e-5


def _vmem():
    return pl.BlockSpec(memory_space=pltpu.MemorySpace.VMEM)


def _smem():
    return pl.BlockSpec(memory_space=pltpu.MemorySpace.SMEM)


# ---------------------------------------------------------------------------
# One fused kernel for the whole forward pass
# ---------------------------------------------------------------------------
def fused_forward_kernel(xcol_ref, wconv_ref, bconv_ref,
                         wih_ref, bih_ref, whh_ref,
                         wq_ref, bq_ref, wkv_ref, bkv_ref, wo_ref, bo_ref,
                         gate_ref, ln_g_ref, ln_b_ref,
                         w1_ref, b1_ref, w2_ref, b2_ref,
                         out_ref,
                         xproj_ref, hcat_ref):
    f32, bf16 = jnp.float32, jnp.bfloat16
    B, T, E = hcat_ref.shape          # E = 2H = d_model (fwd|bwd hidden, lane-dense 128)
    H = E // 2
    G = 8 * H                         # per-step gate width for both directions (512)

    # ---- Conv1d + folded BatchNorm(inference) + ReLU : a single im2col matmul ----
    conv = jnp.dot(xcol_ref[...].astype(bf16), wconv_ref[...],
                   preferred_element_type=f32) + bconv_ref[...]            # (T*B, C)
    conv = jnp.maximum(conv, 0.0).astype(bf16)

    # ---- LSTM input projections (both directions), hoisted off the recurrence ----
    xp = jnp.dot(conv, wih_ref[...], preferred_element_type=f32) + bih_ref[...]   # (T*B, 2G)
    xpf = xp[:, 0:G]                  # forward-direction gate slots populated, backward zero
    xpb = xp[:, G:2 * G]              # backward-direction gate slots populated, forward zero
    for t in range(T):                # static: fwd consumes time t, bwd consumes time T-1-t
        xproj_ref[t] = (xpf[t * B:(t + 1) * B, :]
                        + xpb[(T - 1 - t) * B:(T - t) * B, :])

    # ---- Bi-LSTM: both directions interleaved in a single recurrence ----
    # state layout : h_cat / c_cat = [fwd H | bwd H]                 (64/128-lane aligned)
    # gate layout  : g = [i_f i_b | f_f f_b | g_f g_b | o_f o_b]     (each block E=128 wide)
    whh = whh_ref[...]                # (2H, 8H) bf16, block layout built in prepare_params
    h_cat = jnp.zeros((B, E), f32)
    c_cat = jnp.zeros((B, E), f32)
    for t in range(T):                # static unroll: 1 MXU push per serial step
        g = xproj_ref[t] + jnp.dot(h_cat.astype(bf16), whh,
                                   preferred_element_type=f32)             # (B, 8H)
        i_g = jax.nn.sigmoid(g[:, 0 * E:1 * E])
        f_g = jax.nn.sigmoid(g[:, 1 * E:2 * E])
        g_g = jnp.tanh(g[:, 2 * E:3 * E])
        o_g = jax.nn.sigmoid(g[:, 3 * E:4 * E])
        c_cat = f_g * c_cat + i_g * g_g
        h_cat = o_g * jnp.tanh(c_cat)
        for b in range(B):            # static, tiny batch: write fwd/bwd halves in place
            hcat_ref[b, t:t + 1, 0:H] = h_cat[b:b + 1, 0:H]
            hcat_ref[b, T - 1 - t:T - t, H:E] = h_cat[b:b + 1, H:E]

    # ---- Multi-head self-attention (last query row only) + gate + LayerNorm + head ----
    # Only fused[:, -1] feeds the classifier and softmax is per-query-row, so computing just
    # the last query row is semantics-preserving.
    scale = 1.0 / math.sqrt(HEAD_D)
    gate = gate_ref[0, 0]
    wq = wq_ref[...]
    wkv = wkv_ref[...]
    wo = wo_ref[...]

    for b in range(B):                # static unroll (tiny batch)
        hbt = hcat_ref[b]                                                  # (T, E)
        h_last = hbt[T - 1:T, :]                                           # (1, E)

        kv = jnp.dot(hbt.astype(bf16), wkv, preferred_element_type=f32) + bkv_ref[...]
        kb = kv[:, 0:E].astype(bf16)                                       # (T, E)
        vb = kv[:, E:2 * E].astype(bf16)                                   # (T, E)
        qb = (jnp.dot(h_last.astype(bf16), wq, preferred_element_type=f32)
              + bq_ref[...]).astype(bf16)                                  # (1, E)

        attn_b = bo_ref[...]                                               # (1, E)
        for hd in range(N_HEADS):     # static unroll over heads
            lo, hi = hd * HEAD_D, (hd + 1) * HEAD_D
            s = jnp.einsum('qd,kd->qk', qb[:, lo:hi], kb[:, lo:hi],
                           preferred_element_type=f32) * scale             # (1, T)
            s = s - jnp.max(s, axis=-1, keepdims=True)
            p = jnp.exp(s)
            p = p * pl.reciprocal(jnp.sum(p, axis=-1, keepdims=True), approx=True)
            ctx = jnp.dot(p.astype(bf16), vb[:, lo:hi],
                          preferred_element_type=f32)                      # (1, HEAD_D)
            # ctx @ W_o == sum over heads of ctx_h @ W_o[head rows]
            attn_b = attn_b + jnp.dot(ctx.astype(bf16), wo[lo:hi, :],
                                      preferred_element_type=f32)          # (1, E)

        fused = gate * h_last + (1.0 - gate) * attn_b                      # (1, E)
        mu = jnp.mean(fused, axis=-1, keepdims=True)
        var = jnp.mean((fused - mu) ** 2, axis=-1, keepdims=True)
        xn = (fused - mu) * jax.lax.rsqrt(var + LN_EPS) * ln_g_ref[...] + ln_b_ref[...]
        z = jnp.maximum(jnp.dot(xn.astype(bf16), w1_ref[...],
                                preferred_element_type=f32) + b1_ref[...], 0.0)
        # Dropout(p=0.3) is identity at inference.
        out_ref[b:b + 1, :] = (jnp.dot(z, w2_ref[...], preferred_element_type=f32)
                               + b2_ref[...])


# ---------------------------------------------------------------------------
# Forward pass wrapper: im2col of x + a single fused pallas_call
# ---------------------------------------------------------------------------
@jax.jit
def model_forward(x, kp):
    B, T, _ = x.shape
    pad = K_SIZE // 2
    xpad = jnp.pad(x, ((0, 0), (pad, pad), (0, 0)))
    # im2col -> time-major (T*B, K*F) so the kernel's conv is one matmul
    xcol = jnp.concatenate([xpad[:, k:k + T, :] for k in range(K_SIZE)], axis=-1)
    xcol = xcol.transpose(1, 0, 2).reshape(T * B, K_SIZE * F_IN)

    return pl.pallas_call(
        fused_forward_kernel,
        out_shape=jax.ShapeDtypeStruct((B, N_CLASSES), jnp.float32),
        in_specs=[_vmem()] * 12 + [_smem()] + [_vmem()] * 6,
        out_specs=_vmem(),
        scratch_shapes=[
            pltpu.VMEM((T, B, 8 * LSTM_H), jnp.float32),   # per-step gate inputs (both dirs)
            pltpu.VMEM((B, T, D_MODEL), jnp.float32),      # Bi-LSTM outputs, lane-dense 128
        ],
    )(xcol, kp['wconv'], kp['bconv'],
      kp['wih'], kp['bih'], kp['whh'],
      kp['wq'], kp['bq'], kp['wkv'], kp['bkv'], kp['wo'], kp['bo'],
      kp['gate'], kp['ln_g'], kp['ln_b'],
      kp['w1'], kp['b1'], kp['w2'], kp['b2'])


# ---------------------------------------------------------------------------
# Repack reference-layout params into the fused kernel's layouts (done once)
# ---------------------------------------------------------------------------
def prepare_params(p):
    H = LSTM_H
    bf16 = jnp.bfloat16
    kp = {}

    # Conv + inference-BatchNorm folding.
    bn_scale = p['bn_gamma'] * jax.lax.rsqrt(p['bn_var'] + BN_EPS)          # (1, C)
    wcol = p['conv_w'].reshape(K_SIZE * F_IN, CONV_CH)                      # rows = (k, f)
    kp['wconv'] = (wcol * bn_scale).astype(bf16)
    kp['bconv'] = (p['conv_b'] - p['bn_mean']) * bn_scale + p['bn_beta']

    # LSTM: interleave both directions' gates so per-step slices are 128-lane aligned.
    #   g columns = [i_f i_b | f_f f_b | g_f g_b | o_f o_b], each sub-block H wide.
    def interleave(w, fwd):
        parts = []
        for gi in range(4):
            blk = w[..., gi * H:(gi + 1) * H]
            zero = jnp.zeros_like(blk)
            parts.extend([blk, zero] if fwd else [zero, blk])
        return jnp.concatenate(parts, axis=-1)                              # (..., 8H)

    kp['wih'] = jnp.concatenate([interleave(p['wih_f'], True),
                                 interleave(p['wih_b'], False)], axis=-1).astype(bf16)
    kp['bih'] = jnp.concatenate([interleave(p['b_f'], True),
                                 interleave(p['b_b'], False)], axis=-1)
    kp['whh'] = jnp.concatenate([interleave(p['whh_f'], True),    # rows 0:H   <- h_fwd
                                 interleave(p['whh_b'], False)],  # rows H:2H  <- h_bwd
                                axis=0).astype(bf16)               # (2H, 8H)

    # Attention (k/v fused into one projection) + head.
    kp['wq'] = p['wq'].astype(bf16)
    kp['bq'] = p['bq']
    kp['wkv'] = jnp.concatenate([p['wk'], p['wv']], axis=-1).astype(bf16)   # (E, 2E)
    kp['bkv'] = jnp.concatenate([p['bk'], p['bv']], axis=-1)
    kp['wo'] = p['wo'].astype(bf16)
    kp['bo'] = p['bo']
    kp['gate'] = p['gate']
    kp['ln_g'] = p['ln_g']
    kp['ln_b'] = p['ln_b']
    kp['w1'] = p['w1'].astype(bf16)
    kp['b1'] = p['b1']
    kp['w2'] = p['w2']
    kp['b2'] = p['b2']
    return kp


# ---------------------------------------------------------------------------
# Deterministic parameter init (shapes from the module's __init__)
# ---------------------------------------------------------------------------
def init_params(key):
    ks = jax.random.split(key, 24)

    def nrm(k, shape, scale=0.1):
        return (scale * jax.random.normal(k, shape)).astype(jnp.float32)

    p = {}
    # Conv1d(7, 32, k=5): PyTorch weight (C, F, K) -> kernel layout (K, F, C)
    conv_w = nrm(ks[0], (CONV_CH, F_IN, K_SIZE))
    p['conv_w'] = jnp.transpose(conv_w, (2, 1, 0))
    p['conv_b'] = nrm(ks[1], (1, CONV_CH))
    # BatchNorm1d(32) — inference mode running stats
    p['bn_gamma'] = 1.0 + nrm(ks[2], (1, CONV_CH))
    p['bn_beta'] = nrm(ks[3], (1, CONV_CH))
    p['bn_mean'] = nrm(ks[4], (1, CONV_CH))
    p['bn_var'] = (1.0 + 0.1 * jax.random.uniform(ks[5], (1, CONV_CH))).astype(jnp.float32)
    # Bi-LSTM(32 -> 64): PyTorch weight_ih (4H, I), weight_hh (4H, H), biases (4H,)
    for name, k0 in (('f', 6), ('b', 10)):
        wih = nrm(ks[k0], (4 * LSTM_H, CONV_CH))
        whh = nrm(ks[k0 + 1], (4 * LSTM_H, LSTM_H))
        bih = nrm(ks[k0 + 2], (1, 4 * LSTM_H))
        bhh = nrm(ks[k0 + 3], (1, 4 * LSTM_H))
        p['wih_' + name] = wih.T
        p['whh_' + name] = whh.T
        p['b_' + name] = bih + bhh
    # MultiheadAttention(d_model=128, heads=4)
    in_w = nrm(ks[14], (3 * D_MODEL, D_MODEL))
    in_b = nrm(ks[15], (1, 3 * D_MODEL))
    p['wq'] = in_w[:D_MODEL].T
    p['wk'] = in_w[D_MODEL:2 * D_MODEL].T
    p['wv'] = in_w[2 * D_MODEL:].T
    p['bq'] = in_b[:, :D_MODEL]
    p['bk'] = in_b[:, D_MODEL:2 * D_MODEL]
    p['bv'] = in_b[:, 2 * D_MODEL:]
    p['wo'] = nrm(ks[16], (D_MODEL, D_MODEL)).T
    p['bo'] = nrm(ks[17], (1, D_MODEL))
    # gate + head
    p['gate'] = jnp.full((1, 1), 0.5, jnp.float32)
    p['ln_g'] = 1.0 + nrm(ks[18], (1, D_MODEL))
    p['ln_b'] = nrm(ks[19], (1, D_MODEL))
    p['w1'] = nrm(ks[20], (HEAD_HIDDEN, D_MODEL)).T
    p['b1'] = nrm(ks[21], (1, HEAD_HIDDEN))
    p['w2'] = nrm(ks[22], (N_CLASSES, HEAD_HIDDEN)).T
    p['b2'] = nrm(ks[23], (1, N_CLASSES))
    return p


# ---------------------------------------------------------------------------
# Pure-JAX f32 reference (same math, for a correctness cross-check)
# ---------------------------------------------------------------------------
def reference_forward(x, p):
    B, T, _ = x.shape
    pad = K_SIZE // 2
    xpad = jnp.pad(x, ((0, 0), (pad, pad), (0, 0)))
    h = jnp.zeros((B, T, CONV_CH), jnp.float32)
    for k in range(K_SIZE):
        h = h + jnp.einsum('btf,fc->btc', xpad[:, k:k + T, :], p['conv_w'][k])
    h = h + p['conv_b'][None]
    h = (h - p['bn_mean'][None]) / jnp.sqrt(p['bn_var'][None] + BN_EPS) \
        * p['bn_gamma'][None] + p['bn_beta'][None]
    h = jnp.maximum(h, 0.0)

    def run(wih, whh, b, reverse):
        def step(carry, xt):
            hh, cc = carry
            g = xt @ wih + b[0] + hh @ whh
            i = jax.nn.sigmoid(g[:, :LSTM_H])
            f = jax.nn.sigmoid(g[:, LSTM_H:2 * LSTM_H])
            gg = jnp.tanh(g[:, 2 * LSTM_H:3 * LSTM_H])
            o = jax.nn.sigmoid(g[:, 3 * LSTM_H:])
            cc = f * cc + i * gg
            hh = o * jnp.tanh(cc)
            return (hh, cc), hh
        xs = h.transpose(1, 0, 2)
        if reverse:
            xs = xs[::-1]
        (_, _), ys = jax.lax.scan(step, (jnp.zeros((B, LSTM_H)), jnp.zeros((B, LSTM_H))), xs)
        if reverse:
            ys = ys[::-1]
        return ys.transpose(1, 0, 2)

    hf = run(p['wih_f'], p['whh_f'], p['b_f'], False)
    hb = run(p['wih_b'], p['whh_b'], p['b_b'], True)
    hcat = jnp.concatenate([hf, hb], axis=-1)

    q = hcat @ p['wq'] + p['bq'][0]
    k = hcat @ p['wk'] + p['bk'][0]
    v = hcat @ p['wv'] + p['bv'][0]

    def heads(z):
        return z.reshape(B, T, N_HEADS, HEAD_D).transpose(0, 2, 1, 3)

    qh, kh, vh = heads(q), heads(k), heads(v)
    s = jnp.einsum('bhqd,bhkd->bhqk', qh, kh) / math.sqrt(HEAD_D)
    pw = jax.nn.softmax(s, axis=-1)
    ctx = jnp.einsum('bhqk,bhkd->bhqd', pw, vh).transpose(0, 2, 1, 3).reshape(B, T, D_MODEL)
    attn_out = ctx @ p['wo'] + p['bo'][0]

    g = p['gate'][0, 0]
    fused = g * hcat + (1.0 - g) * attn_out
    cls = fused[:, -1]
    mu = cls.mean(-1, keepdims=True)
    var = ((cls - mu) ** 2).mean(-1, keepdims=True)
    xn = (cls - mu) / jnp.sqrt(var + LN_EPS) * p['ln_g'][0] + p['ln_b'][0]
    z = jnp.maximum(xn @ p['w1'] + p['b1'][0], 0.0)
    return z @ p['w2'] + p['b2'][0]


if __name__ == "__main__":
    key = jax.random.PRNGKey(0)
    pkey, xkey = jax.random.split(key)
    params = init_params(pkey)
    kparams = prepare_params(params)          # one-time weight repack (outside the hot path)

    B, T = 2, 8
    x = jax.random.normal(xkey, (B, T, F_IN), dtype=jnp.float32)

    logits = model_forward(x, kparams)
    logits = jax.block_until_ready(logits)

    assert logits.shape == (B, N_CLASSES)
    assert bool(jnp.all(jnp.isfinite(logits)))

    ref = np.asarray(reference_forward(x, params))
    if not np.allclose(np.asarray(logits), ref, rtol=1e-1, atol=1e-1):
        raise AssertionError("Pallas output does not match JAX reference")

    print("KERNEL_OK")
</pallas_src>

<mosaic_0001>
module attributes {stable_mosaic.version = 11 : i64} {
  func.func @fused_forward_kernel(%arg0: memref<16x35xf32, #tpu.memory_space<vmem>>, %arg1: memref<35x32xbf16, #tpu.memory_space<vmem>>, %arg2: memref<1x32xf32, #tpu.memory_space<vmem>>, %arg3: memref<32x1024xbf16, #tpu.memory_space<vmem>>, %arg4: memref<1x1024xf32, #tpu.memory_space<vmem>>, %arg5: memref<128x512xbf16, #tpu.memory_space<vmem>>, %arg6: memref<128x128xbf16, #tpu.memory_space<vmem>>, %arg7: memref<1x128xf32, #tpu.memory_space<vmem>>, %arg8: memref<128x256xbf16, #tpu.memory_space<vmem>>, %arg9: memref<1x256xf32, #tpu.memory_space<vmem>>, %arg10: memref<128x128xbf16, #tpu.memory_space<vmem>>, %arg11: memref<1x128xf32, #tpu.memory_space<vmem>>, %arg12: memref<1x1xf32, #tpu.memory_space<smem>>, %arg13: memref<1x128xf32, #tpu.memory_space<vmem>>, %arg14: memref<1x128xf32, #tpu.memory_space<vmem>>, %arg15: memref<128x64xbf16, #tpu.memory_space<vmem>>, %arg16: memref<1x64xf32, #tpu.memory_space<vmem>>, %arg17: memref<64x2xf32, #tpu.memory_space<vmem>>, %arg18: memref<1x2xf32, #tpu.memory_space<vmem>>, %arg19: memref<2x2xf32, #tpu.memory_space<vmem>>, %arg20: memref<8x2x512xf32, #tpu.memory_space<vmem>>, %arg21: memref<2x8x128xf32, #tpu.memory_space<vmem>>) attributes {dimension_semantics = [], scalar_prefetch = 0 : i64, scratch_operands = 2 : i64, tpu.core_type = #tpu.core_type<tc>} {
    %c0 = arith.constant 0 : index
    %c0_0 = arith.constant 0 : index
    %0 = vector.load %arg0[%c0, %c0_0] : memref<16x35xf32, #tpu.memory_space<vmem>>, vector<16x35xf32>
    %1 = arith.truncf %0 : vector<16x35xf32> to vector<16x35xbf16>
    %c0_1 = arith.constant 0 : index
    %c0_2 = arith.constant 0 : index
    %2 = vector.load %arg1[%c0_1, %c0_2] : memref<35x32xbf16, #tpu.memory_space<vmem>>, vector<35x32xbf16>
    %cst = arith.constant dense<0.000000e+00> : vector<16x32xf32>
    %3 = tpu.matmul %1, %2, %cst {dimension_numbers = #tpu.dot_dimension_numbers<[1], [0], [0], [1], [0, 0, 1, 1], [], []>} : vector<16x35xbf16>, vector<35x32xbf16>, vector<16x32xf32> -> vector<16x32xf32>
    %c0_3 = arith.constant 0 : index
    %c0_4 = arith.constant 0 : index
    %4 = vector.load %arg2[%c0_3, %c0_4] : memref<1x32xf32, #tpu.memory_space<vmem>>, vector<1x32xf32>
    %5 = vector.broadcast %4 : vector<1x32xf32> to vector<16x32xf32>
    %6 = arith.addf %3, %5 : vector<16x32xf32>
    %cst_5 = arith.constant 0.000000e+00 : f32
    %7 = vector.broadcast %cst_5 : f32 to vector<16x32xf32>
    %8 = arith.maximumf %6, %7 : vector<16x32xf32>
    %9 = arith.truncf %8 : vector<16x32xf32> to vector<16x32xbf16>
    %c0_6 = arith.constant 0 : index
    %c0_7 = arith.constant 0 : index
    %10 = vector.load %arg3[%c0_6, %c0_7] : memref<32x1024xbf16, #tpu.memory_space<vmem>>, vector<32x1024xbf16>
    %cst_8 = arith.constant dense<0.000000e+00> : vector<16x1024xf32>
    %11 = tpu.matmul %9, %10, %cst_8 {dimension_numbers = #tpu.dot_dimension_numbers<[1], [0], [0], [1], [0, 0, 1, 1], [], []>} : vector<16x32xbf16>, vector<32x1024xbf16>, vector<16x1024xf32> -> vector<16x1024xf32>
    %c0_9 = arith.constant 0 : index
    %c0_10 = arith.constant 0 : index
    %12 = vector.load %arg4[%c0_9, %c0_10] : memref<1x1024xf32, #tpu.memory_space<vmem>>, vector<1x1024xf32>
    %13 = vector.broadcast %12 : vector<1x1024xf32> to vector<16x1024xf32>
    %14 = arith.addf %11, %13 : vector<16x1024xf32>
    %15 = vector.extract_strided_slice %14 {offsets = [0, 0], sizes = [16, 512], strides = [1, 1]} : vector<16x1024xf32> to vector<16x512xf32>
    %16 = vector.extract_strided_slice %14 {offsets = [0, 512], sizes = [16, 512], strides = [1, 1]} : vector<16x1024xf32> to vector<16x512xf32>
    %17 = vector.extract_strided_slice %15 {offsets = [0, 0], sizes = [2, 512], strides = [1, 1]} : vector<16x512xf32> to vector<2x512xf32>
    %18 = vector.extract_strided_slice %16 {offsets = [14, 0], sizes = [2, 512], strides = [1, 1]} : vector<16x512xf32> to vector<2x512xf32>
    %19 = arith.addf %17, %18 : vector<2x512xf32>
    %c0_11 = arith.constant 0 : index
    %c0_12 = arith.constant 0 : index
    %c0_13 = arith.constant 0 : index
    %20 = vector.load %arg20[%c0_11, %c0_12, %c0_13] : memref<8x2x512xf32, #tpu.memory_space<vmem>>, vector<1x2x512xf32>
    %21 = vector.shape_cast %20 : vector<1x2x512xf32> to vector<2x512xf32>
    %22 = vector.shape_cast %19 : vector<2x512xf32> to vector<1x2x512xf32>
    tpu.vector_store %arg20[%c0_11, %c0_12, %c0_13], %22 {strides = array<i32>} : memref<8x2x512xf32, #tpu.memory_space<vmem>>, vector<1x2x512xf32>,
    %23 = vector.extract_strided_slice %15 {offsets = [2, 0], sizes = [2, 512], strides = [1, 1]} : vector<16x512xf32> to vector<2x512xf32>
    %24 = vector.extract_strided_slice %16 {offsets = [12, 0], sizes = [2, 512], strides = [1, 1]} : vector<16x512xf32> to vector<2x512xf32>
    %25 = arith.addf %23, %24 : vector<2x512xf32>
    %c1 = arith.constant 1 : index
    %c0_14 = arith.constant 0 : index
    %c0_15 = arith.constant 0 : index
    %26 = vector.load %arg20[%c1, %c0_14, %c0_15] : memref<8x2x512xf32, #tpu.memory_space<vmem>>, vector<1x2x512xf32>
    %27 = vector.shape_cast %26 : vector<1x2x512xf32> to vector<2x512xf32>
    %28 = vector.shape_cast %25 : vector<2x512xf32> to vector<1x2x512xf32>
    tpu.vector_store %arg20[%c1, %c0_14, %c0_15], %28 {strides = array<i32>} : memref<8x2x512xf32, #tpu.memory_space<vmem>>, vector<1x2x512xf32>,
    %29 = vector.extract_strided_slice %15 {offsets = [4, 0], sizes = [2, 512], strides = [1, 1]} : vector<16x512xf32> to vector<2x512xf32>
    %30 = vector.extract_strided_slice %16 {offsets = [10, 0], sizes = [2, 512], strides = [1, 1]} : vector<16x512xf32> to vector<2x512xf32>
    %31 = arith.addf %29, %30 : vector<2x512xf32>
    %c2 = arith.constant 2 : index
    %c0_16 = arith.constant 0 : index
    %c0_17 = arith.constant 0 : index
    %32 = vector.load %arg20[%c2, %c0_16, %c0_17] : memref<8x2x512xf32, #tpu.memory_space<vmem>>, vector<1x2x512xf32>
    %33 = vector.shape_cast %32 : vector<1x2x512xf32> to vector<2x512xf32>
    %34 = vector.shape_cast %31 : vector<2x512xf32> to vector<1x2x512xf32>
    tpu.vector_store %arg20[%c2, %c0_16, %c0_17], %34 {strides = array<i32>} : memref<8x2x512xf32, #tpu.memory_space<vmem>>, vector<1x2x512xf32>,
    %35 = vector.extract_strided_slice %15 {offsets = [6, 0], sizes = [2, 512], strides = [1, 1]} : vector<16x512xf32> to vector<2x512xf32>
    %36 = vector.extract_strided_slice %16 {offsets = [8, 0], sizes = [2, 512], strides = [1, 1]} : vector<16x512xf32> to vector<2x512xf32>
    %37 = arith.addf %35, %36 : vector<2x512xf32>
    %c3 = arith.constant 3 : index
    %c0_18 = arith.constant 0 : index
    %c0_19 = arith.constant 0 : index
    %38 = vector.load %arg20[%c3, %c0_18, %c0_19] : memref<8x2x512xf32, #tpu.memory_space<vmem>>, vector<1x2x512xf32>
    %39 = vector.shape_cast %38 : vector<1x2x512xf32> to vector<2x512xf32>
    %40 = vector.shape_cast %37 : vector<2x512xf32> to vector<1x2x512xf32>
    tpu.vector_store %arg20[%c3, %c0_18, %c0_19], %40 {strides = array<i32>} : memref<8x2x512xf32, #tpu.memory_space<vmem>>, vector<1x2x512xf32>,
    %41 = vector.extract_strided_slice %15 {offsets = [8, 0], sizes = [2, 512], strides = [1, 1]} : vector<16x512xf32> to vector<2x512xf32>
    %42 = vector.extract_strided_slice %16 {offsets = [6, 0], sizes = [2, 512], strides = [1, 1]} : vector<16x512xf32> to vector<2x512xf32>
    %43 = arith.addf %41, %42 : vector<2x512xf32>
    %c4 = arith.constant 4 : index
    %c0_20 = arith.constant 0 : index
    %c0_21 = arith.constant 0 : index
    %44 = vector.load %arg20[%c4, %c0_20, %c0_21] : memref<8x2x512xf32, #tpu.memory_space<vmem>>, vector<1x2x512xf32>
    %45 = vector.shape_cast %44 : vector<1x2x512xf32> to vector<2x512xf32>
    %46 = vector.shape_cast %43 : vector<2x512xf32> to vector<1x2x512xf32>
    tpu.vector_store %arg20[%c4, %c0_20, %c0_21], %46 {strides = array<i32>} : memref<8x2x512xf32, #tpu.memory_space<vmem>>, vector<1x2x512xf32>,
    %47 = vector.extract_strided_slice %15 {offsets = [10, 0], sizes = [2, 512], strides = [1, 1]} : vector<16x512xf32> to vector<2x512xf32>
    %48 = vector.extract_strided_slice %16 {offsets = [4, 0], sizes = [2, 512], strides = [1, 1]} : vector<16x512xf32> to vector<2x512xf32>
    %49 = arith.addf %47, %48 : vector<2x512xf32>
    %c5 = arith.constant 5 : index
    %c0_22 = arith.constant 0 : index
    %c0_23 = arith.constant 0 : index
    %50 = vector.load %arg20[%c5, %c0_22, %c0_23] : memref<8x2x512xf32, #tpu.memory_space<vmem>>, vector<1x2x512xf32>
    %51 = vector.shape_cast %50 : vector<1x2x512xf32> to vector<2x512xf32>
    %52 = vector.shape_cast %49 : vector<2x512xf32> to vector<1x2x512xf32>
    tpu.vector_store %arg20[%c5, %c0_22, %c0_23], %52 {strides = array<i32>} : memref<8x2x512xf32, #tpu.memory_space<vmem>>, vector<1x2x512xf32>,
    %53 = vector.extract_strided_slice %15 {offsets = [12, 0], sizes = [2, 512], strides = [1, 1]} : vector<16x512xf32> to vector<2x512xf32>
    %54 = vector.extract_strided_slice %16 {offsets = [2, 0], sizes = [2, 512], strides = [1, 1]} : vector<16x512xf32> to vector<2x512xf32>
    %55 = arith.addf %53, %54 : vector<2x512xf32>
    %c6 = arith.constant 6 : index
    %c0_24 = arith.constant 0 : index
    %c0_25 = arith.constant 0 : index
    %56 = vector.load %arg20[%c6, %c0_24, %c0_25] : memref<8x2x512xf32, #tpu.memory_space<vmem>>, vector<1x2x512xf32>
    %57 = vector.shape_cast %56 : vector<1x2x512xf32> to vector<2x512xf32>
    %58 = vector.shape_cast %55 : vector<2x512xf32> to vector<1x2x512xf32>
    tpu.vector_store %arg20[%c6, %c0_24, %c0_25], %58 {strides = array<i32>} : memref<8x2x512xf32, #tpu.memory_space<vmem>>, vector<1x2x512xf32>,
    %59 = vector.extract_strided_slice %15 {offsets = [14, 0], sizes = [2, 512], strides = [1, 1]} : vector<16x512xf32> to vector<2x512xf32>
    %60 = vector.extract_strided_slice %16 {offsets = [0, 0], sizes = [2, 512], strides = [1, 1]} : vector<16x512xf32> to vector<2x512xf32>
    %61 = arith.addf %59, %60 : vector<2x512xf32>
    %c7 = arith.constant 7 : index
    %c0_26 = arith.constant 0 : index
    %c0_27 = arith.constant 0 : index
    %62 = vector.load %arg20[%c7, %c0_26, %c0_27] : memref<8x2x512xf32, #tpu.memory_space<vmem>>, vector<1x2x512xf32>
    %63 = vector.shape_cast %62 : vector<1x2x512xf32> to vector<2x512xf32>
    %64 = vector.shape_cast %61 : vector<2x512xf32> to vector<1x2x512xf32>
    tpu.vector_store %arg20[%c7, %c0_26, %c0_27], %64 {strides = array<i32>} : memref<8x2x512xf32, #tpu.memory_space<vmem>>, vector<1x2x512xf32>,
    %c0_28 = arith.constant 0 : index
    %c0_29 = arith.constant 0 : index
    %65 = vector.load %arg5[%c0_28, %c0_29] : memref<128x512xbf16, #tpu.memory_space<vmem>>, vector<128x512xbf16>
    %cst_30 = arith.constant 0.000000e+00 : f32
    %66 = vector.broadcast %cst_30 : f32 to vector<2x128xf32>
    %cst_31 = arith.constant 0.000000e+00 : f32
    %67 = vector.broadcast %cst_31 : f32 to vector<2x128xf32>
    %c0_32 = arith.constant 0 : index
    %c0_33 = arith.constant 0 : index
    %c0_34 = arith.constant 0 : index
    %68 = vector.load %arg20[%c0_32, %c0_33, %c0_34] : memref<8x2x512xf32, #tpu.memory_space<vmem>>, vector<1x2x512xf32>
    %69 = vector.shape_cast %68 : vector<1x2x512xf32> to vector<2x512xf32>
    %70 = arith.truncf %66 : vector<2x128xf32> to vector<2x128xbf16>
    %cst_35 = arith.constant dense<0.000000e+00> : vector<2x512xf32>
    %71 = tpu.matmul %70, %65, %cst_35 {dimension_numbers = #tpu.dot_dimension_numbers<[1], [0], [0], [1], [0, 0, 1, 1], [], []>} : vector<2x128xbf16>, vector<128x512xbf16>, vector<2x512xf32> -> vector<2x512xf32>
    %72 = arith.addf %69, %71 : vector<2x512xf32>
    %73 = vector.extract_strided_slice %72 {offsets = [0, 0], sizes = [2, 128], strides = [1, 1]} : vector<2x512xf32> to vector<2x128xf32>
    %74 = arith.negf %73 : vector<2x128xf32>
    %75 = math.exp %74 : vector<2x128xf32>
    %cst_36 = arith.constant 1.000000e+00 : f32
    %76 = vector.broadcast %cst_36 : f32 to vector<2x128xf32>
    %77 = arith.addf %76, %75 : vector<2x128xf32>
    %78 = arith.divf %76, %77 : vector<2x128xf32>
    %79 = vector.extract_strided_slice %72 {offsets = [0, 128], sizes = [2, 128], strides = [1, 1]} : vector<2x512xf32> to vector<2x128xf32>
    %80 = arith.negf %79 : vector<2x128xf32>
    %81 = math.exp %80 : vector<2x128xf32>
    %cst_37 = arith.constant 1.000000e+00 : f32
    %82 = vector.broadcast %cst_37 : f32 to vector<2x128xf32>
    %83 = arith.addf %82, %81 : vector<2x128xf32>
    %84 = arith.divf %82, %83 : vector<2x128xf32>
    %85 = vector.extract_strided_slice %72 {offsets = [0, 256], sizes = [2, 128], strides = [1, 1]} : vector<2x512xf32> to vector<2x128xf32>
    %86 = math.tanh %85 : vector<2x128xf32>
    %87 = vector.extract_strided_slice %72 {offsets = [0, 384], sizes = [2, 128], strides = [1, 1]} : vector<2x512xf32> to vector<2x128xf32>
    %88 = arith.negf %87 : vector<2x128xf32>
    %89 = math.exp %88 : vector<2x128xf32>
    %cst_38 = arith.constant 1.000000e+00 : f32
    %90 = vector.broadcast %cst_38 : f32 to vector<2x128xf32>
    %91 = arith.addf %90, %89 : vector<2x128xf32>
    %92 = arith.divf %90, %91 : vector<2x128xf32>
    %93 = arith.mulf %84, %67 : vector<2x128xf32>
    %94 = arith.mulf %78, %86 : vector<2x128xf32>
    %95 = arith.addf %93, %94 : vector<2x128xf32>
    %96 = math.tanh %95 : vector<2x128xf32>
    %97 = arith.mulf %92, %96 : vector<2x128xf32>
    %98 = vector.extract_strided_slice %97 {offsets = [0, 0], sizes = [1, 64], strides = [1, 1]} : vector<2x128xf32> to vector<1x64xf32>
    %c0_39 = arith.constant 0 : index
    %c0_40 = arith.constant 0 : index
    %c0_41 = arith.constant 0 : index
    %99 = vector.load %arg21[%c0_39, %c0_40, %c0_41] : memref<2x8x128xf32, #tpu.memory_space<vmem>>, vector<1x1x64xf32>
    %100 = vector.shape_cast %99 : vector<1x1x64xf32> to vector<1x64xf32>
    %101 = vector.shape_cast %98 : vector<1x64xf32> to vector<1x1x64xf32>
    tpu.vector_store %arg21[%c0_39, %c0_40, %c0_41], %101 {strides = array<i32>} : memref<2x8x128xf32, #tpu.memory_space<vmem>>, vector<1x1x64xf32>,
    %102 = vector.extract_strided_slice %97 {offsets = [0, 64], sizes = [1, 64], strides = [1, 1]} : vector<2x128xf32> to vector<1x64xf32>
    %c0_42 = arith.constant 0 : index
    %c7_43 = arith.constant 7 : index
    %c64 = arith.constant 64 : index
    %103 = vector.load %arg21[%c0_42, %c7_43, %c64] : memref<2x8x128xf32, #tpu.memory_space<vmem>>, vector<1x1x64xf32>
    %104 = vector.shape_cast %103 : vector<1x1x64xf32> to vector<1x64xf32>
    %105 = vector.shape_cast %102 : vector<1x64xf32> to vector<1x1x64xf32>
    tpu.vector_store %arg21[%c0_42, %c7_43, %c64], %105 {strides = array<i32>} : memref<2x8x128xf32, #tpu.memory_space<vmem>>, vector<1x1x64xf32>,
    %106 = vector.extract_strided_slice %97 {offsets = [1, 0], sizes = [1, 64], strides = [1, 1]} : vector<2x128xf32> to vector<1x64xf32>
    %c1_44 = arith.constant 1 : index
    %c0_45 = arith.constant 0 : index
    %c0_46 = arith.constant 0 : index
    %107 = vector.load %arg21[%c1_44, %c0_45, %c0_46] : memref<2x8x128xf32, #tpu.memory_space<vmem>>, vector<1x1x64xf32>
    %108 = vector.shape_cast %107 : vector<1x1x64xf32> to vector<1x64xf32>
    %109 = vector.shape_cast %106 : vector<1x64xf32> to vector<1x1x64xf32>
    tpu.vector_store %arg21[%c1_44, %c0_45, %c0_46], %109 {strides = array<i32>} : memref<2x8x128xf32, #tpu.memory_space<vmem>>, vector<1x1x64xf32>,
    %110 = vector.extract_strided_slice %97 {offsets = [1, 64], sizes = [1, 64], strides = [1, 1]} : vector<2x128xf32> to vector<1x64xf32>
    %c1_47 = arith.constant 1 : index
    %c7_48 = arith.constant 7 : index
    %c64_49 = arith.constant 64 : index
    %111 = vector.load %arg21[%c1_47, %c7_48, %c64_49] : memref<2x8x128xf32, #tpu.memory_space<vmem>>, vector<1x1x64xf32>
    %112 = vector.shape_cast %111 : vector<1x1x64xf32> to vector<1x64xf32>
    %113 = vector.shape_cast %110 : vector<1x64xf32> to vector<1x1x64xf32>
    tpu.vector_store %arg21[%c1_47, %c7_48, %c64_49], %113 {strides = array<i32>} : memref<2x8x128xf32, #tpu.memory_space<vmem>>, vector<1x1x64xf32>,
    %c1_50 = arith.constant 1 : index
    %c0_51 = arith.constant 0 : index
    %c0_52 = arith.constant 0 : index
    %114 = vector.load %arg20[%c1_50, %c0_51, %c0_52] : memref<8x2x512xf32, #tpu.memory_space<vmem>>, vector<1x2x512xf32>
    %115 = vector.shape_cast %114 : vector<1x2x512xf32> to vector<2x512xf32>
    %116 = arith.truncf %97 : vector<2x128xf32> to vector<2x128xbf16>
    %cst_53 = arith.constant dense<0.000000e+00> : vector<2x512xf32>
    %117 = tpu.matmul %116, %65, %cst_53 {dimension_numbers = #tpu.dot_dimension_numbers<[1], [0], [0], [1], [0, 0, 1, 1], [], []>} : vector<2x128xbf16>, vector<128x512xbf16>, vector<2x512xf32> -> vector<2x512xf32>
    %118 = arith.addf %115, %117 : vector<2x512xf32>
    %119 = vector.extract_strided_slice %118 {offsets = [0, 0], sizes = [2, 128], strides = [1, 1]} : vector<2x512xf32> to vector<2x128xf32>
    %120 = arith.negf %119 : vector<2x128xf32>
    %121 = math.exp %120 : vector<2x128xf32>
    %cst_54 = arith.constant 1.000000e+00 : f32
    %122 = vector.broadcast %cst_54 : f32 to vector<2x128xf32>
    %123 = arith.addf %122, %121 : vector<2x128xf32>
    %124 = arith.divf %122, %123 : vector<2x128xf32>
    %125 = vector.extract_strided_slice %118 {offsets = [0, 128], sizes = [2, 128], strides = [1, 1]} : vector<2x512xf32> to vector<2x128xf32>
    %126 = arith.negf %125 : vector<2x128xf32>
    %127 = math.exp %126 : vector<2x128xf32>
    %cst_55 = arith.constant 1.000000e+00 : f32
    %128 = vector.broadcast %cst_55 : f32 to vector<2x128xf32>
    %129 = arith.addf %128, %127 : vector<2x128xf32>
    %130 = arith.divf %128, %129 : vector<2x128xf32>
    %131 = vector.extract_strided_slice %118 {offsets = [0, 256], sizes = [2, 128], strides = [1, 1]} : vector<2x512xf32> to vector<2x128xf32>
    %132 = math.tanh %131 : vector<2x128xf32>
    %133 = vector.extract_strided_slice %118 {offsets = [0, 384], sizes = [2, 128], strides = [1, 1]} : vector<2x512xf32> to vector<2x128xf32>
    %134 = arith.negf %133 : vector<2x128xf32>
    %135 = math.exp %134 : vector<2x128xf32>
    %cst_56 = arith.constant 1.000000e+00 : f32
    %136 = vector.broadcast %cst_56 : f32 to vector<2x128xf32>
    %137 = arith.addf %136, %135 : vector<2x128xf32>
    %138 = arith.divf %136, %137 : vector<2x128xf32>
    %139 = arith.mulf %130, %95 : vector<2x128xf32>
    %140 = arith.mulf %124, %132 : vector<2x128xf32>
    %141 = arith.addf %139, %140 : vector<2x128xf32>
    %142 = math.tanh %141 : vector<2x128xf32>
    %143 = arith.mulf %138, %142 : vector<2x128xf32>
    %144 = vector.extract_strided_slice %143 {offsets = [0, 0], sizes = [1, 64], strides = [1, 1]} : vector<2x128xf32> to vector<1x64xf32>
    %c0_57 = arith.constant 0 : index
    %c1_58 = arith.constant 1 : index
    %c0_59 = arith.constant 0 : index
    %145 = vector.load %arg21[%c0_57, %c1_58, %c0_59] : memref<2x8x128xf32, #tpu.memory_space<vmem>>, vector<1x1x64xf32>
    %146 = vector.shape_cast %145 : vector<1x1x64xf32> to vector<1x64xf32>
    %147 = vector.shape_cast %144 : vector<1x64xf32> to vector<1x1x64xf32>
    tpu.vector_store %arg21[%c0_57, %c1_58, %c0_59], %147 {strides = array<i32>} : memref<2x8x128xf32, #tpu.memory_space<vmem>>, vector<1x1x64xf32>,
    %148 = vector.extract_strided_slice %143 {offsets = [0, 64], sizes = [1, 64], strides = [1, 1]} : vector<2x128xf32> to vector<1x64xf32>
    %c0_60 = arith.constant 0 : index
    %c6_61 = arith.constant 6 : index
    %c64_62 = arith.constant 64 : index
    %149 = vector.load %arg21[%c0_60, %c6_61, %c64_62] : memref<2x8x128xf32, #tpu.memory_space<vmem>>, vector<1x1x64xf32>
    %150 = vector.shape_cast %149 : vector<1x1x64xf32> to vector<1x64xf32>
    %151 = vector.shape_cast %148 : vector<1x64xf32> to vector<1x1x64xf32>
    tpu.vector_store %arg21[%c0_60, %c6_61, %c64_62], %151 {strides = array<i32>} : memref<2x8x128xf32, #tpu.memory_space<vmem>>, vector<1x1x64xf32>,
    %152 = vector.extract_strided_slice %143 {offsets = [1, 0], sizes = [1, 64], strides = [1, 1]} : vector<2x128xf32> to vector<1x64xf32>
    %c1_63 = arith.constant 1 : index
    %c1_64 = arith.constant 1 : index
    %c0_65 = arith.constant 0 : index
    %153 = vector.load %arg21[%c1_63, %c1_64, %c0_65] : memref<2x8x128xf32, #tpu.memory_space<vmem>>, vector<1x1x64xf32>
    %154 = vector.shape_cast %153 : vector<1x1x64xf32> to vector<1x64xf32>
    %155 = vector.shape_cast %152 : vector<1x64xf32> to vector<1x1x64xf32>
    tpu.vector_store %arg21[%c1_63, %c1_64, %c0_65], %155 {strides = array<i32>} : memref<2x8x128xf32, #tpu.memory_space<vmem>>, vector<1x1x64xf32>,
    %156 = vector.extract_strided_slice %143 {offsets = [1, 64], sizes = [1, 64], strides = [1, 1]} : vector<2x128xf32> to vector<1x64xf32>
    %c1_66 = arith.constant 1 : index
    %c6_67 = arith.constant 6 : index
    %c64_68 = arith.constant 64 : index
    %157 = vector.load %arg21[%c1_66, %c6_67, %c64_68] : memref<2x8x128xf32, #tpu.memory_space<vmem>>, vector<1x1x64xf32>
    %158 = vector.shape_cast %157 : vector<1x1x64xf32> to vector<1x64xf32>
    %159 = vector.shape_cast %156 : vector<1x64xf32> to vector<1x1x64xf32>
    tpu.vector_store %arg21[%c1_66, %c6_67, %c64_68], %159 {strides = array<i32>} : memref<2x8x128xf32, #tpu.memory_space<vmem>>, vector<1x1x64xf32>,
    %c2_69 = arith.constant 2 : index
    %c0_70 = arith.constant 0 : index
    %c0_71 = arith.constant 0 : index
    %160 = vector.load %arg20[%c2_69, %c0_70, %c0_71] : memref<8x2x512xf32, #tpu.memory_space<vmem>>, vector<1x2x512xf32>
    %161 = vector.shape_cast %160 : vector<1x2x512xf32> to vector<2x512xf32>
    %162 = arith.truncf %143 : vector<2x128xf32> to vector<2x128xbf16>
    %cst_72 = arith.constant dense<0.000000e+00> : vector<2x512xf32>
    %163 = tpu.matmul %162, %65, %cst_72 {dimension_numbers = #tpu.dot_dimension_numbers<[1], [0], [0], [1], [0, 0, 1, 1], [], []>} : vector<2x128xbf16>, vector<128x512xbf16>, vector<2x512xf32> -> vector<2x512xf32>
    %164 = arith.addf %161, %163 : vector<2x512xf32>
    %165 = vector.extract_strided_slice %164 {offsets = [0, 0], sizes = [2, 128], strides = [1, 1]} : vector<2x512xf32> to vector<2x128xf32>
    %166 = arith.negf %165 : vector<2x128xf32>
    %167 = math.exp %166 : vector<2x128xf32>
    %cst_73 = arith.constant 1.000000e+00 : f32
    %168 = vector.broadcast %cst_73 : f32 to vector<2x128xf32>
    %169 = arith.addf %168, %167 : vector<2x128xf32>
    %170 = arith.divf %168, %169 : vector<2x128xf32>
    %171 = vector.extract_strided_slice %164 {offsets = [0, 128], sizes = [2, 128], strides = [1, 1]} : vector<2x512xf32> to vector<2x128xf32>
    %172 = arith.negf %171 : vector<2x128xf32>
    %173 = math.exp %172 : vector<2x128xf32>
    %cst_74 = arith.constant 1.000000e+00 : f32
    %174 = vector.broadcast %cst_74 : f32 to vector<2x128xf32>
    %175 = arith.addf %174, %173 : vector<2x128xf32>
    %176 = arith.divf %174, %175 : vector<2x128xf32>
    %177 = vector.extract_strided_slice %164 {offsets = [0, 256], sizes = [2, 128], strides = [1, 1]} : vector<2x512xf32> to vector<2x128xf32>
    %178 = math.tanh %177 : vector<2x128xf32>
    %179 = vector.extract_strided_slice %164 {offsets = [0, 384], sizes = [2, 128], strides = [1, 1]} : vector<2x512xf32> to vector<2x128xf32>
    %180 = arith.negf %179 : vector<2x128xf32>
    %181 = math.exp %180 : vector<2x128xf32>
    %cst_75 = arith.constant 1.000000e+00 : f32
    %182 = vector.broadcast %cst_75 : f32 to vector<2x128xf32>
    %183 = arith.addf %182, %181 : vector<2x128xf32>
    %184 = arith.divf %182, %183 : vector<2x128xf32>
    %185 = arith.mulf %176, %141 : vector<2x128xf32>
    %186 = arith.mulf %170, %178 : vector<2x128xf32>
    %187 = arith.addf %185, %186 : vector<2x128xf32>
    %188 = math.tanh %187 : vector<2x128xf32>
    %189 = arith.mulf %184, %188 : vector<2x128xf32>
    %190 = vector.extract_strided_slice %189 {offsets = [0, 0], sizes = [1, 64], strides = [1, 1]} : vector<2x128xf32> to vector<1x64xf32>
    %c0_76 = arith.constant 0 : index
    %c2_77 = arith.constant 2 : index
    %c0_78 = arith.constant 0 : index
    %191 = vector.load %arg21[%c0_76, %c2_77, %c0_78] : memref<2x8x128xf32, #tpu.memory_space<vmem>>, vector<1x1x64xf32>
    %192 = vector.shape_cast %191 : vector<1x1x64xf32> to vector<1x64xf32>
    %193 = vector.shape_cast %190 : vector<1x64xf32> to vector<1x1x64xf32>
    tpu.vector_store %arg21[%c0_76, %c2_77, %c0_78], %193 {strides = array<i32>} : memref<2x8x128xf32, #tpu.memory_space<vmem>>, vector<1x1x64xf32>,
    %194 = vector.extract_strided_slice %189 {offsets = [0, 64], sizes = [1, 64], strides = [1, 1]} : vector<2x128xf32> to vector<1x64xf32>
    %c0_79 = arith.constant 0 : index
    %c5_80 = arith.constant 5 : index
    %c64_81 = arith.constant 64 : index
    %195 = vector.load %arg21[%c0_79, %c5_80, %c64_81] : memref<2x8x128xf32, #tpu.memory_space<vmem>>, vector<1x1x64xf32>
    %196 = vector.shape_cast %195 : vector<1x1x64xf32> to vector<1x64xf32>
    %197 = vector.shape_cast %194 : vector<1x64xf32> to vector<1x1x64xf32>
    tpu.vector_store %arg21[%c0_79, %c5_80, %c64_81], %197 {strides = array<i32>} : memref<2x8x128xf32, #tpu.memory_space<vmem>>, vector<1x1x64xf32>,
    %198 = vector.extract_strided_slice %189 {offsets = [1, 0], sizes = [1, 64], strides = [1, 1]} : vector<2x128xf32> to vector<1x64xf32>
    %c1_82 = arith.constant 1 : index
    %c2_83 = arith.constant 2 : index
    %c0_84 = arith.constant 0 : index
    %199 = vector.load %arg21[%c1_82, %c2_83, %c0_84] : memref<2x8x128xf32, #tpu.memory_space<vmem>>, vector<1x1x64xf32>
    %200 = vector.shape_cast %199 : vector<1x1x64xf32> to vector<1x64xf32>
    %201 = vector.shape_cast %198 : vector<1x64xf32> to vector<1x1x64xf32>
    tpu.vector_store %arg21[%c1_82, %c2_83, %c0_84], %201 {strides = array<i32>} : memref<2x8x128xf32, #tpu.memory_space<vmem>>, vector<1x1x64xf32>,
    %202 = vector.extract_strided_slice %189 {offsets = [1, 64], sizes = [1, 64], strides = [1, 1]} : vector<2x128xf32> to vector<1x64xf32>
    %c1_85 = arith.constant 1 : index
    %c5_86 = arith.constant 5 : index
    %c64_87 = arith.constant 64 : index
    %203 = vector.load %arg21[%c1_85, %c5_86, %c64_87] : memref<2x8x128xf32, #tpu.memory_space<vmem>>, vector<1x1x64xf32>
    %204 = vector.shape_cast %203 : vector<1x1x64xf32> to vector<1x64xf32>
    %205 = vector.shape_cast %202 : vector<1x64xf32> to vector<1x1x64xf32>
    tpu.vector_store %arg21[%c1_85, %c5_86, %c64_87], %205 {strides = array<i32>} : memref<2x8x128xf32, #tpu.memory_space<vmem>>, vector<1x1x64xf32>,
    %c3_88 = arith.constant 3 : index
    %c0_89 = arith.constant 0 : index
    %c0_90 = arith.constant 0 : index
    %206 = vector.load %arg20[%c3_88, %c0_89, %c0_90] : memref<8x2x512xf32, #tpu.memory_space<vmem>>, vector<1x2x512xf32>
    %207 = vector.shape_cast %206 : vector<1x2x512xf32> to vector<2x512xf32>
    %208 = arith.truncf %189 : vector<2x128xf32> to vector<2x128xbf16>
    %cst_91 = arith.constant dense<0.000000e+00> : vector<2x512xf32>
    %209 = tpu.matmul %208, %65, %cst_91 {dimension_numbers = #tpu.dot_dimension_numbers<[1], [0], [0], [1], [0, 0, 1, 1], [], []>} : vector<2x128xbf16>, vector<128x512xbf16>, vector<2x512xf32> -> vector<2x512xf32>
    %210 = arith.addf %207, %209 : vector<2x512xf32>
    %211 = vector.extract_strided_slice %210 {offsets = [0, 0], sizes = [2, 128], strides = [1, 1]} : vector<2x512xf32> to vector<2x128xf32>
    %212 = arith.negf %211 : vector<2x128xf32>
    %213 = math.exp %212 : vector<2x128xf32>
    %cst_92 = arith.constant 1.000000e+00 : f32
    %214 = vector.broadcast %cst_92 : f32 to vector<2x128xf32>
    %215 = arith.addf %214, %213 : vector<2x128xf32>
    %216 = arith.divf %214, %215 : vector<2x128xf32>
    %217 = vector.extract_strided_slice %210 {offsets = [0, 128], sizes = [2, 128], strides = [1, 1]} : vector<2x512xf32> to vector<2x128xf32>
    %218 = arith.negf %217 : vector<2x128xf32>
    %219 = math.exp %218 : vector<2x128xf32>
    %cst_93 = arith.constant 1.000000e+00 : f32
    %220 = vector.broadcast %cst_93 : f32 to vector<2x128xf32>
    %221 = arith.addf %220, %219 : vector<2x128xf32>
    %222 = arith.divf %220, %221 : vector<2x128xf32>
    %223 = vector.extract_strided_slice %210 {offsets = [0, 256], sizes = [2, 128], strides = [1, 1]} : vector<2x512xf32> to vector<2x128xf32>
    %224 = math.tanh %223 : vector<2x128xf32>
    %225 = vector.extract_strided_slice %210 {offsets = [0, 384], sizes = [2, 128], strides = [1, 1]} : vector<2x512xf32> to vector<2x128xf32>
    %226 = arith.negf %225 : vector<2x128xf32>
    %227 = math.exp %226 : vector<2x128xf32>
    %cst_94 = arith.constant 1.000000e+00 : f32
    %228 = vector.broadcast %cst_94 : f32 to vector<2x128xf32>
    %229 = arith.addf %228, %227 : vector<2x128xf32>
    %230 = arith.divf %228, %229 : vector<2x128xf32>
    %231 = arith.mulf %222, %187 : vector<2x128xf32>
    %232 = arith.mulf %216, %224 : vector<2x128xf32>
    %233 = arith.addf %231, %232 : vector<2x128xf32>
    %234 = math.tanh %233 : vector<2x128xf32>
    %235 = arith.mulf %230, %234 : vector<2x128xf32>
    %236 = vector.extract_strided_slice %235 {offsets = [0, 0], sizes = [1, 64], strides = [1, 1]} : vector<2x128xf32> to vector<1x64xf32>
    %c0_95 = arith.constant 0 : index
    %c3_96 = arith.constant 3 : index
    %c0_97 = arith.constant 0 : index
    %237 = vector.load %arg21[%c0_95, %c3_96, %c0_97] : memref<2x8x128xf32, #tpu.memory_space<vmem>>, vector<1x1x64xf32>
    %238 = vector.shape_cast %237 : vector<1x1x64xf32> to vector<1x64xf32>
    %239 = vector.shape_cast %236 : vector<1x64xf32> to vector<1x1x64xf32>
    tpu.vector_store %arg21[%c0_95, %c3_96, %c0_97], %239 {strides = array<i32>} : memref<2x8x128xf32, #tpu.memory_space<vmem>>, vector<1x1x64xf32>,
    %240 = vector.extract_strided_slice %235 {offsets = [0, 64], sizes = [1, 64], strides = [1, 1]} : vector<2x128xf32> to vector<1x64xf32>
    %c0_98 = arith.constant 0 : index
    %c4_99 = arith.constant 4 : index
    %c64_100 = arith.constant 64 : index
    %241 = vector.load %arg21[%c0_98, %c4_99, %c64_100] : memref<2x8x128xf32, #tpu.memory_space<vmem>>, vector<1x1x64xf32>
    %242 = vector.shape_cast %241 : vector<1x1x64xf32> to vector<1x64xf32>
    %243 = vector.shape_cast %240 : vector<1x64xf32> to vector<1x1x64xf32>
    tpu.vector_store %arg21[%c0_98, %c4_99, %c64_100], %243 {strides = array<i32>} : memref<2x8x128xf32, #tpu.memory_space<vmem>>, vector<1x1x64xf32>,
    %244 = vector.extract_strided_slice %235 {offsets = [1, 0], sizes = [1, 64], strides = [1, 1]} : vector<2x128xf32> to vector<1x64xf32>
    %c1_101 = arith.constant 1 : index
    %c3_102 = arith.constant 3 : index
    %c0_103 = arith.constant 0 : index
    %245 = vector.load %arg21[%c1_101, %c3_102, %c0_103] : memref<2x8x128xf32, #tpu.memory_space<vmem>>, vector<1x1x64xf32>
    %246 = vector.shape_cast %245 : vector<1x1x64xf32> to vector<1x64xf32>
    %247 = vector.shape_cast %244 : vector<1x64xf32> to vector<1x1x64xf32>
    tpu.vector_store %arg21[%c1_101, %c3_102, %c0_103], %247 {strides = array<i32>} : memref<2x8x128xf32, #tpu.memory_space<vmem>>, vector<1x1x64xf32>,
    %248 = vector.extract_strided_slice %235 {offsets = [1, 64], sizes = [1, 64], strides = [1, 1]} : vector<2x128xf32> to vector<1x64xf32>
    %c1_104 = arith.constant 1 : index
    %c4_105 = arith.constant 4 : index
    %c64_106 = arith.constant 64 : index
    %249 = vector.load %arg21[%c1_104, %c4_105, %c64_106] : memref<2x8x128xf32, #tpu.memory_space<vmem>>, vector<1x1x64xf32>
    %250 = vector.shape_cast %249 : vector<1x1x64xf32> to vector<1x64xf32>
    %251 = vector.shape_cast %248 : vector<1x64xf32> to vector<1x1x64xf32>
    tpu.vector_store %arg21[%c1_104, %c4_105, %c64_106], %251 {strides = array<i32>} : memref<2x8x128xf32, #tpu.memory_space<vmem>>, vector<1x1x64xf32>,
    %c4_107 = arith.constant 4 : index
    %c0_108 = arith.constant 0 : index
    %c0_109 = arith.constant 0 : index
    %252 = vector.load %arg20[%c4_107, %c0_108, %c0_109] : memref<8x2x512xf32, #tpu.memory_space<vmem>>, vector<1x2x512xf32>
    %253 = vector.shape_cast %252 : vector<1x2x512xf32> to vector<2x512xf32>
    %254 = arith.truncf %235 : vector<2x128xf32> to vector<2x128xbf16>
    %cst_110 = arith.constant dense<0.000000e+00> : vector<2x512xf32>
    %255 = tpu.matmul %254, %65, %cst_110 {dimension_numbers = #tpu.dot_dimension_numbers<[1], [0], [0], [1], [0, 0, 1, 1], [], []>} : vector<2x128xbf16>, vector<128x512xbf16>, vector<2x512xf32> -> vector<2x512xf32>
    %256 = arith.addf %253, %255 : vector<2x512xf32>
    %257 = vector.extract_strided_slice %256 {offsets = [0, 0], sizes = [2, 128], strides = [1, 1]} : vector<2x512xf32> to vector<2x128xf32>
    %258 = arith.negf %257 : vector<2x128xf32>
    %259 = math.exp %258 : vector<2x128xf32>
    %cst_111 = arith.constant 1.000000e+00 : f32
    %260 = vector.broadcast %cst_111 : f32 to vector<2x128xf32>
    %261 = arith.addf %260, %259 : vector<2x128xf32>
    %262 = arith.divf %260, %261 : vector<2x128xf32>
    %263 = vector.extract_strided_slice %256 {offsets = [0, 128], sizes = [2, 128], strides = [1, 1]} : vector<2x512xf32> to vector<2x128xf32>
    %264 = arith.negf %263 : vector<2x128xf32>
    %265 = math.exp %264 : vector<2x128xf32>
    %cst_112 = arith.constant 1.000000e+00 : f32
    %266 = vector.broadcast %cst_112 : f32 to vector<2x128xf32>
    %267 = arith.addf %266, %265 : vector<2x128xf32>
    %268 = arith.divf %266, %267 : vector<2x128xf32>
    %269 = vector.extract_strided_slice %256 {offsets = [0, 256], sizes = [2, 128], strides = [1, 1]} : vector<2x512xf32> to vector<2x128xf32>
    %270 = math.tanh %269 : vector<2x128xf32>
    %271 = vector.extract_strided_slice %256 {offsets = [0, 384], sizes = [2, 128], strides = [1, 1]} : vector<2x512xf32> to vector<2x128xf32>
    %272 = arith.negf %271 : vector<2x128xf32>
    %273 = math.exp %272 : vector<2x128xf32>
    %cst_113 = arith.constant 1.000000e+00 : f32
    %274 = vector.broadcast %cst_113 : f32 to vector<2x128xf32>
    %275 = arith.addf %274, %273 : vector<2x128xf32>
    %276 = arith.divf %274, %275 : vector<2x128xf32>
    %277 = arith.mulf %268, %233 : vector<2x128xf32>
    %278 = arith.mulf %262, %270 : vector<2x128xf32>
    %279 = arith.addf %277, %278 : vector<2x128xf32>
    %280 = math.tanh %279 : vector<2x128xf32>
    %281 = arith.mulf %276, %280 : vector<2x128xf32>
    %282 = vector.extract_strided_slice %281 {offsets = [0, 0], sizes = [1, 64], strides = [1, 1]} : vector<2x128xf32> to vector<1x64xf32>
    %c0_114 = arith.constant 0 : index
    %c4_115 = arith.constant 4 : index
    %c0_116 = arith.constant 0 : index
    %283 = vector.load %arg21[%c0_114, %c4_115, %c0_116] : memref<2x8x128xf32, #tpu.memory_space<vmem>>, vector<1x1x64xf32>
    %284 = vector.shape_cast %283 : vector<1x1x64xf32> to vector<1x64xf32>
    %285 = vector.shape_cast %282 : vector<1x64xf32> to vector<1x1x64xf32>
    tpu.vector_store %arg21[%c0_114, %c4_115, %c0_116], %285 {strides = array<i32>} : memref<2x8x128xf32, #tpu.memory_space<vmem>>, vector<1x1x64xf32>,
    %286 = vector.extract_strided_slice %281 {offsets = [0, 64], sizes = [1, 64], strides = [1, 1]} : vector<2x128xf32> to vector<1x64xf32>
    %c0_117 = arith.constant 0 : index
    %c3_118 = arith.constant 3 : index
    %c64_119 = arith.constant 64 : index
    %287 = vector.load %arg21[%c0_117, %c3_118, %c64_119] : memref<2x8x128xf32, #tpu.memory_space<vmem>>, vector<1x1x64xf32>
    %288 = vector.shape_cast %287 : vector<1x1x64xf32> to vector<1x64xf32>
    %289 = vector.shape_cast %286 : vector<1x64xf32> to vector<1x1x64xf32>
    tpu.vector_store %arg21[%c0_117, %c3_118, %c64_119], %289 {strides = array<i32>} : memref<2x8x128xf32, #tpu.memory_space<vmem>>, vector<1x1x64xf32>,
    %290 = vector.extract_strided_slice %281 {offsets = [1, 0], sizes = [1, 64], strides = [1, 1]} : vector<2x128xf32> to vector<1x64xf32>
    %c1_120 = arith.constant 1 : index
    %c4_121 = arith.constant 4 : index
    %c0_122 = arith.constant 0 : index
    %291 = vector.load %arg21[%c1_120, %c4_121, %c0_122] : memref<2x8x128xf32, #tpu.memory_space<vmem>>, vector<1x1x64xf32>
    %292 = vector.shape_cast %291 : vector<1x1x64xf32> to vector<1x64xf32>
    %293 = vector.shape_cast %290 : vector<1x64xf32> to vector<1x1x64xf32>
    tpu.vector_store %arg21[%c1_120, %c4_121, %c0_122], %293 {strides = array<i32>} : memref<2x8x128xf32, #tpu.memory_space<vmem>>, vector<1x1x64xf32>,
    %294 = vector.extract_strided_slice %281 {offsets = [1, 64], sizes = [1, 64], strides = [1, 1]} : vector<2x128xf32> to vector<1x64xf32>
    %c1_123 = arith.constant 1 : index
    %c3_124 = arith.constant 3 : index
    %c64_125 = arith.constant 64 : index
    %295 = vector.load %arg21[%c1_123, %c3_124, %c64_125] : memref<2x8x128xf32, #tpu.memory_space<vmem>>, vector<1x1x64xf32>
    %296 = vector.shape_cast %295 : vector<1x1x64xf32> to vector<1x64xf32>
    %297 = vector.shape_cast %294 : vector<1x64xf32> to vector<1x1x64xf32>
    tpu.vector_store %arg21[%c1_123, %c3_124, %c64_125], %297 {strides = array<i32>} : memref<2x8x128xf32, #tpu.memory_space<vmem>>, vector<1x1x64xf32>,
    %c5_126 = arith.constant 5 : index
    %c0_127 = arith.constant 0 : index
    %c0_128 = arith.constant 0 : index
    %298 = vector.load %arg20[%c5_126, %c0_127, %c0_128] : memref<8x2x512xf32, #tpu.memory_space<vmem>>, vector<1x2x512xf32>
    %299 = vector.shape_cast %298 : vector<1x2x512xf32> to vector<2x512xf32>
    %300 = arith.truncf %281 : vector<2x128xf32> to vector<2x128xbf16>
    %cst_129 = arith.constant dense<0.000000e+00> : vector<2x512xf32>
    %301 = tpu.matmul %300, %65, %cst_129 {dimension_numbers = #tpu.dot_dimension_numbers<[1], [0], [0], [1], [0, 0, 1, 1], [], []>} : vector<2x128xbf16>, vector<128x512xbf16>, vector<2x512xf32> -> vector<2x512xf32>
    %302 = arith.addf %299, %301 : vector<2x512xf32>
    %303 = vector.extract_strided_slice %302 {offsets = [0, 0], sizes = [2, 128], strides = [1, 1]} : vector<2x512xf32> to vector<2x128xf32>
    %304 = arith.negf %303 : vector<2x128xf32>
    %305 = math.exp %304 : vector<2x128xf32>
    %cst_130 = arith.constant 1.000000e+00 : f32
    %306 = vector.broadcast %cst_130 : f32 to vector<2x128xf32>
    %307 = arith.addf %306, %305 : vector<2x128xf32>
    %308 = arith.divf %306, %307 : vector<2x128xf32>
    %309 = vector.extract_strided_slice %302 {offsets = [0, 128], sizes = [2, 128], strides = [1, 1]} : vector<2x512xf32> to vector<2x128xf32>
    %310 = arith.negf %309 : vector<2x128xf32>
    %311 = math.exp %310 : vector<2x128xf32>
    %cst_131 = arith.constant 1.000000e+00 : f32
    %312 = vector.broadcast %cst_131 : f32 to vector<2x128xf32>
    %313 = arith.addf %312, %311 : vector<2x128xf32>
    %314 = arith.divf %312, %313 : vector<2x128xf32>
    %315 = vector.extract_strided_slice %302 {offsets = [0, 256], sizes = [2, 128], strides = [1, 1]} : vector<2x512xf32> to vector<2x128xf32>
    %316 = math.tanh %315 : vector<2x128xf32>
    %317 = vector.extract_strided_slice %302 {offsets = [0, 384], sizes = [2, 128], strides = [1, 1]} : vector<2x512xf32> to vector<2x128xf32>
    %318 = arith.negf %317 : vector<2x128xf32>
    %319 = math.exp %318 : vector<2x128xf32>
    %cst_132 = arith.constant 1.000000e+00 : f32
    %320 = vector.broadcast %cst_132 : f32 to vector<2x128xf32>
    %321 = arith.addf %320, %319 : vector<2x128xf32>
    %322 = arith.divf %320, %321 : vector<2x128xf32>
    %323 = arith.mulf %314, %279 : vector<2x128xf32>
    %324 = arith.mulf %308, %316 : vector<2x128xf32>
    %325 = arith.addf %323, %324 : vector<2x128xf32>
    %326 = math.tanh %325 : vector<2x128xf32>
    %327 = arith.mulf %322, %326 : vector<2x128xf32>
    %328 = vector.extract_strided_slice %327 {offsets = [0, 0], sizes = [1, 64], strides = [1, 1]} : vector<2x128xf32> to vector<1x64xf32>
    %c0_133 = arith.constant 0 : index
    %c5_134 = arith.constant 5 : index
    %c0_135 = arith.constant 0 : index
    %329 = vector.load %arg21[%c0_133, %c5_134, %c0_135] : memref<2x8x128xf32, #tpu.memory_space<vmem>>, vector<1x1x64xf32>
    %330 = vector.shape_cast %329 : vector<1x1x64xf32> to vector<1x64xf32>
    %331 = vector.shape_cast %328 : vector<1x64xf32> to vector<1x1x64xf32>
    tpu.vector_store %arg21[%c0_133, %c5_134, %c0_135], %331 {strides = array<i32>} : memref<2x8x128xf32, #tpu.memory_space<vmem>>, vector<1x1x64xf32>,
    %332 = vector.extract_strided_slice %327 {offsets = [0, 64], sizes = [1, 64], strides = [1, 1]} : vector<2x128xf32> to vector<1x64xf32>
    %c0_136 = arith.constant 0 : index
    %c2_137 = arith.constant 2 : index
    %c64_138 = arith.constant 64 : index
    %333 = vector.load %arg21[%c0_136, %c2_137, %c64_138] : memref<2x8x128xf32, #tpu.memory_space<vmem>>, vector<1x1x64xf32>
    %334 = vector.shape_cast %333 : vector<1x1x64xf32> to vector<1x64xf32>
    %335 = vector.shape_cast %332 : vector<1x64xf32> to vector<1x1x64xf32>
    tpu.vector_store %arg21[%c0_136, %c2_137, %c64_138], %335 {strides = array<i32>} : memref<2x8x128xf32, #tpu.memory_space<vmem>>, vector<1x1x64xf32>,
    %336 = vector.extract_strided_slice %327 {offsets = [1, 0], sizes = [1, 64], strides = [1, 1]} : vector<2x128xf32> to vector<1x64xf32>
    %c1_139 = arith.constant 1 : index
    %c5_140 = arith.constant 5 : index
    %c0_141 = arith.constant 0 : index
    %337 = vector.load %arg21[%c1_139, %c5_140, %c0_141] : memref<2x8x128xf32, #tpu.memory_space<vmem>>, vector<1x1x64xf32>
    %338 = vector.shape_cast %337 : vector<1x1x64xf32> to vector<1x64xf32>
    %339 = vector.shape_cast %336 : vector<1x64xf32> to vector<1x1x64xf32>
    tpu.vector_store %arg21[%c1_139, %c5_140, %c0_141], %339 {strides = array<i32>} : memref<2x8x128xf32, #tpu.memory_space<vmem>>, vector<1x1x64xf32>,
    %340 = vector.extract_strided_slice %327 {offsets = [1, 64], sizes = [1, 64], strides = [1, 1]} : vector<2x128xf32> to vector<1x64xf32>
    %c1_142 = arith.constant 1 : index
    %c2_143 = arith.constant 2 : index
    %c64_144 = arith.constant 64 : index
    %341 = vector.load %arg21[%c1_142, %c2_143, %c64_144] : memref<2x8x128xf32, #tpu.memory_space<vmem>>, vector<1x1x64xf32>
    %342 = vector.shape_cast %341 : vector<1x1x64xf32> to vector<1x64xf32>
    %343 = vector.shape_cast %340 : vector<1x64xf32> to vector<1x1x64xf32>
    tpu.vector_store %arg21[%c1_142, %c2_143, %c64_144], %343 {strides = array<i32>} : memref<2x8x128xf32, #tpu.memory_space<vmem>>, vector<1x1x64xf32>,
    %c6_145 = arith.constant 6 : index
    %c0_146 = arith.constant 0 : index
    %c0_147 = arith.constant 0 : index
    %344 = vector.load %arg20[%c6_145, %c0_146, %c0_147] : memref<8x2x512xf32, #tpu.memory_space<vmem>>, vector<1x2x512xf32>
    %345 = vector.shape_cast %344 : vector<1x2x512xf32> to vector<2x512xf32>
    %346 = arith.truncf %327 : vector<2x128xf32> to vector<2x128xbf16>
    %cst_148 = arith.constant dense<0.000000e+00> : vector<2x512xf32>
    %347 = tpu.matmul %346, %65, %cst_148 {dimension_numbers = #tpu.dot_dimension_numbers<[1], [0], [0], [1], [0, 0, 1, 1], [], []>} : vector<2x128xbf16>, vector<128x512xbf16>, vector<2x512xf32> -> vector<2x512xf32>
    %348 = arith.addf %345, %347 : vector<2x512xf32>
    %349 = vector.extract_strided_slice %348 {offsets = [0, 0], sizes = [2, 128], strides = [1, 1]} : vector<2x512xf32> to vector<2x128xf32>
    %350 = arith.negf %349 : vector<2x128xf32>
    %351 = math.exp %350 : vector<2x128xf32>
    %cst_149 = arith.constant 1.000000e+00 : f32
    %352 = vector.broadcast %cst_149 : f32 to vector<2x128xf32>
    %353 = arith.addf %352, %351 : vector<2x128xf32>
    %354 = arith.divf %352, %353 : vector<2x128xf32>
    %355 = vector.extract_strided_slice %348 {offsets = [0, 128], sizes = [2, 128], strides = [1, 1]} : vector<2x512xf32> to vector<2x128xf32>
    %356 = arith.negf %355 : vector<2x128xf32>
    %357 = math.exp %356 : vector<2x128xf32>
    %cst_150 = arith.constant 1.000000e+00 : f32
    %358 = vector.broadcast %cst_150 : f32 to vector<2x128xf32>
    %359 = arith.addf %358, %357 : vector<2x128xf32>
    %360 = arith.divf %358, %359 : vector<2x128xf32>
    %361 = vector.extract_strided_slice %348 {offsets = [0, 256], sizes = [2, 128], strides = [1, 1]} : vector<2x512xf32> to vector<2x128xf32>
    %362 = math.tanh %361 : vector<2x128xf32>
    %363 = vector.extract_strided_slice %348 {offsets = [0, 384], sizes = [2, 128], strides = [1, 1]} : vector<2x512xf32> to vector<2x128xf32>
    %364 = arith.negf %363 : vector<2x128xf32>
    %365 = math.exp %364 : vector<2x128xf32>
    %cst_151 = arith.constant 1.000000e+00 : f32
    %366 = vector.broadcast %cst_151 : f32 to vector<2x128xf32>
    %367 = arith.addf %366, %365 : vector<2x128xf32>
    %368 = arith.divf %366, %367 : vector<2x128xf32>
    %369 = arith.mulf %360, %325 : vector<2x128xf32>
    %370 = arith.mulf %354, %362 : vector<2x128xf32>
    %371 = arith.addf %369, %370 : vector<2x128xf32>
    %372 = math.tanh %371 : vector<2x128xf32>
    %373 = arith.mulf %368, %372 : vector<2x128xf32>
    %374 = vector.extract_strided_slice %373 {offsets = [0, 0], sizes = [1, 64], strides = [1, 1]} : vector<2x128xf32> to vector<1x64xf32>
    %c0_152 = arith.constant 0 : index
    %c6_153 = arith.constant 6 : index
    %c0_154 = arith.constant 0 : index
    %375 = vector.load %arg21[%c0_152, %c6_153, %c0_154] : memref<2x8x128xf32, #tpu.memory_space<vmem>>, vector<1x1x64xf32>
    %376 = vector.shape_cast %375 : vector<1x1x64xf32> to vector<1x64xf32>
    %377 = vector.shape_cast %374 : vector<1x64xf32> to vector<1x1x64xf32>
    tpu.vector_store %arg21[%c0_152, %c6_153, %c0_154], %377 {strides = array<i32>} : memref<2x8x128xf32, #tpu.memory_space<vmem>>, vector<1x1x64xf32>,
    %378 = vector.extract_strided_slice %373 {offsets = [0, 64], sizes = [1, 64], strides = [1, 1]} : vector<2x128xf32> to vector<1x64xf32>
    %c0_155 = arith.constant 0 : index
    %c1_156 = arith.constant 1 : index
    %c64_157 = arith.constant 64 : index
    %379 = vector.load %arg21[%c0_155, %c1_156, %c64_157] : memref<2x8x128xf32, #tpu.memory_space<vmem>>, vector<1x1x64xf32>
    %380 = vector.shape_cast %379 : vector<1x1x64xf32> to vector<1x64xf32>
    %381 = vector.shape_cast %378 : vector<1x64xf32> to vector<1x1x64xf32>
    tpu.vector_store %arg21[%c0_155, %c1_156, %c64_157], %381 {strides = array<i32>} : memref<2x8x128xf32, #tpu.memory_space<vmem>>, vector<1x1x64xf32>,
    %382 = vector.extract_strided_slice %373 {offsets = [1, 0], sizes = [1, 64], strides = [1, 1]} : vector<2x128xf32> to vector<1x64xf32>
    %c1_158 = arith.constant 1 : index
    %c6_159 = arith.constant 6 : index
    %c0_160 = arith.constant 0 : index
    %383 = vector.load %arg21[%c1_158, %c6_159, %c0_160] : memref<2x8x128xf32, #tpu.memory_space<vmem>>, vector<1x1x64xf32>
    %384 = vector.shape_cast %383 : vector<1x1x64xf32> to vector<1x64xf32>
    %385 = vector.shape_cast %382 : vector<1x64xf32> to vector<1x1x64xf32>
    tpu.vector_store %arg21[%c1_158, %c6_159, %c0_160], %385 {strides = array<i32>} : memref<2x8x128xf32, #tpu.memory_space<vmem>>, vector<1x1x64xf32>,
    %386 = vector.extract_strided_slice %373 {offsets = [1, 64], sizes = [1, 64], strides = [1, 1]} : vector<2x128xf32> to vector<1x64xf32>
    %c1_161 = arith.constant 1 : index
    %c1_162 = arith.constant 1 : index
    %c64_163 = arith.constant 64 : index
    %387 = vector.load %arg21[%c1_161, %c1_162, %c64_163] : memref<2x8x128xf32, #tpu.memory_space<vmem>>, vector<1x1x64xf32>
    %388 = vector.shape_cast %387 : vector<1x1x64xf32> to vector<1x64xf32>
    %389 = vector.shape_cast %386 : vector<1x64xf32> to vector<1x1x64xf32>
    tpu.vector_store %arg21[%c1_161, %c1_162, %c64_163], %389 {strides = array<i32>} : memref<2x8x128xf32, #tpu.memory_space<vmem>>, vector<1x1x64xf32>,
    %c7_164 = arith.constant 7 : index
    %c0_165 = arith.constant 0 : index
    %c0_166 = arith.constant 0 : index
    %390 = vector.load %arg20[%c7_164, %c0_165, %c0_166] : memref<8x2x512xf32, #tpu.memory_space<vmem>>, vector<1x2x512xf32>
    %391 = vector.shape_cast %390 : vector<1x2x512xf32> to vector<2x512xf32>
    %392 = arith.truncf %373 : vector<2x128xf32> to vector<2x128xbf16>
    %cst_167 = arith.constant dense<0.000000e+00> : vector<2x512xf32>
    %393 = tpu.matmul %392, %65, %cst_167 {dimension_numbers = #tpu.dot_dimension_numbers<[1], [0], [0], [1], [0, 0, 1, 1], [], []>} : vector<2x128xbf16>, vector<128x512xbf16>, vector<2x512xf32> -> vector<2x512xf32>
    %394 = arith.addf %391, %393 : vector<2x512xf32>
    %395 = vector.extract_strided_slice %394 {offsets = [0, 0], sizes = [2, 128], strides = [1, 1]} : vector<2x512xf32> to vector<2x128xf32>
    %396 = arith.negf %395 : vector<2x128xf32>
    %397 = math.exp %396 : vector<2x128xf32>
    %cst_168 = arith.constant 1.000000e+00 : f32
    %398 = vector.broadcast %cst_168 : f32 to vector<2x128xf32>
    %399 = arith.addf %398, %397 : vector<2x128xf32>
    %400 = arith.divf %398, %399 : vector<2x128xf32>
    %401 = vector.extract_strided_slice %394 {offsets = [0, 128], sizes = [2, 128], strides = [1, 1]} : vector<2x512xf32> to vector<2x128xf32>
    %402 = arith.negf %401 : vector<2x128xf32>
    %403 = math.exp %402 : vector<2x128xf32>
    %cst_169 = arith.constant 1.000000e+00 : f32
    %404 = vector.broadcast %cst_169 : f32 to vector<2x128xf32>
    %405 = arith.addf %404, %403 : vector<2x128xf32>
    %406 = arith.divf %404, %405 : vector<2x128xf32>
    %407 = vector.extract_strided_slice %394 {offsets = [0, 256], sizes = [2, 128], strides = [1, 1]} : vector<2x512xf32> to vector<2x128xf32>
    %408 = math.tanh %407 : vector<2x128xf32>
    %409 = vector.extract_strided_slice %394 {offsets = [0, 384], sizes = [2, 128], strides = [1, 1]} : vector<2x512xf32> to vector<2x128xf32>
    %410 = arith.negf %409 : vector<2x128xf32>
    %411 = math.exp %410 : vector<2x128xf32>
    %cst_170 = arith.constant 1.000000e+00 : f32
    %412 = vector.broadcast %cst_170 : f32 to vector<2x128xf32>
    %413 = arith.addf %412, %411 : vector<2x128xf32>
    %414 = arith.divf %412, %413 : vector<2x128xf32>
    %415 = arith.mulf %406, %371 : vector<2x128xf32>
    %416 = arith.mulf %400, %408 : vector<2x128xf32>
    %417 = arith.addf %415, %416 : vector<2x128xf32>
    %418 = math.tanh %417 : vector<2x128xf32>
    %419 = arith.mulf %414, %418 : vector<2x128xf32>
    %420 = vector.extract_strided_slice %419 {offsets = [0, 0], sizes = [1, 64], strides = [1, 1]} : vector<2x128xf32> to vector<1x64xf32>
    %c0_171 = arith.constant 0 : index
    %c7_172 = arith.constant 7 : index
    %c0_173 = arith.constant 0 : index
    %421 = vector.load %arg21[%c0_171, %c7_172, %c0_173] : memref<2x8x128xf32, #tpu.memory_space<vmem>>, vector<1x1x64xf32>
    %422 = vector.shape_cast %421 : vector<1x1x64xf32> to vector<1x64xf32>
    %423 = vector.shape_cast %420 : vector<1x64xf32> to vector<1x1x64xf32>
    tpu.vector_store %arg21[%c0_171, %c7_172, %c0_173], %423 {strides = array<i32>} : memref<2x8x128xf32, #tpu.memory_space<vmem>>, vector<1x1x64xf32>,
    %424 = vector.extract_strided_slice %419 {offsets = [0, 64], sizes = [1, 64], strides = [1, 1]} : vector<2x128xf32> to vector<1x64xf32>
    %c0_174 = arith.constant 0 : index
    %c0_175 = arith.constant 0 : index
    %c64_176 = arith.constant 64 : index
    %425 = vector.load %arg21[%c0_174, %c0_175, %c64_176] : memref<2x8x128xf32, #tpu.memory_space<vmem>>, vector<1x1x64xf32>
    %426 = vector.shape_cast %425 : vector<1x1x64xf32> to vector<1x64xf32>
    %427 = vector.shape_cast %424 : vector<1x64xf32> to vector<1x1x64xf32>
    tpu.vector_store %arg21[%c0_174, %c0_175, %c64_176], %427 {strides = array<i32>} : memref<2x8x128xf32, #tpu.memory_space<vmem>>, vector<1x1x64xf32>,
    %428 = vector.extract_strided_slice %419 {offsets = [1, 0], sizes = [1, 64], strides = [1, 1]} : vector<2x128xf32> to vector<1x64xf32>
    %c1_177 = arith.constant 1 : index
    %c7_178 = arith.constant 7 : index
    %c0_179 = arith.constant 0 : index
    %429 = vector.load %arg21[%c1_177, %c7_178, %c0_179] : memref<2x8x128xf32, #tpu.memory_space<vmem>>, vector<1x1x64xf32>
    %430 = vector.shape_cast %429 : vector<1x1x64xf32> to vector<1x64xf32>
    %431 = vector.shape_cast %428 : vector<1x64xf32> to vector<1x1x64xf32>
    tpu.vector_store %arg21[%c1_177, %c7_178, %c0_179], %431 {strides = array<i32>} : memref<2x8x128xf32, #tpu.memory_space<vmem>>, vector<1x1x64xf32>,
    %432 = vector.extract_strided_slice %419 {offsets = [1, 64], sizes = [1, 64], strides = [1, 1]} : vector<2x128xf32> to vector<1x64xf32>
    %c1_180 = arith.constant 1 : index
    %c0_181 = arith.constant 0 : index
    %c64_182 = arith.constant 64 : index
    %433 = vector.load %arg21[%c1_180, %c0_181, %c64_182] : memref<2x8x128xf32, #tpu.memory_space<vmem>>, vector<1x1x64xf32>
    %434 = vector.shape_cast %433 : vector<1x1x64xf32> to vector<1x64xf32>
    %435 = vector.shape_cast %432 : vector<1x64xf32> to vector<1x1x64xf32>
    tpu.vector_store %arg21[%c1_180, %c0_181, %c64_182], %435 {strides = array<i32>} : memref<2x8x128xf32, #tpu.memory_space<vmem>>, vector<1x1x64xf32>,
    %c0_183 = arith.constant 0 : index
    %c0_184 = arith.constant 0 : index
    %436 = memref.load %arg12[%c0_183, %c0_184] : memref<1x1xf32, #tpu.memory_space<smem>>
    %c0_185 = arith.constant 0 : index
    %c0_186 = arith.constant 0 : index
    %437 = vector.load %arg6[%c0_185, %c0_186] : memref<128x128xbf16, #tpu.memory_space<vmem>>, vector<128x128xbf16>
    %c0_187 = arith.constant 0 : index
    %c0_188 = arith.constant 0 : index
    %438 = vector.load %arg8[%c0_187, %c0_188] : memref<128x256xbf16, #tpu.memory_space<vmem>>, vector<128x256xbf16>
    %c0_189 = arith.constant 0 : index
    %c0_190 = arith.constant 0 : index
    %439 = vector.load %arg10[%c0_189, %c0_190] : memref<128x128xbf16, #tpu.memory_space<vmem>>, vector<128x128xbf16>
    %c0_191 = arith.constant 0 : index
    %c0_192 = arith.constant 0 : index
    %c0_193 = arith.constant 0 : index
    %440 = vector.load %arg21[%c0_191, %c0_192, %c0_193] : memref<2x8x128xf32, #tpu.memory_space<vmem>>, vector<1x8x128xf32>
    %441 = vector.shape_cast %440 : vector<1x8x128xf32> to vector<8x128xf32>
    %442 = vector.extract_strided_slice %441 {offsets = [7, 0], sizes = [1, 128], strides = [1, 1]} : vector<8x128xf32> to vector<1x128xf32>
    %443 = arith.truncf %441 : vector<8x128xf32> to vector<8x128xbf16>
    %cst_194 = arith.constant dense<0.000000e+00> : vector<8x256xf32>
    %444 = tpu.matmul %443, %438, %cst_194 {dimension_numbers = #tpu.dot_dimension_numbers<[1], [0], [0], [1], [0, 0, 1, 1], [], []>} : vector<8x128xbf16>, vector<128x256xbf16>, vector<8x256xf32> -> vector<8x256xf32>
    %c0_195 = arith.constant 0 : index
    %c0_196 = arith.constant 0 : index
    %445 = vector.load %arg9[%c0_195, %c0_196] : memref<1x256xf32, #tpu.memory_space<vmem>>, vector<1x256xf32>
    %446 = vector.broadcast %445 : vector<1x256xf32> to vector<8x256xf32>
    %447 = arith.addf %444, %446 : vector<8x256xf32>
    %448 = vector.extract_strided_slice %447 {offsets = [0, 0], sizes = [8, 128], strides = [1, 1]} : vector<8x256xf32> to vector<8x128xf32>
    %449 = arith.truncf %448 : vector<8x128xf32> to vector<8x128xbf16>
    %450 = vector.extract_strided_slice %447 {offsets = [0, 128], sizes = [8, 128], strides = [1, 1]} : vector<8x256xf32> to vector<8x128xf32>
    %451 = arith.truncf %450 : vector<8x128xf32> to vector<8x128xbf16>
    %452 = arith.truncf %442 : vector<1x128xf32> to vector<1x128xbf16>
    %cst_197 = arith.constant dense<0.000000e+00> : vector<1x128xf32>
    %453 = tpu.matmul %452, %437, %cst_197 {dimension_numbers = #tpu.dot_dimension_numbers<[1], [0], [0], [1], [0, 0, 1, 1], [], []>} : vector<1x128xbf16>, vector<128x128xbf16>, vector<1x128xf32> -> vector<1x128xf32>
    %c0_198 = arith.constant 0 : index
    %c0_199 = arith.constant 0 : index
    %454 = vector.load %arg7[%c0_198, %c0_199] : memref<1x128xf32, #tpu.memory_space<vmem>>, vector<1x128xf32>
    %455 = arith.addf %453, %454 : vector<1x128xf32>
    %456 = arith.truncf %455 : vector<1x128xf32> to vector<1x128xbf16>
    %c0_200 = arith.constant 0 : index
    %c0_201 = arith.constant 0 : index
    %457 = vector.load %arg11[%c0_200, %c0_201] : memref<1x128xf32, #tpu.memory_space<vmem>>, vector<1x128xf32>
    %458 = vector.extract_strided_slice %456 {offsets = [0, 0], sizes = [1, 32], strides = [1, 1]} : vector<1x128xbf16> to vector<1x32xbf16>
    %459 = vector.extract_strided_slice %449 {offsets = [0, 0], sizes = [8, 32], strides = [1, 1]} : vector<8x128xbf16> to vector<8x32xbf16>
    "tpu.trace_start"() <{level = 10 : i32, message = "qd,kd->qk"}> : () -> ()
    %cst_202 = arith.constant dense<0.000000e+00> : vector<1x8xf32>
    %460 = tpu.matmul %458, %459, %cst_202 {dimension_numbers = #tpu.dot_dimension_numbers<[1], [1], [0], [0], [0, 0, 1, 0], [], []>} : vector<1x32xbf16>, vector<8x32xbf16>, vector<1x8xf32> -> vector<1x8xf32>
    "tpu.trace_stop"() : () -> ()
    %cst_203 = arith.constant 0.176776692 : f32
    %461 = vector.broadcast %cst_203 : f32 to vector<1x8xf32>
    %462 = arith.mulf %460, %461 : vector<1x8xf32>
    %cst_204 = arith.constant dense<0xFF800000> : vector<1xf32>
    %463 = vector.multi_reduction <maximumf>, %462, %cst_204 [1] : vector<1x8xf32> to vector<1xf32>
    %464 = vector.shape_cast %463 : vector<1xf32> to vector<1x1xf32>
    %465 = vector.broadcast %464 : vector<1x1xf32> to vector<1x8xf32>
    %466 = arith.subf %462, %465 : vector<1x8xf32>
    %467 = math.exp %466 : vector<1x8xf32>
    %cst_205 = arith.constant dense<0.000000e+00> : vector<1xf32>
    %468 = vector.multi_reduction <add>, %467, %cst_205 [1] : vector<1x8xf32> to vector<1xf32>
    %469 = vector.shape_cast %468 : vector<1xf32> to vector<1x1xf32>
    %470 = tpu.reciprocal %469 {approx = true} : vector<1x1xf32> -> vector<1x1xf32>
    %471 = vector.broadcast %470 : vector<1x1xf32> to vector<1x8xf32>
    %472 = arith.mulf %467, %471 : vector<1x8xf32>
    %473 = arith.truncf %472 : vector<1x8xf32> to vector<1x8xbf16>
    %474 = vector.extract_strided_slice %451 {offsets = [0, 0], sizes = [8, 32], strides = [1, 1]} : vector<8x128xbf16> to vector<8x32xbf16>
    %cst_206 = arith.constant dense<0.000000e+00> : vector<1x32xf32>
    %475 = tpu.matmul %473, %474, %cst_206 {dimension_numbers = #tpu.dot_dimension_numbers<[1], [0], [0], [1], [0, 0, 1, 1], [], []>} : vector<1x8xbf16>, vector<8x32xbf16>, vector<1x32xf32> -> vector<1x32xf32>
    %476 = arith.truncf %475 : vector<1x32xf32> to vector<1x32xbf16>
    %477 = vector.extract_strided_slice %439 {offsets = [0, 0], sizes = [32, 128], strides = [1, 1]} : vector<128x128xbf16> to vector<32x128xbf16>
    %cst_207 = arith.constant dense<0.000000e+00> : vector<1x128xf32>
    %478 = tpu.matmul %476, %477, %cst_207 {dimension_numbers = #tpu.dot_dimension_numbers<[1], [0], [0], [1], [0, 0, 1, 1], [], []>} : vector<1x32xbf16>, vector<32x128xbf16>, vector<1x128xf32> -> vector<1x128xf32>
    %479 = arith.addf %457, %478 : vector<1x128xf32>
    %480 = vector.extract_strided_slice %456 {offsets = [0, 32], sizes = [1, 32], strides = [1, 1]} : vector<1x128xbf16> to vector<1x32xbf16>
    %481 = vector.extract_strided_slice %449 {offsets = [0, 32], sizes = [8, 32], strides = [1, 1]} : vector<8x128xbf16> to vector<8x32xbf16>
    "tpu.trace_start"() <{level = 10 : i32, message = "qd,kd->qk"}> : () -> ()
    %cst_208 = arith.constant dense<0.000000e+00> : vector<1x8xf32>
    %482 = tpu.matmul %480, %481, %cst_208 {dimension_numbers = #tpu.dot_dimension_numbers<[1], [1], [0], [0], [0, 0, 1, 0], [], []>} : vector<1x32xbf16>, vector<8x32xbf16>, vector<1x8xf32> -> vector<1x8xf32>
    "tpu.trace_stop"() : () -> ()
    %cst_209 = arith.constant 0.176776692 : f32
    %483 = vector.broadcast %cst_209 : f32 to vector<1x8xf32>
    %484 = arith.mulf %482, %483 : vector<1x8xf32>
    %cst_210 = arith.constant dense<0xFF800000> : vector<1xf32>
    %485 = vector.multi_reduction <maximumf>, %484, %cst_210 [1] : vector<1x8xf32> to vector<1xf32>
    %486 = vector.shape_cast %485 : vector<1xf32> to vector<1x1xf32>
    %487 = vector.broadcast %486 : vector<1x1xf32> to vector<1x8xf32>
    %488 = arith.subf %484, %487 : vector<1x8xf32>
    %489 = math.exp %488 : vector<1x8xf32>
    %cst_211 = arith.constant dense<0.000000e+00> : vector<1xf32>
    %490 = vector.multi_reduction <add>, %489, %cst_211 [1] : vector<1x8xf32> to vector<1xf32>
    %491 = vector.shape_cast %490 : vector<1xf32> to vector<1x1xf32>
    %492 = tpu.reciprocal %491 {approx = true} : vector<1x1xf32> -> vector<1x1xf32>
    %493 = vector.broadcast %492 : vector<1x1xf32> to vector<1x8xf32>
    %494 = arith.mulf %489, %493 : vector<1x8xf32>
    %495 = arith.truncf %494 : vector<1x8xf32> to vector<1x8xbf16>
    %496 = vector.extract_strided_slice %451 {offsets = [0, 32], sizes = [8, 32], strides = [1, 1]} : vector<8x128xbf16> to vector<8x32xbf16>
    %cst_212 = arith.constant dense<0.000000e+00> : vector<1x32xf32>
    %497 = tpu.matmul %495, %496, %cst_212 {dimension_numbers = #tpu.dot_dimension_numbers<[1], [0], [0], [1], [0, 0, 1, 1], [], []>} : vector<1x8xbf16>, vector<8x32xbf16>, vector<1x32xf32> -> vector<1x32xf32>
    %498 = arith.truncf %497 : vector<1x32xf32> to vector<1x32xbf16>
    %499 = vector.extract_strided_slice %439 {offsets = [32, 0], sizes = [32, 128], strides = [1, 1]} : vector<128x128xbf16> to vector<32x128xbf16>
    %cst_213 = arith.constant dense<0.000000e+00> : vector<1x128xf32>
    %500 = tpu.matmul %498, %499, %cst_213 {dimension_numbers = #tpu.dot_dimension_numbers<[1], [0], [0], [1], [0, 0, 1, 1], [], []>} : vector<1x32xbf16>, vector<32x128xbf16>, vector<1x128xf32> -> vector<1x128xf32>
    %501 = arith.addf %479, %500 : vector<1x128xf32>
    %502 = vector.extract_strided_slice %456 {offsets = [0, 64], sizes = [1, 32], strides = [1, 1]} : vector<1x128xbf16> to vector<1x32xbf16>
    %503 = vector.extract_strided_slice %449 {offsets = [0, 64], sizes = [8, 32], strides = [1, 1]} : vector<8x128xbf16> to vector<8x32xbf16>
    "tpu.trace_start"() <{level = 10 : i32, message = "qd,kd->qk"}> : () -> ()
    %cst_214 = arith.constant dense<0.000000e+00> : vector<1x8xf32>
    %504 = tpu.matmul %502, %503, %cst_214 {dimension_numbers = #tpu.dot_dimension_numbers<[1], [1], [0], [0], [0, 0, 1, 0], [], []>} : vector<1x32xbf16>, vector<8x32xbf16>, vector<1x8xf32> -> vector<1x8xf32>
    "tpu.trace_stop"() : () -> ()
    %cst_215 = arith.constant 0.176776692 : f32
    %505 = vector.broadcast %cst_215 : f32 to vector<1x8xf32>
    %506 = arith.mulf %504, %505 : vector<1x8xf32>
    %cst_216 = arith.constant dense<0xFF800000> : vector<1xf32>
    %507 = vector.multi_reduction <maximumf>, %506, %cst_216 [1] : vector<1x8xf32> to vector<1xf32>
    %508 = vector.shape_cast %507 : vector<1xf32> to vector<1x1xf32>
    %509 = vector.broadcast %508 : vector<1x1xf32> to vector<1x8xf32>
    %510 = arith.subf %506, %509 : vector<1x8xf32>
    %511 = math.exp %510 : vector<1x8xf32>
    %cst_217 = arith.constant dense<0.000000e+00> : vector<1xf32>
    %512 = vector.multi_reduction <add>, %511, %cst_217 [1] : vector<1x8xf32> to vector<1xf32>
    %513 = vector.shape_cast %512 : vector<1xf32> to vector<1x1xf32>
    %514 = tpu.reciprocal %513 {approx = true} : vector<1x1xf32> -> vector<1x1xf32>
    %515 = vector.broadcast %514 : vector<1x1xf32> to vector<1x8xf32>
    %516 = arith.mulf %511, %515 : vector<1x8xf32>
    %517 = arith.truncf %516 : vector<1x8xf32> to vector<1x8xbf16>
    %518 = vector.extract_strided_slice %451 {offsets = [0, 64], sizes = [8, 32], strides = [1, 1]} : vector<8x128xbf16> to vector<8x32xbf16>
    %cst_218 = arith.constant dense<0.000000e+00> : vector<1x32xf32>
    %519 = tpu.matmul %517, %518, %cst_218 {dimension_numbers = #tpu.dot_dimension_numbers<[1], [0], [0], [1], [0, 0, 1, 1], [], []>} : vector<1x8xbf16>, vector<8x32xbf16>, vector<1x32xf32> -> vector<1x32xf32>
    %520 = arith.truncf %519 : vector<1x32xf32> to vector<1x32xbf16>
    %521 = vector.extract_strided_slice %439 {offsets = [64, 0], sizes = [32, 128], strides = [1, 1]} : vector<128x128xbf16> to vector<32x128xbf16>
    %cst_219 = arith.constant dense<0.000000e+00> : vector<1x128xf32>
    %522 = tpu.matmul %520, %521, %cst_219 {dimension_numbers = #tpu.dot_dimension_numbers<[1], [0], [0], [1], [0, 0, 1, 1], [], []>} : vector<1x32xbf16>, vector<32x128xbf16>, vector<1x128xf32> -> vector<1x128xf32>
    %523 = arith.addf %501, %522 : vector<1x128xf32>
    %524 = vector.extract_strided_slice %456 {offsets = [0, 96], sizes = [1, 32], strides = [1, 1]} : vector<1x128xbf16> to vector<1x32xbf16>
    %525 = vector.extract_strided_slice %449 {offsets = [0, 96], sizes = [8, 32], strides = [1, 1]} : vector<8x128xbf16> to vector<8x32xbf16>
    "tpu.trace_start"() <{level = 10 : i32, message = "qd,kd->qk"}> : () -> ()
    %cst_220 = arith.constant dense<0.000000e+00> : vector<1x8xf32>
    %526 = tpu.matmul %524, %525, %cst_220 {dimension_numbers = #tpu.dot_dimension_numbers<[1], [1], [0], [0], [0, 0, 1, 0], [], []>} : vector<1x32xbf16>, vector<8x32xbf16>, vector<1x8xf32> -> vector<1x8xf32>
    "tpu.trace_stop"() : () -> ()
    %cst_221 = arith.constant 0.176776692 : f32
    %527 = vector.broadcast %cst_221 : f32 to vector<1x8xf32>
    %528 = arith.mulf %526, %527 : vector<1x8xf32>
    %cst_222 = arith.constant dense<0xFF800000> : vector<1xf32>
    %529 = vector.multi_reduction <maximumf>, %528, %cst_222 [1] : vector<1x8xf32> to vector<1xf32>
    %530 = vector.shape_cast %529 : vector<1xf32> to vector<1x1xf32>
    %531 = vector.broadcast %530 : vector<1x1xf32> to vector<1x8xf32>
    %532 = arith.subf %528, %531 : vector<1x8xf32>
    %533 = math.exp %532 : vector<1x8xf32>
    %cst_223 = arith.constant dense<0.000000e+00> : vector<1xf32>
    %534 = vector.multi_reduction <add>, %533, %cst_223 [1] : vector<1x8xf32> to vector<1xf32>
    %535 = vector.shape_cast %534 : vector<1xf32> to vector<1x1xf32>
    %536 = tpu.reciprocal %535 {approx = true} : vector<1x1xf32> -> vector<1x1xf32>
    %537 = vector.broadcast %536 : vector<1x1xf32> to vector<1x8xf32>
    %538 = arith.mulf %533, %537 : vector<1x8xf32>
    %539 = arith.truncf %538 : vector<1x8xf32> to vector<1x8xbf16>
    %540 = vector.extract_strided_slice %451 {offsets = [0, 96], sizes = [8, 32], strides = [1, 1]} : vector<8x128xbf16> to vector<8x32xbf16>
    %cst_224 = arith.constant dense<0.000000e+00> : vector<1x32xf32>
    %541 = tpu.matmul %539, %540, %cst_224 {dimension_numbers = #tpu.dot_dimension_numbers<[1], [0], [0], [1], [0, 0, 1, 1], [], []>} : vector<1x8xbf16>, vector<8x32xbf16>, vector<1x32xf32> -> vector<1x32xf32>
    %542 = arith.truncf %541 : vector<1x32xf32> to vector<1x32xbf16>
    %543 = vector.extract_strided_slice %439 {offsets = [96, 0], sizes = [32, 128], strides = [1, 1]} : vector<128x128xbf16> to vector<32x128xbf16>
    %cst_225 = arith.constant dense<0.000000e+00> : vector<1x128xf32>
    %544 = tpu.matmul %542, %543, %cst_225 {dimension_numbers = #tpu.dot_dimension_numbers<[1], [0], [0], [1], [0, 0, 1, 1], [], []>} : vector<1x32xbf16>, vector<32x128xbf16>, vector<1x128xf32> -> vector<1x128xf32>
    %545 = arith.addf %523, %544 : vector<1x128xf32>
    %546 = vector.broadcast %436 : f32 to vector<1x128xf32>
    %547 = arith.mulf %546, %442 : vector<1x128xf32>
    %cst_226 = arith.constant 1.000000e+00 : f32
    %548 = arith.subf %cst_226, %436 : f32
    %549 = vector.broadcast %548 : f32 to vector<1x128xf32>
    %550 = arith.mulf %549, %545 : vector<1x128xf32>
    %551 = arith.addf %547, %550 : vector<1x128xf32>
    %cst_227 = arith.constant dense<0.000000e+00> : vector<1xf32>
    %552 = vector.multi_reduction <add>, %551, %cst_227 [1] : vector<1x128xf32> to vector<1xf32>
    %553 = vector.shape_cast %552 : vector<1xf32> to vector<1x1xf32>
    %cst_228 = arith.constant 1.280000e+02 : f32
    %554 = vector.broadcast %cst_228 : f32 to vector<1x1xf32>
    %555 = arith.divf %553, %554 : vector<1x1xf32>
    %556 = vector.broadcast %555 : vector<1x1xf32> to vector<1x128xf32>
    %557 = arith.subf %551, %556 : vector<1x128xf32>
    %558 = arith.mulf %557, %557 : vector<1x128xf32>
    %cst_229 = arith.constant dense<0.000000e+00> : vector<1xf32>
    %559 = vector.multi_reduction <add>, %558, %cst_229 [1] : vector<1x128xf32> to vector<1xf32>
    %560 = vector.shape_cast %559 : vector<1xf32> to vector<1x1xf32>
    %cst_230 = arith.constant 1.280000e+02 : f32
    %561 = vector.broadcast %cst_230 : f32 to vector<1x1xf32>
    %562 = arith.divf %560, %561 : vector<1x1xf32>
    %563 = vector.broadcast %555 : vector<1x1xf32> to vector<1x128xf32>
    %564 = arith.subf %551, %563 : vector<1x128xf32>
    %cst_231 = arith.constant 9.99999974E-6 : f32
    %565 = vector.broadcast %cst_231 : f32 to vector<1x1xf32>
    %566 = arith.addf %562, %565 : vector<1x1xf32>
    %567 = math.rsqrt %566 : vector<1x1xf32>
    %568 = vector.broadcast %567 : vector<1x1xf32> to vector<1x128xf32>
    %569 = arith.mulf %564, %568 : vector<1x128xf32>
    %c0_232 = arith.constant 0 : index
    %c0_233 = arith.constant 0 : index
    %570 = vector.load %arg13[%c0_232, %c0_233] : memref<1x128xf32, #tpu.memory_space<vmem>>, vector<1x128xf32>
    %571 = arith.mulf %569, %570 : vector<1x128xf32>
    %c0_234 = arith.constant 0 : index
    %c0_235 = arith.constant 0 : index
    %572 = vector.load %arg14[%c0_234, %c0_235] : memref<1x128xf32, #tpu.memory_space<vmem>>, vector<1x128xf32>
    %573 = arith.addf %571, %572 : vector<1x128xf32>
    %574 = arith.truncf %573 : vector<1x128xf32> to vector<1x128xbf16>
    %c0_236 = arith.constant 0 : index
    %c0_237 = arith.constant 0 : index
    %575 = vector.load %arg15[%c0_236, %c0_237] : memref<128x64xbf16, #tpu.memory_space<vmem>>, vector<128x64xbf16>
    %cst_238 = arith.constant dense<0.000000e+00> : vector<1x64xf32>
    %576 = tpu.matmul %574, %575, %cst_238 {dimension_numbers = #tpu.dot_dimension_numbers<[1], [0], [0], [1], [0, 0, 1, 1], [], []>} : vector<1x128xbf16>, vector<128x64xbf16>, vector<1x64xf32> -> vector<1x64xf32>
    %c0_239 = arith.constant 0 : index
    %c0_240 = arith.constant 0 : index
    %577 = vector.load %arg16[%c0_239, %c0_240] : memref<1x64xf32, #tpu.memory_space<vmem>>, vector<1x64xf32>
    %578 = arith.addf %576, %577 : vector<1x64xf32>
    %cst_241 = arith.constant 0.000000e+00 : f32
    %579 = vector.broadcast %cst_241 : f32 to vector<1x64xf32>
    %580 = arith.maximumf %578, %579 : vector<1x64xf32>
    %c0_242 = arith.constant 0 : index
    %c0_243 = arith.constant 0 : index
    %581 = vector.load %arg17[%c0_242, %c0_243] : memref<64x2xf32, #tpu.memory_space<vmem>>, vector<64x2xf32>
    %cst_244 = arith.constant dense<0.000000e+00> : vector<1x2xf32>
    %582 = tpu.matmul %580, %581, %cst_244 {dimension_numbers = #tpu.dot_dimension_numbers<[1], [0], [0], [1], [0, 0, 1, 1], [], []>} : vector<1x64xf32>, vector<64x2xf32>, vector<1x2xf32> -> vector<1x2xf32>
    %c0_245 = arith.constant 0 : index
    %c0_246 = arith.constant 0 : index
    %583 = vector.load %arg18[%c0_245, %c0_246] : memref<1x2xf32, #tpu.memory_space<vmem>>, vector<1x2xf32>
    %584 = arith.addf %582, %583 : vector<1x2xf32>
    %c0_247 = arith.constant 0 : index
    %c0_248 = arith.constant 0 : index
    %585 = vector.load %arg19[%c0_247, %c0_248] : memref<2x2xf32, #tpu.memory_space<vmem>>, vector<1x2xf32>
    tpu.vector_store %arg19[%c0_247, %c0_248], %584 {strides = array<i32>} : memref<2x2xf32, #tpu.memory_space<vmem>>, vector<1x2xf32>,
    %c1_249 = arith.constant 1 : index
    %c0_250 = arith.constant 0 : index
    %c0_251 = arith.constant 0 : index
    %586 = vector.load %arg21[%c1_249, %c0_250, %c0_251] : memref<2x8x128xf32, #tpu.memory_space<vmem>>, vector<1x8x128xf32>
    %587 = vector.shape_cast %586 : vector<1x8x128xf32> to vector<8x128xf32>
    %588 = vector.extract_strided_slice %587 {offsets = [7, 0], sizes = [1, 128], strides = [1, 1]} : vector<8x128xf32> to vector<1x128xf32>
    %589 = arith.truncf %587 : vector<8x128xf32> to vector<8x128xbf16>
    %cst_252 = arith.constant dense<0.000000e+00> : vector<8x256xf32>
    %590 = tpu.matmul %589, %438, %cst_252 {dimension_numbers = #tpu.dot_dimension_numbers<[1], [0], [0], [1], [0, 0, 1, 1], [], []>} : vector<8x128xbf16>, vector<128x256xbf16>, vector<8x256xf32> -> vector<8x256xf32>
    %c0_253 = arith.constant 0 : index
    %c0_254 = arith.constant 0 : index
    %591 = vector.load %arg9[%c0_253, %c0_254] : memref<1x256xf32, #tpu.memory_space<vmem>>, vector<1x256xf32>
    %592 = vector.broadcast %591 : vector<1x256xf32> to vector<8x256xf32>
    %593 = arith.addf %590, %592 : vector<8x256xf32>
    %594 = vector.extract_strided_slice %593 {offsets = [0, 0], sizes = [8, 128], strides = [1, 1]} : vector<8x256xf32> to vector<8x128xf32>
    %595 = arith.truncf %594 : vector<8x128xf32> to vector<8x128xbf16>
    %596 = vector.extract_strided_slice %593 {offsets = [0, 128], sizes = [8, 128], strides = [1, 1]} : vector<8x256xf32> to vector<8x128xf32>
    %597 = arith.truncf %596 : vector<8x128xf32> to vector<8x128xbf16>
    %598 = arith.truncf %588 : vector<1x128xf32> to vector<1x128xbf16>
    %cst_255 = arith.constant dense<0.000000e+00> : vector<1x128xf32>
    %599 = tpu.matmul %598, %437, %cst_255 {dimension_numbers = #tpu.dot_dimension_numbers<[1], [0], [0], [1], [0, 0, 1, 1], [], []>} : vector<1x128xbf16>, vector<128x128xbf16>, vector<1x128xf32> -> vector<1x128xf32>
    %c0_256 = arith.constant 0 : index
    %c0_257 = arith.constant 0 : index
    %600 = vector.load %arg7[%c0_256, %c0_257] : memref<1x128xf32, #tpu.memory_space<vmem>>, vector<1x128xf32>
    %601 = arith.addf %599, %600 : vector<1x128xf32>
    %602 = arith.truncf %601 : vector<1x128xf32> to vector<1x128xbf16>
    %c0_258 = arith.constant 0 : index
    %c0_259 = arith.constant 0 : index
    %603 = vector.load %arg11[%c0_258, %c0_259] : memref<1x128xf32, #tpu.memory_space<vmem>>, vector<1x128xf32>
    %604 = vector.extract_strided_slice %602 {offsets = [0, 0], sizes = [1, 32], strides = [1, 1]} : vector<1x128xbf16> to vector<1x32xbf16>
    %605 = vector.extract_strided_slice %595 {offsets = [0, 0], sizes = [8, 32], strides = [1, 1]} : vector<8x128xbf16> to vector<8x32xbf16>
    "tpu.trace_start"() <{level = 10 : i32, message = "qd,kd->qk"}> : () -> ()
    %cst_260 = arith.constant dense<0.000000e+00> : vector<1x8xf32>
    %606 = tpu.matmul %604, %605, %cst_260 {dimension_numbers = #tpu.dot_dimension_numbers<[1], [1], [0], [0], [0, 0, 1, 0], [], []>} : vector<1x32xbf16>, vector<8x32xbf16>, vector<1x8xf32> -> vector<1x8xf32>
    "tpu.trace_stop"() : () -> ()
    %cst_261 = arith.constant 0.176776692 : f32
    %607 = vector.broadcast %cst_261 : f32 to vector<1x8xf32>
    %608 = arith.mulf %606, %607 : vector<1x8xf32>
    %cst_262 = arith.constant dense<0xFF800000> : vector<1xf32>
    %609 = vector.multi_reduction <maximumf>, %608, %cst_262 [1] : vector<1x8xf32> to vector<1xf32>
    %610 = vector.shape_cast %609 : vector<1xf32> to vector<1x1xf32>
    %611 = vector.broadcast %610 : vector<1x1xf32> to vector<1x8xf32>
    %612 = arith.subf %608, %611 : vector<1x8xf32>
    %613 = math.exp %612 : vector<1x8xf32>
    %cst_263 = arith.constant dense<0.000000e+00> : vector<1xf32>
    %614 = vector.multi_reduction <add>, %613, %cst_263 [1] : vector<1x8xf32> to vector<1xf32>
    %615 = vector.shape_cast %614 : vector<1xf32> to vector<1x1xf32>
    %616 = tpu.reciprocal %615 {approx = true} : vector<1x1xf32> -> vector<1x1xf32>
    %617 = vector.broadcast %616 : vector<1x1xf32> to vector<1x8xf32>
    %618 = arith.mulf %613, %617 : vector<1x8xf32>
    %619 = arith.truncf %618 : vector<1x8xf32> to vector<1x8xbf16>
    %620 = vector.extract_strided_slice %597 {offsets = [0, 0], sizes = [8, 32], strides = [1, 1]} : vector<8x128xbf16> to vector<8x32xbf16>
    %cst_264 = arith.constant dense<0.000000e+00> : vector<1x32xf32>
    %621 = tpu.matmul %619, %620, %cst_264 {dimension_numbers = #tpu.dot_dimension_numbers<[1], [0], [0], [1], [0, 0, 1, 1], [], []>} : vector<1x8xbf16>, vector<8x32xbf16>, vector<1x32xf32> -> vector<1x32xf32>
    %622 = arith.truncf %621 : vector<1x32xf32> to vector<1x32xbf16>
    %623 = vector.extract_strided_slice %439 {offsets = [0, 0], sizes = [32, 128], strides = [1, 1]} : vector<128x128xbf16> to vector<32x128xbf16>
    %cst_265 = arith.constant dense<0.000000e+00> : vector<1x128xf32>
    %624 = tpu.matmul %622, %623, %cst_265 {dimension_numbers = #tpu.dot_dimension_numbers<[1], [0], [0], [1], [0, 0, 1, 1], [], []>} : vector<1x32xbf16>, vector<32x128xbf16>, vector<1x128xf32> -> vector<1x128xf32>
    %625 = arith.addf %603, %624 : vector<1x128xf32>
    %626 = vector.extract_strided_slice %602 {offsets = [0, 32], sizes = [1, 32], strides = [1, 1]} : vector<1x128xbf16> to vector<1x32xbf16>
    %627 = vector.extract_strided_slice %595 {offsets = [0, 32], sizes = [8, 32], strides = [1, 1]} : vector<8x128xbf16> to vector<8x32xbf16>
    "tpu.trace_start"() <{level = 10 : i32, message = "qd,kd->qk"}> : () -> ()
    %cst_266 = arith.constant dense<0.000000e+00> : vector<1x8xf32>
    %628 = tpu.matmul %626, %627, %cst_266 {dimension_numbers = #tpu.dot_dimension_numbers<[1], [1], [0], [0], [0, 0, 1, 0], [], []>} : vector<1x32xbf16>, vector<8x32xbf16>, vector<1x8xf32> -> vector<1x8xf32>
    "tpu.trace_stop"() : () -> ()
    %cst_267 = arith.constant 0.176776692 : f32
    %629 = vector.broadcast %cst_267 : f32 to vector<1x8xf32>
    %630 = arith.mulf %628, %629 : vector<1x8xf32>
    %cst_268 = arith.constant dense<0xFF800000> : vector<1xf32>
    %631 = vector.multi_reduction <maximumf>, %630, %cst_268 [1] : vector<1x8xf32> to vector<1xf32>
    %632 = vector.shape_cast %631 : vector<1xf32> to vector<1x1xf32>
    %633 = vector.broadcast %632 : vector<1x1xf32> to vector<1x8xf32>
    %634 = arith.subf %630, %633 : vector<1x8xf32>
    %635 = math.exp %634 : vector<1x8xf32>
    %cst_269 = arith.constant dense<0.000000e+00> : vector<1xf32>
    %636 = vector.multi_reduction <add>, %635, %cst_269 [1] : vector<1x8xf32> to vector<1xf32>
    %637 = vector.shape_cast %636 : vector<1xf32> to vector<1x1xf32>
    %638 = tpu.reciprocal %637 {approx = true} : vector<1x1xf32> -> vector<1x1xf32>
    %639 = vector.broadcast %638 : vector<1x1xf32> to vector<1x8xf32>
    %640 = arith.mulf %635, %639 : vector<1x8xf32>
    %641 = arith.truncf %640 : vector<1x8xf32> to vector<1x8xbf16>
    %642 = vector.extract_strided_slice %597 {offsets = [0, 32], sizes = [8, 32], strides = [1, 1]} : vector<8x128xbf16> to vector<8x32xbf16>
    %cst_270 = arith.constant dense<0.000000e+00> : vector<1x32xf32>
    %643 = tpu.matmul %641, %642, %cst_270 {dimension_numbers = #tpu.dot_dimension_numbers<[1], [0], [0], [1], [0, 0, 1, 1], [], []>} : vector<1x8xbf16>, vector<8x32xbf16>, vector<1x32xf32> -> vector<1x32xf32>
    %644 = arith.truncf %643 : vector<1x32xf32> to vector<1x32xbf16>
    %645 = vector.extract_strided_slice %439 {offsets = [32, 0], sizes = [32, 128], strides = [1, 1]} : vector<128x128xbf16> to vector<32x128xbf16>
    %cst_271 = arith.constant dense<0.000000e+00> : vector<1x128xf32>
    %646 = tpu.matmul %644, %645, %cst_271 {dimension_numbers = #tpu.dot_dimension_numbers<[1], [0], [0], [1], [0, 0, 1, 1], [], []>} : vector<1x32xbf16>, vector<32x128xbf16>, vector<1x128xf32> -> vector<1x128xf32>
    %647 = arith.addf %625, %646 : vector<1x128xf32>
    %648 = vector.extract_strided_slice %602 {offsets = [0, 64], sizes = [1, 32], strides = [1, 1]} : vector<1x128xbf16> to vector<1x32xbf16>
    %649 = vector.extract_strided_slice %595 {offsets = [0, 64], sizes = [8, 32], strides = [1, 1]} : vector<8x128xbf16> to vector<8x32xbf16>
    "tpu.trace_start"() <{level = 10 : i32, message = "qd,kd->qk"}> : () -> ()
    %cst_272 = arith.constant dense<0.000000e+00> : vector<1x8xf32>
    %650 = tpu.matmul %648, %649, %cst_272 {dimension_numbers = #tpu.dot_dimension_numbers<[1], [1], [0], [0], [0, 0, 1, 0], [], []>} : vector<1x32xbf16>, vector<8x32xbf16>, vector<1x8xf32> -> vector<1x8xf32>
    "tpu.trace_stop"() : () -> ()
    %cst_273 = arith.constant 0.176776692 : f32
    %651 = vector.broadcast %cst_273 : f32 to vector<1x8xf32>
    %652 = arith.mulf %650, %651 : vector<1x8xf32>
    %cst_274 = arith.constant dense<0xFF800000> : vector<1xf32>
    %653 = vector.multi_reduction <maximumf>, %652, %cst_274 [1] : vector<1x8xf32> to vector<1xf32>
    %654 = vector.shape_cast %653 : vector<1xf32> to vector<1x1xf32>
    %655 = vector.broadcast %654 : vector<1x1xf32> to vector<1x8xf32>
    %656 = arith.subf %652, %655 : vector<1x8xf32>
    %657 = math.exp %656 : vector<1x8xf32>
    %cst_275 = arith.constant dense<0.000000e+00> : vector<1xf32>
    %658 = vector.multi_reduction <add>, %657, %cst_275 [1] : vector<1x8xf32> to vector<1xf32>
    %659 = vector.shape_cast %658 : vector<1xf32> to vector<1x1xf32>
    %660 = tpu.reciprocal %659 {approx = true} : vector<1x1xf32> -> vector<1x1xf32>
    %661 = vector.broadcast %660 : vector<1x1xf32> to vector<1x8xf32>
    %662 = arith.mulf %657, %661 : vector<1x8xf32>
    %663 = arith.truncf %662 : vector<1x8xf32> to vector<1x8xbf16>
    %664 = vector.extract_strided_slice %597 {offsets = [0, 64], sizes = [8, 32], strides = [1, 1]} : vector<8x128xbf16> to vector<8x32xbf16>
    %cst_276 = arith.constant dense<0.000000e+00> : vector<1x32xf32>
    %665 = tpu.matmul %663, %664, %cst_276 {dimension_numbers = #tpu.dot_dimension_numbers<[1], [0], [0], [1], [0, 0, 1, 1], [], []>} : vector<1x8xbf16>, vector<8x32xbf16>, vector<1x32xf32> -> vector<1x32xf32>
    %666 = arith.truncf %665 : vector<1x32xf32> to vector<1x32xbf16>
    %667 = vector.extract_strided_slice %439 {offsets = [64, 0], sizes = [32, 128], strides = [1, 1]} : vector<128x128xbf16> to vector<32x128xbf16>
    %cst_277 = arith.constant dense<0.000000e+00> : vector<1x128xf32>
    %668 = tpu.matmul %666, %667, %cst_277 {dimension_numbers = #tpu.dot_dimension_numbers<[1], [0], [0], [1], [0, 0, 1, 1], [], []>} : vector<1x32xbf16>, vector<32x128xbf16>, vector<1x128xf32> -> vector<1x128xf32>
    %669 = arith.addf %647, %668 : vector<1x128xf32>
    %670 = vector.extract_strided_slice %602 {offsets = [0, 96], sizes = [1, 32], strides = [1, 1]} : vector<1x128xbf16> to vector<1x32xbf16>
    %671 = vector.extract_strided_slice %595 {offsets = [0, 96], sizes = [8, 32], strides = [1, 1]} : vector<8x128xbf16> to vector<8x32xbf16>
    "tpu.trace_start"() <{level = 10 : i32, message = "qd,kd->qk"}> : () -> ()
    %cst_278 = arith.constant dense<0.000000e+00> : vector<1x8xf32>
    %672 = tpu.matmul %670, %671, %cst_278 {dimension_numbers = #tpu.dot_dimension_numbers<[1], [1], [0], [0], [0, 0, 1, 0], [], []>} : vector<1x32xbf16>, vector<8x32xbf16>, vector<1x8xf32> -> vector<1x8xf32>
    "tpu.trace_stop"() : () -> ()
    %cst_279 = arith.constant 0.176776692 : f32
    %673 = vector.broadcast %cst_279 : f32 to vector<1x8xf32>
    %674 = arith.mulf %672, %673 : vector<1x8xf32>
    %cst_280 = arith.constant dense<0xFF800000> : vector<1xf32>
    %675 = vector.multi_reduction <maximumf>, %674, %cst_280 [1] : vector<1x8xf32> to vector<1xf32>
    %676 = vector.shape_cast %675 : vector<1xf32> to vector<1x1xf32>
    %677 = vector.broadcast %676 : vector<1x1xf32> to vector<1x8xf32>
    %678 = arith.subf %674, %677 : vector<1x8xf32>
    %679 = math.exp %678 : vector<1x8xf32>
    %cst_281 = arith.constant dense<0.000000e+00> : vector<1xf32>
    %680 = vector.multi_reduction <add>, %679, %cst_281 [1] : vector<1x8xf32> to vector<1xf32>
    %681 = vector.shape_cast %680 : vector<1xf32> to vector<1x1xf32>
    %682 = tpu.reciprocal %681 {approx = true} : vector<1x1xf32> -> vector<1x1xf32>
    %683 = vector.broadcast %682 : vector<1x1xf32> to vector<1x8xf32>
    %684 = arith.mulf %679, %683 : vector<1x8xf32>
    %685 = arith.truncf %684 : vector<1x8xf32> to vector<1x8xbf16>
    %686 = vector.extract_strided_slice %597 {offsets = [0, 96], sizes = [8, 32], strides = [1, 1]} : vector<8x128xbf16> to vector<8x32xbf16>
    %cst_282 = arith.constant dense<0.000000e+00> : vector<1x32xf32>
    %687 = tpu.matmul %685, %686, %cst_282 {dimension_numbers = #tpu.dot_dimension_numbers<[1], [0], [0], [1], [0, 0, 1, 1], [], []>} : vector<1x8xbf16>, vector<8x32xbf16>, vector<1x32xf32> -> vector<1x32xf32>
    %688 = arith.truncf %687 : vector<1x32xf32> to vector<1x32xbf16>
    %689 = vector.extract_strided_slice %439 {offsets = [96, 0], sizes = [32, 128], strides = [1, 1]} : vector<128x128xbf16> to vector<32x128xbf16>
    %cst_283 = arith.constant dense<0.000000e+00> : vector<1x128xf32>
    %690 = tpu.matmul %688, %689, %cst_283 {dimension_numbers = #tpu.dot_dimension_numbers<[1], [0], [0], [1], [0, 0, 1, 1], [], []>} : vector<1x32xbf16>, vector<32x128xbf16>, vector<1x128xf32> -> vector<1x128xf32>
    %691 = arith.addf %669, %690 : vector<1x128xf32>
    %692 = vector.broadcast %436 : f32 to vector<1x128xf32>
    %693 = arith.mulf %692, %588 : vector<1x128xf32>
    %cst_284 = arith.constant 1.000000e+00 : f32
    %694 = arith.subf %cst_284, %436 : f32
    %695 = vector.broadcast %694 : f32 to vector<1x128xf32>
    %696 = arith.mulf %695, %691 : vector<1x128xf32>
    %697 = arith.addf %693, %696 : vector<1x128xf32>
    %cst_285 = arith.constant dense<0.000000e+00> : vector<1xf32>
    %698 = vector.multi_reduction <add>, %697, %cst_285 [1] : vector<1x128xf32> to vector<1xf32>
    %699 = vector.shape_cast %698 : vector<1xf32> to vector<1x1xf32>
    %cst_286 = arith.constant 1.280000e+02 : f32
    %700 = vector.broadcast %cst_286 : f32 to vector<1x1xf32>
    %701 = arith.divf %699, %700 : vector<1x1xf32>
    %702 = vector.broadcast %701 : vector<1x1xf32> to vector<1x128xf32>
    %703 = arith.subf %697, %702 : vector<1x128xf32>
    %704 = arith.mulf %703, %703 : vector<1x128xf32>
    %cst_287 = arith.constant dense<0.000000e+00> : vector<1xf32>
    %705 = vector.multi_reduction <add>, %704, %cst_287 [1] : vector<1x128xf32> to vector<1xf32>
    %706 = vector.shape_cast %705 : vector<1xf32> to vector<1x1xf32>
    %cst_288 = arith.constant 1.280000e+02 : f32
    %707 = vector.broadcast %cst_288 : f32 to vector<1x1xf32>
    %708 = arith.divf %706, %707 : vector<1x1xf32>
    %709 = vector.broadcast %701 : vector<1x1xf32> to vector<1x128xf32>
    %710 = arith.subf %697, %709 : vector<1x128xf32>
    %cst_289 = arith.constant 9.99999974E-6 : f32
    %711 = vector.broadcast %cst_289 : f32 to vector<1x1xf32>
    %712 = arith.addf %708, %711 : vector<1x1xf32>
    %713 = math.rsqrt %712 : vector<1x1xf32>
    %714 = vector.broadcast %713 : vector<1x1xf32> to vector<1x128xf32>
    %715 = arith.mulf %710, %714 : vector<1x128xf32>
    %c0_290 = arith.constant 0 : index
    %c0_291 = arith.constant 0 : index
    %716 = vector.load %arg13[%c0_290, %c0_291] : memref<1x128xf32, #tpu.memory_space<vmem>>, vector<1x128xf32>
    %717 = arith.mulf %715, %716 : vector<1x128xf32>
    %c0_292 = arith.constant 0 : index
    %c0_293 = arith.constant 0 : index
    %718 = vector.load %arg14[%c0_292, %c0_293] : memref<1x128xf32, #tpu.memory_space<vmem>>, vector<1x128xf32>
    %719 = arith.addf %717, %718 : vector<1x128xf32>
    %720 = arith.truncf %719 : vector<1x128xf32> to vector<1x128xbf16>
    %c0_294 = arith.constant 0 : index
    %c0_295 = arith.constant 0 : index
    %721 = vector.load %arg15[%c0_294, %c0_295] : memref<128x64xbf16, #tpu.memory_space<vmem>>, vector<128x64xbf16>
    %cst_296 = arith.constant dense<0.000000e+00> : vector<1x64xf32>
    %722 = tpu.matmul %720, %721, %cst_296 {dimension_numbers = #tpu.dot_dimension_numbers<[1], [0], [0], [1], [0, 0, 1, 1], [], []>} : vector<1x128xbf16>, vector<128x64xbf16>, vector<1x64xf32> -> vector<1x64xf32>
    %c0_297 = arith.constant 0 : index
    %c0_298 = arith.constant 0 : index
    %723 = vector.load %arg16[%c0_297, %c0_298] : memref<1x64xf32, #tpu.memory_space<vmem>>, vector<1x64xf32>
    %724 = arith.addf %722, %723 : vector<1x64xf32>
    %cst_299 = arith.constant 0.000000e+00 : f32
    %725 = vector.broadcast %cst_299 : f32 to vector<1x64xf32>
    %726 = arith.maximumf %724, %725 : vector<1x64xf32>
    %c0_300 = arith.constant 0 : index
    %c0_301 = arith.constant 0 : index
    %727 = vector.load %arg17[%c0_300, %c0_301] : memref<64x2xf32, #tpu.memory_space<vmem>>, vector<64x2xf32>
    %cst_302 = arith.constant dense<0.000000e+00> : vector<1x2xf32>
    %728 = tpu.matmul %726, %727, %cst_302 {dimension_numbers = #tpu.dot_dimension_numbers<[1], [0], [0], [1], [0, 0, 1, 1], [], []>} : vector<1x64xf32>, vector<64x2xf32>, vector<1x2xf32> -> vector<1x2xf32>
    %c0_303 = arith.constant 0 : index
    %c0_304 = arith.constant 0 : index
    %729 = vector.load %arg18[%c0_303, %c0_304] : memref<1x2xf32, #tpu.memory_space<vmem>>, vector<1x2xf32>
    %730 = arith.addf %728, %729 : vector<1x2xf32>
    %c1_305 = arith.constant 1 : index
    %c0_306 = arith.constant 0 : index
    %731 = vector.load %arg19[%c1_305, %c0_306] : memref<2x2xf32, #tpu.memory_space<vmem>>, vector<1x2xf32>
    tpu.vector_store %arg19[%c1_305, %c0_306], %730 {strides = array<i32>} : memref<2x2xf32, #tpu.memory_space<vmem>>, vector<1x2xf32>,
    return
  }
}

</mosaic_0001>

<bundles_post_ra>
// kernel: model_forward.1
= control target key start
LH: loop header
LB: loop body
LE: loop exit
PB: predicated region body
PF: predicated region fallthrough
CT: control target
= control target key end

     0   :  { %s7171_s0 = inlined_call_operand.vmem [shape: f32[16,35], index: 0, kind: input, shape index: {}]   ;;  %s7172_s1 = inlined_call_operand.vmem [shape: bf16[35,32], index: 1, kind: input, shape index: {}]   ;;  %s7173_s2 = inlined_call_operand.vmem [shape: f32[1,32], index: 2, kind: input, shape index: {}]   ;;  %s7174_s3 = inlined_call_operand.vmem [shape: bf16[32,1024], index: 3, kind: input, shape index: {}]   ;;  %s7175_s4 = inlined_call_operand.hbm [shape: f32[1,1024], index: 4, kind: input, shape index: {}]   ;;  %s7176_s5 = inlined_call_operand.vmem [shape: bf16[128,512], index: 5, kind: input, shape index: {}]   ;;  %s7177_s6 = inlined_call_operand.vmem [shape: bf16[128,128], index: 6, kind: input, shape index: {}]   ;;  %s7178_s7 = inlined_call_operand.hbm [shape: f32[1,128], index: 7, kind: input, shape index: {}]   ;;  %s7179_s8 = inlined_call_operand.hbm [shape: bf16[128,256], index: 8, kind: input, shape index: {}]   ;;  %s7180_s9 = inlined_call_operand.hbm [shape: f32[1,256], index: 9, kind: input, shape index: {}]   ;;  %s7181_s10 = inlined_call_operand.hbm [shape: bf16[128,128], index: 10, kind: input, shape index: {}]   ;;  %s7182_s11 = inlined_call_operand.hbm [shape: f32[1,128], index: 11, kind: input, shape index: {}]   ;;  %s7183_s12 = inlined_call_operand.<no memory space> [shape: f32[1,1], index: 12, kind: input, shape index: {}]   ;;  %s7184_s13 = inlined_call_operand.hbm [shape: f32[1,128], index: 13, kind: input, shape index: {}]   ;;  %s7185_s14 = inlined_call_operand.hbm [shape: f32[1,128], index: 14, kind: input, shape index: {}]   ;;  %s7186_s15 = inlined_call_operand.vmem [shape: bf16[128,64], index: 15, kind: input, shape index: {}]   ;;  %s7187_s16 = inlined_call_operand.hbm [shape: f32[1,64], index: 16, kind: input, shape index: {}]   ;;  %s7188_s17 = inlined_call_operand.vmem [shape: f32[64,2], index: 17, kind: input, shape index: {}]   ;;  %s7189_s18 = inlined_call_operand.hbm [shape: f32[1,2], index: 18, kind: input, shape index: {}]   ;;  %s7190_s19 = inlined_call_operand.hbm [shape: f32[2,2], index: 19, kind: output, shape index: {}]  }
   0x1   :  { %7215 = sst [smem:[#allocation40_spill]] %s7171_s0 }
   0x2   :  { %7216 = sst [smem:[#allocation41_spill]] %s7172_s1 }
   0x3   :  { %7217 = sst [smem:[#allocation42_spill]] %s7173_s2 }
   0x4   :  { %7218 = sst [smem:[#allocation43_spill]] %s7174_s3 }
   0x5   :  { %25 = vsyncpa [#allocation6], 0 }
   0x6   :  { %26 = vsyncpa [#allocation9], 0 }
   0x7   :  { %27 = vsyncpa [#allocation12], 0 }
   0x8   :  { %28 = vsyncpa [#allocation15], 0 }
   0x9   :  { %29 = vsyncpa [#allocation18], 0 }
   0xa   :  { %30 = vsyncpa [#allocation21], 0 }
   0xb   :  { %31 = vsyncpa [#allocation7], 0  ;;  %s5513_s0 = smov [#allocation8]   ;;  %s5514_s20 = smov [#allocation11]  }
   0xc   :  { %s60_s30 = sshll.u32 %s5513_s0, 4  ;;  %s82_s21 = sshll.u32 %s5514_s20, 4  ;;  %s61_s30 = int_to_ptr.vmem [resolvable:$true] %s60_s30  ;;  %s83_s21 = int_to_ptr.vmem [resolvable:$true] %s82_s21 }
   0xd   :  { %s5257_s2 = scalar_lea.hbm %s7178_s7, 16 }
   0xe   :  { %p5258_p0 = scmp.ne.s32.totalorder %s7178_s7, %s5257_s2  ;;  %p5261_p1 = scmp.lt.u32.totalorder %s5257_s2, %s7178_s7 }
  0x10   :  { %p5263_p2 = pnand %p5261_p1, %p5258_p0 }
  0x12   :  { %5266 = shalt.err (!%p5263_p2)
}
  0x13   :  { %s5267_s26 = scalar_lea.vmem %s61_s30, 16  ;;  %s5271_s27 = scalar_lea.vmem %s61_s30, 32 }
  0x14   :  { %p5268_p3 = scmp.ne.s32.totalorder %s61_s30, %s5267_s26  ;;  %p5272_p4 = scmp.lt.s32.totalorder %s61_s30, %s61_s30 }
  0x15   :  { %p5273_p5 = scmp.lt.s32.totalorder %s5271_s27, %s5267_s26 }
  0x17   :  { %p5274_p6 = por %p5273_p5, %p5272_p4 }
  0x19   :  { %p5275_p7 = pnand %p5274_p6, %p5268_p3 }
  0x1b   :  { %5278 = shalt.err (!%p5275_p7)
}
  0x1c   :  { %63 = dma.hbm_to_vmem [thread:$0]  %s7178_s7, 16, %s61_s30, [#allocation9]  }
  0x1d   :  { %s5279_s1 = scalar_lea.hbm %s7180_s9, 32 }
  0x1e   :  { %p5280_p8 = scmp.ne.s32.totalorder %s7180_s9, %s5279_s1  ;;  %p5283_p9 = scmp.lt.u32.totalorder %s5279_s1, %s7180_s9 }
  0x20   :  { %p5285_p10 = pnand %p5283_p9, %p5280_p8 }
  0x22   :  { %5288 = shalt.err (!%p5285_p10)
}
  0x23   :  { %s5289_s25 = scalar_lea.vmem %s83_s21, 32  ;;  %p5294_p12 = scmp.lt.s32.totalorder %s83_s21, %s83_s21 }
  0x24   :  { %p5290_p11 = scmp.ne.s32.totalorder %s83_s21, %s5289_s25  ;;  %p5295_p13 = scmp.lt.s32.totalorder %s5289_s25, %s5289_s25 }
  0x26   :  { %p5296_p0 = por %p5295_p13, %p5294_p12 }
  0x28   :  { %p5297_p1 = pnand %p5296_p0, %p5290_p11 }
  0x2a   :  { %5300 = shalt.err (!%p5297_p1)
}
  0x2b   :  { %85 = dma.hbm_to_vmem [thread:$0]  %s7180_s9, 32, %s83_s21, [#allocation12]  }
  0x2c   :  { %s5515_s3 = smov [#allocation14]   ;;  %s5516_s27 = smov [#allocation17]  }
  0x2d   :  { %s104_s26 = sshll.u32 %s5515_s3, 4  ;;  %s126_s28 = sshll.u32 %s5516_s27, 4  ;;  %s105_s26 = int_to_ptr.vmem [resolvable:$true] %s104_s26  ;;  %s127_s28 = int_to_ptr.vmem [resolvable:$true] %s126_s28 }
  0x2e   :  { %s5301_s20 = scalar_lea.hbm %s7182_s11, 16 }
  0x2f   :  { %p5302_p2 = scmp.ne.s32.totalorder %s7182_s11, %s5301_s20  ;;  %p5305_p3 = scmp.lt.u32.totalorder %s5301_s20, %s7182_s11 }
  0x31   :  { %p5307_p4 = pnand %p5305_p3, %p5302_p2 }
  0x33   :  { %5310 = shalt.err (!%p5307_p4)
}
  0x34   :  { %s5311_s9 = scalar_lea.vmem %s105_s26, 16  ;;  %s5315_s21 = scalar_lea.vmem %s105_s26, 32 }
  0x35   :  { %p5312_p5 = scmp.ne.s32.totalorder %s105_s26, %s5311_s9  ;;  %p5316_p6 = scmp.lt.s32.totalorder %s105_s26, %s105_s26 }
  0x36   :  { %p5317_p7 = scmp.lt.s32.totalorder %s5315_s21, %s5311_s9 }
  0x38   :  { %p5318_p8 = por %p5317_p7, %p5316_p6 }
  0x3a   :  { %p5319_p9 = pnand %p5318_p8, %p5312_p5 }
  0x3c   :  { %5322 = shalt.err (!%p5319_p9)
}
  0x3d   :  { %107 = dma.hbm_to_vmem [thread:$0]  %s7182_s11, 16, %s105_s26, [#allocation15]  }
  0x3e   :  { %s5323_s3 = scalar_lea.hbm %s7185_s14, 16 }
  0x3f   :  { %p5324_p10 = scmp.ne.s32.totalorder %s7185_s14, %s5323_s3  ;;  %p5327_p11 = scmp.lt.u32.totalorder %s5323_s3, %s7185_s14 }
  0x41   :  { %p5329_p12 = pnand %p5327_p11, %p5324_p10 }
  0x43   :  { %5332 = shalt.err (!%p5329_p12)
}
  0x44   :  { %s5333_s1 = scalar_lea.vmem %s127_s28, 16  ;;  %s5337_s22 = scalar_lea.vmem %s127_s28, 32 }
  0x45   :  { %p5334_p13 = scmp.ne.s32.totalorder %s127_s28, %s5333_s1  ;;  %p5338_p0 = scmp.lt.s32.totalorder %s127_s28, %s127_s28 }
  0x46   :  { %p5339_p1 = scmp.lt.s32.totalorder %s5337_s22, %s5333_s1 }
  0x48   :  { %p5340_p2 = por %p5339_p1, %p5338_p0 }
  0x4a   :  { %p5341_p3 = pnand %p5340_p2, %p5334_p13 }
  0x4c   :  { %5344 = shalt.err (!%p5341_p3)
}
  0x4d   :  { %129 = dma.hbm_to_vmem [thread:$0]  %s7185_s14, 16, %s127_s28, [#allocation18]  }
  0x4e   :  { %s5517_s2 = smov [#allocation5]   ;;  %s5518_s9 = smov [#allocation10]  }
  0x4f   :  { %s46_s23 = sshll.u32 %s5517_s2, 4  ;;  %s69_s21 = sshll.u32 %s5518_s9, 4  ;;  %s47_s23 = int_to_ptr.vmem [resolvable:$true] %s46_s23  ;;  %s5684_s21 = int_to_ptr.vmem [resolvable:$true] %s69_s21 }
  0x50   :  { %s5345_s7 = scalar_lea.hbm %s7175_s4, 128 }
  0x51   :  { %p5346_p4 = scmp.ne.s32.totalorder %s7175_s4, %s5345_s7  ;;  %p5349_p5 = scmp.lt.u32.totalorder %s5345_s7, %s7175_s4 }
  0x53   :  { %p5351_p6 = pnand %p5349_p5, %p5346_p4 }
  0x55   :  { %5354 = shalt.err (!%p5351_p6)
}
  0x56   :  { %s5355_s14 = scalar_lea.vmem %s47_s23, 128  ;;  %p5360_p8 = scmp.lt.s32.totalorder %s47_s23, %s47_s23 }
  0x57   :  { %p5356_p7 = scmp.ne.s32.totalorder %s47_s23, %s5355_s14  ;;  %p5361_p9 = scmp.lt.s32.totalorder %s5355_s14, %s5355_s14 }
  0x59   :  { %p5362_p10 = por %p5361_p9, %p5360_p8 }
  0x5b   :  { %p5363_p11 = pnand %p5362_p10, %p5356_p7 }
  0x5d   :  { %5366 = shalt.err (!%p5363_p11)
}
  0x5e   :  { %49 = dma.hbm_to_vmem [thread:$0]  %s7175_s4, 128, %s47_s23, [#allocation6]  }
  0x5f   :  { %s5367_s22 = scalar_lea.hbm %s7179_s8, 2048 }
  0x60   :  { %p5368_p12 = scmp.ne.s32.totalorder %s7179_s8, %s5367_s22  ;;  %p5371_p13 = scmp.lt.u32.totalorder %s5367_s22, %s7179_s8 }
  0x62   :  { %p5373_p0 = pnand %p5371_p13, %p5368_p12 }
  0x64   :  { %5376 = shalt.err (!%p5373_p0)
}
  0x65   :  { %s5377_s24 = scalar_lea.vmem %s5684_s21, 2048  ;;  %p5382_p2 = scmp.lt.s32.totalorder %s5684_s21, %s5684_s21 }
  0x66   :  { %p5378_p1 = scmp.ne.s32.totalorder %s5684_s21, %s5377_s24  ;;  %p5383_p3 = scmp.lt.s32.totalorder %s5377_s24, %s5377_s24 }
  0x68   :  { %p5384_p4 = por %p5383_p3, %p5382_p2 }
  0x6a   :  { %p5385_p5 = pnand %p5384_p4, %p5378_p1 }
  0x6c   :  { %5388 = shalt.err (!%p5385_p5)
}
  0x6d   :  { %s5519_s4 = smov 128   ;;  %s5520_s23 = smov 8  }
  0x6e   :  { %75 = dma.hbm_to_vmem [thread:$0]  %s7179_s8, 2048, %s5684_s21, [#allocation9], %s5519_s4, %s5519_s4, %s5520_s23  }
  0x6f   :  { %s5521_s30 = smov [#allocation13]   ;;  %s5389_s14 = scalar_lea.hbm %s7181_s10, 1024 }
  0x70   :  { %s91_s3 = sshll.u32 %s5521_s30, 4  ;;  %p5390_p6 = scmp.ne.s32.totalorder %s7181_s10, %s5389_s14  ;;  %s92_s3 = int_to_ptr.vmem [resolvable:$true] %s91_s3 }
  0x71   :  { %p5393_p7 = scmp.lt.u32.totalorder %s5389_s14, %s7181_s10 }
  0x73   :  { %p5395_p8 = pnand %p5393_p7, %p5390_p6 }
  0x75   :  { %5398 = shalt.err (!%p5395_p8)
}
  0x76   :  { %s5399_s22 = scalar_lea.vmem %s92_s3, 1024  ;;  %p5404_p10 = scmp.lt.s32.totalorder %s92_s3, %s92_s3 }
  0x77   :  { %p5400_p9 = scmp.ne.s32.totalorder %s92_s3, %s5399_s22  ;;  %p5405_p11 = scmp.lt.s32.totalorder %s5399_s22, %s5399_s22 }
  0x79   :  { %p5406_p12 = por %p5405_p11, %p5404_p10 }
  0x7b   :  { %p5407_p13 = pnand %p5406_p12, %p5400_p9 }
  0x7d   :  { %5410 = shalt.err (!%p5407_p13)
}
  0x7e   :  { %s5522_s8 = smov 64   ;;  %s5523_s21 = smov 4  }
  0x7f   :  { %97 = dma.hbm_to_vmem [thread:$0]  %s7181_s10, 1024, %s92_s3, [#allocation12], %s5522_s8, %s5522_s8, %s5523_s21  }
  0x80   :  { %s5524_s2 = smov [#allocation16]   ;;  %s5525_s24 = smov [#allocation19]  }
  0x81   :  { %s116_s9 = sshll.u32 %s5524_s2, 4  ;;  %s138_s4 = sshll.u32 %s5525_s24, 4  ;;  %s117_s9 = int_to_ptr.vmem [resolvable:$true] %s116_s9  ;;  %s139_s4 = int_to_ptr.vmem [resolvable:$true] %s138_s4 }
  0x82   :  { %s5411_s7 = scalar_lea.hbm %s7184_s13, 16 }
  0x83   :  { %p5412_p0 = scmp.ne.s32.totalorder %s7184_s13, %s5411_s7  ;;  %p5415_p1 = scmp.lt.u32.totalorder %s5411_s7, %s7184_s13 }
  0x85   :  { %p5417_p2 = pnand %p5415_p1, %p5412_p0 }
  0x87   :  { %5420 = shalt.err (!%p5417_p2)
}
  0x88   :  { %s5421_s10 = scalar_lea.vmem %s117_s9, 16  ;;  %s5425_s3 = scalar_lea.vmem %s117_s9, 32 }
  0x89   :  { %p5422_p3 = scmp.ne.s32.totalorder %s117_s9, %s5421_s10  ;;  %p5426_p4 = scmp.lt.s32.totalorder %s117_s9, %s117_s9 }
  0x8a   :  { %p5427_p5 = scmp.lt.s32.totalorder %s5425_s3, %s5421_s10 }
  0x8c   :  { %p5428_p6 = por %p5427_p5, %p5426_p4 }
  0x8e   :  { %p5429_p7 = pnand %p5428_p6, %p5422_p3 }
  0x90   :  { %5432 = shalt.err (!%p5429_p7)
}
  0x91   :  { %119 = dma.hbm_to_vmem [thread:$0]  %s7184_s13, 16, %s117_s9, [#allocation15]  }
  0x92   :  { %s5433_s22 = scalar_lea.hbm %s7187_s16, 16 }
  0x93   :  { %p5434_p8 = scmp.ne.s32.totalorder %s7187_s16, %s5433_s22  ;;  %p5437_p9 = scmp.lt.u32.totalorder %s5433_s22, %s7187_s16 }
  0x95   :  { %p5439_p10 = pnand %p5437_p9, %p5434_p8 }
  0x97   :  { %5442 = shalt.err (!%p5439_p10)
}
  0x98   :  { %s5443_s24 = scalar_lea.vmem %s139_s4, 16  ;;  %s5447_s23 = scalar_lea.vmem %s139_s4, 32 }
  0x99   :  { %p5444_p11 = scmp.ne.s32.totalorder %s139_s4, %s5443_s24  ;;  %p5448_p12 = scmp.lt.s32.totalorder %s139_s4, %s139_s4 }
  0x9a   :  { %p5449_p13 = scmp.lt.s32.totalorder %s5447_s23, %s5443_s24 }
  0x9c   :  { %p5450_p0 = por %p5449_p13, %p5448_p12 }
  0x9e   :  { %p5451_p1 = pnand %p5450_p0, %p5444_p11 }
  0xa0   :  { %5454 = shalt.err (!%p5451_p1)
}
  0xa1   :  { %141 = dma.hbm_to_vmem [thread:$0]  %s7187_s16, 16, %s139_s4, [#allocation18]  }
  0xa2   :  { %s5526_s25 = smov [#allocation20]   ;;  %s5455_s29 = scalar_lea.hbm %s7189_s18, 16 }
  0xa3   :  { %s150_s7 = sshll.u32 %s5526_s25, 4  ;;  %p5456_p2 = scmp.ne.s32.totalorder %s7189_s18, %s5455_s29  ;;  %s151_s7 = int_to_ptr.vmem [resolvable:$true] %s150_s7 }
  0xa4   :  { %p5459_p3 = scmp.lt.u32.totalorder %s5455_s29, %s7189_s18 }
  0xa6   :  { %p5461_p4 = pnand %p5459_p3, %p5456_p2 }
  0xa8   :  { %5464 = shalt.err (!%p5461_p4)
}
  0xa9   :  { %s5465_s0 = scalar_lea.vmem %s151_s7, 16  ;;  %s5469_s16 = scalar_lea.vmem %s151_s7, 32 }
  0xaa   :  { %p5466_p5 = scmp.ne.s32.totalorder %s151_s7, %s5465_s0  ;;  %p5470_p6 = scmp.lt.s32.totalorder %s151_s7, %s151_s7 }
  0xab   :  { %p5471_p7 = scmp.lt.s32.totalorder %s5469_s16, %s5465_s0 }
  0xad   :  { %p5472_p8 = por %p5471_p7, %p5470_p6 }
  0xaf   :  { %p5473_p9 = pnand %p5472_p8, %p5466_p5 }
  0xb1   :  { %5476 = shalt.err (!%p5473_p9)
}
  0xb2   :  { %153 = dma.hbm_to_vmem [thread:$0]  %s7189_s18, 16, %s151_s7, [#allocation21]  }
  0xb3   :  { %5499 = dma.done.wait [#allocation6], 128  }
  0xb4   :  { %5500 = vsyncadd [#allocation6], 4294967168 }
  0xb5   :  { %5501 = dma.done.wait [#allocation9], 2064  }
  0xb6   :  { %5502 = vsyncadd [#allocation9], 4294965232 }
  0xb7   :  { %5503 = dma.done.wait [#allocation12], 1056  }
  0xb8   :  { %5504 = vsyncadd [#allocation12], 4294966240 }
  0xb9   :  { %5505 = dma.done.wait [#allocation15], 32  }
  0xba   :  { %5506 = vsyncadd [#allocation15], 4294967264 }
  0xbb   :  { %5507 = dma.done.wait [#allocation18], 32  }
  0xbc   :  { %5508 = vsyncadd [#allocation18], 4294967264 }
  0xbd   :  { %5509 = dma.done.wait [#allocation21], 16  }
  0xbe   :  { %5510 = vsyncadd [#allocation21], 4294967280  ;;  %v7194_v0 = vmov 0.0   ;;  %vm5528_vm0 = vmmov 0   ;;  %vm219_vm1 = vcmask 1040384   ;;  %vm220_vm2 = vcmask 1041408  }
  0xbf   :  { %4593 = vmatprep.subr.bf16.mxu0 %v7194_v0  ;;  %4599 = vmatprep.mubr.msk.bf16.mxu0 %vm5528_vm0, %v7194_v0  ;;  %s7219_s22 = sld [smem:[#allocation41_spill]]  ;;  %v5529_v2 = vmov 65535   ;;  %s7220_s13 = sld [smem:[#allocation40_spill]]  ;;  %vm215_vm3 = vcmask 285696   ;;  %v7196_v31 = vmov 0   ;;  %vm408_vm4 = vcmask 261120  }
  0xc0   :  { %v221_v3 = vsel %vm219_vm1, 4294967295, %v5529_v2  ;;  %s7221_s27 = sld [smem:[#allocation43_spill]]  ;;  %444 = vmatprep.mubr.bf16.mxu1 %v7196_v31  ;;  %v5820_v32 = vld [vmem:[%s7176_s5 + $0x4] ss:$16 sps:$4 sm:$0xff]   ;;  %s7223_s30 = sld [smem:[#allocation42_spill]]  ;;  %vm1144_vm5 = vcmask 516096  }
  0xc1   :  { %v222_v6 = vsel %vm220_vm2, %v221_v3, 0  ;;  %7222 = vst [vmem:[#allocation30_spill] sm:$0xff] %v5820_v32  ;;  %v5835_v46 = vld [vmem:[%s7176_s5] ss:$16 sps:$4 sm:$0xff]   ;;  %v5846_v49 = vld [vmem:[%s7176_s5 + $0x24] ss:$16 sps:$4 sm:$0xff]  }
  0xc2   :  { %v5855_v52 = vld [vmem:[%s7176_s5 + $0x20] ss:$16 sps:$4 sm:$0xff]   ;;  %v5867_v55 = vld [vmem:[%s7176_s5 + $0x44] ss:$16 sps:$4 sm:$0xff]   ;;  %v5887_v61 = vld [vmem:[%s7176_s5 + $0xc] ss:$16 sps:$4 sm:$0xff]  }
  0xc3   :  { %v5874_v58 = vld [vmem:[%s7176_s5 + $0x40] ss:$16 sps:$4 sm:$0xff]   ;;  %v5880_v59 = vld [vmem:[%s7176_s5 + $0x64] ss:$16 sps:$4 sm:$0xff]   ;;  %7224 = vst [vmem:[#allocation31_spill] sm:$0xff] %v5887_v61  ;;  %vm1146_vm6 = vcmask 1040896  }
  0xc4   :  { %v5893_v62 = vld [vmem:[%s7176_s5 + $0x60] ss:$16 sps:$4 sm:$0xff]   ;;  %v5899_v63 = vld [vmem:[%s7176_s5 + $0x84] ss:$16 sps:$4 sm:$0xff]   ;;  %v5910_v2 = vld [vmem:[%s7176_s5 + $0x2c] ss:$16 sps:$4 sm:$0xff]  }
  0xc5   :  { %v4954_v1 = vld [vmem:[%s7219_s22] sm:$0xff]   ;;  %v4955_v4 = vld [vmem:[%s7219_s22 + $0x8] sm:$0xff]   ;;  %v4956_v5 = vld [vmem:[%s7219_s22 + $0x10] ss:$0 sps:$4 sm:$0x33]   ;;  %vm1149_vm7 = vcmask 517121  }
  0xc6   :  { %4594 = vmatpush3.bf16.msra.mxu0 %v4954_v1  ;;  %v185_v7 = vld [vmem:[%s7220_s13] sm:$0xff]  ;;  %v186_v8 = vld [vmem:[%s7220_s13 + $0x8] sm:$0xff]  ;;  %v224_v9 = vand.u32 %v4956_v5, %v222_v6  ;;  %v272_v14 = vld [vmem:[%s7221_s27 + $0x10] sm:$0xff]  ;;  %vm1151_vm8 = vcmask 1041921   ;;  %vm2493_vm9 = vcmask 1043456   ;;  %s5532_s21 = smov 96  }
  0xc7   :  { %4595 = vmatprep.subr.bf16.mxu0 %v7194_v0  ;;  %v187_v10 = vpack.c.bf16 %v186_v8, %v185_v7  ;;  %v270_v11 = vld [vmem:[%s7221_s27] sm:$0xff]  ;;  %v276_v15 = vld [vmem:[%s7221_s27 + $0x30] sm:$0xff]  ;;  %v271_v27 = vld [vmem:[%s7221_s27 + $0x8] sm:$0xff]  ;;  %vm2476_vm10 = vcmask 57344   ;;  %vm2489_vm11 = vcmask 64512   ;;  %s5533_s11 = smov 32  }
  0xc8   :  { %v274_v12 = vld [vmem:[%s7221_s27 + $0x20] sm:$0xff]  ;;  %v4330_v17 = vcombine.high %v272_v14, %v276_v15  ;;  %v4329_v18 = vcombine.low %v272_v14, %v276_v15  ;;  %v280_v22 = vld [vmem:[%s7221_s27 + $0x50] sm:$0xff]  ;;  %v275_v28 = vld [vmem:[%s7221_s27 + $0x28] sm:$0xff]  ;;  %s3103_s24 = ssub.f32 1.0, %s7183_s12  ;;  %vm3113_vm12 = vcmask 1047559   ;;  %vm3265_vm13 = vcmask 523264  }
  0xc9   :  { %v4326_v13 = vcombine.high %v270_v11, %v274_v12  ;;  %v4325_v16 = vcombine.low %v270_v11, %v274_v12  ;;  %v278_v19 = vld [vmem:[%s7221_s27 + $0x40] sm:$0xff]  ;;  %v284_v23 = vld [vmem:[%s7221_s27 + $0x70] sm:$0xff]  ;;  %v4328_v29 = vcombine.high %v271_v27, %v275_v28  ;;  %v4327_v30 = vcombine.low %v271_v27, %v275_v28  ;;  %v279_v40 = vld [vmem:[%s7221_s27 + $0x48] sm:$0xff] }
  0xca   :  { %4596 = vmatpush3.bf16.msra.mxu0 %v4955_v4  ;;  %v282_v20 = vld [vmem:[%s7221_s27 + $0x60] sm:$0xff]  ;;  %v4338_v25 = vcombine.high %v280_v22, %v284_v23  ;;  %v4337_v26 = vcombine.low %v280_v22, %v284_v23  ;;  %v283_v41 = vld [vmem:[%s7221_s27 + $0x68] sm:$0xff]  ;;  %v273_v47 = vld [vmem:[%s7221_s27 + $0x18] sm:$0xff]  ;;  %v288_v23 = vlaneseq  ;;  %vm3339_vm14 = vcmask 8192  }
  0xcb   :  { %4597 = vmatprep.subr.bf16.mxu0 %v7194_v0  ;;  %412 = vmatprep.subr.bf16.mxu1 %v4326_v13  ;;  %v4334_v21 = vcombine.high %v278_v19, %v282_v20  ;;  %v4333_v24 = vcombine.low %v278_v19, %v282_v20  ;;  %v4320_v33 = vld [vmem:[%s7223_s30] ss:$0 sm:$0xff]  ;;  %v4336_v45 = vcombine.high %v279_v40, %v283_v41  ;;  %v277_v48 = vld [vmem:[%s7221_s27 + $0x38] sm:$0xff]  ;;  %v5922_v4 = vld [vmem:[%s7176_s5 + $0xa4] ss:$16 sps:$4 sm:$0xff]  }
  0xcc   :  { %413 = vmatpush1.bf16.msra.mxu1 %v4325_v16  ;;  %v4335_v50 = vcombine.low %v279_v40, %v283_v41  ;;  %v4332_v51 = vcombine.high %v273_v47, %v277_v48  ;;  %v281_v53 = vld [vmem:[%s7221_s27 + $0x58] sm:$0xff]  ;;  %v4331_v56 = vcombine.low %v273_v47, %v277_v48  ;;  %v5916_v3 = vld [vmem:[%s7176_s5 + $0x80] ss:$16 sps:$4 sm:$0xff]   ;;  %v5948_v8 = vld [vmem:[%s7176_s5 + $0xc4] ss:$16 sps:$4 sm:$0xff]  }
  0xcd   :  { %414 = vmatprep.subr.bf16.mxu1 %v4334_v21  ;;  %v285_v54 = vld [vmem:[%s7221_s27 + $0x78] sm:$0xff]  ;;  %v5942_v7 = vld [vmem:[%s7176_s5 + $0xa0] ss:$16 sps:$4 sm:$0xff]   ;;  %v5972_v12 = vld [vmem:[%s7176_s5 + $0xe4] ss:$16 sps:$4 sm:$0xff]  }
  0xce   :  { %4598 = vmatpush3.bf16.msra.mxu0 %v224_v9  ;;  %v4340_v57 = vcombine.high %v281_v53, %v285_v54  ;;  %v4339_v60 = vcombine.low %v281_v53, %v285_v54  ;;  %v5904_v1 = vld [vmem:[%s7176_s5 + $0x8] ss:$16 sps:$4 sm:$0xff]   ;;  %v5936_v6 = vld [vmem:[%s7176_s5 + $0x4c] ss:$16 sps:$4 sm:$0xff]   ;;  %v5966_v11 = vld [vmem:[%s7176_s5 + $0xc0] ss:$16 sps:$4 sm:$0xff]  }
  0xcf   :  { %498 = vmatprep.subr.bf16.mxu0 %v4330_v17  ;;  %v5929_v5 = vld [vmem:[%s7176_s5 + $0x28] ss:$16 sps:$4 sm:$0xff]   ;;  %v5984_v14 = vld [vmem:[%s7176_s5 + $0x8c] ss:$16 sps:$4 sm:$0xff]   ;;  %v5990_v15 = vld [vmem:[%s7176_s5 + $0xe0] ss:$16 sps:$4 sm:$0xff]  }
  0xd0   :  { %415 = vmatpush1.bf16.msra.mxu1 %v4333_v24  ;;  %v5954_v9 = vld [vmem:[%s7176_s5 + $0x48] ss:$16 sps:$4 sm:$0xff]   ;;  %7225 = vst [vmem:[#allocation32_spill] sm:$0xff] %v5990_v15  ;;  %v6003_v17 = vld [vmem:[%s7176_s5 + $0xac] ss:$16 sps:$4 sm:$0xff]   ;;  %v6076_v24 = vshrl.u32 %v288_v23, 7 }
  0xd1   :  { %4600 = vmatmul.mubr.msk.bf16.vlgmr.msra.gmra.mrb[0].mxu0 %vm215_vm3, %v187_v10  ;;  %455 = vmatprep.subr.bf16.mxu1 %v4328_v29  ;;  %v5960_v10 = vld [vmem:[%s7176_s5 + $0x6c] ss:$16 sps:$4 sm:$0xff]   ;;  %v5978_v13 = vld [vmem:[%s7176_s5 + $0x68] ss:$16 sps:$4 sm:$0xff]  }
  0xd2   :  { %499 = vmatpush1.bf16.msra.mxu0 %v4329_v18  ;;  %530 = vmatprep.mubr.bf16.mxu0 %v7196_v31  ;;  %v5997_v16 = vld [vmem:[%s7176_s5 + $0x88] ss:$16 sps:$4 sm:$0xff]   ;;  %v6018_v19 = vld [vmem:[%s7176_s5 + $0xcc] ss:$16 sps:$4 sm:$0xff]   ;;  %v6082_v27 = vsub.s32 0, %v6076_v24  ;;  %v310_v28 = vsub.s32 5, %v6076_v24 }
  0xd3   :  { %500 = vmatprep.subr.bf16.mxu0 %v4338_v25  ;;  %v6011_v18 = vld [vmem:[%s7176_s5 + $0xa8] ss:$16 sps:$4 sm:$0xff]   ;;  %v6033_v21 = vld [vmem:[%s7176_s5 + $0xec] ss:$16 sps:$4 sm:$0xff]   ;;  %v306_v25 = vsub.s32 4, %v6076_v24  ;;  %v298_v48 = vsub.s32 2, %v6076_v24 }
  0xd4   :  { %v6027_v20 = vld [vmem:[%s7176_s5 + $0xc8] ss:$16 sps:$4 sm:$0xff]   ;;  %7226 = vst [vmem:[#allocation33_spill] sm:$0xff] %v6033_v21  ;;  %7228 = vst [vmem:[#allocation35_spill] sm:$0xff] %v6082_v27 }
  0xd5   :  { %v6041_v22 = vld [vmem:[%s7176_s5 + $0xe8] ss:$16 sps:$4 sm:$0xff]  }
  0xd6   :  { %501 = vmatpush1.bf16.msra.mxu0 %v4337_v26  ;;  %7227 = vst [vmem:[#allocation34_spill] sm:$0xff] %v6041_v22  ;;  %v6079_v26 = vld [vmem:[#allocation5] sm:$0xff] }
  0xd7   :  { %1008 = vmatprep.subr.bf16.mxu0 %v5820_v32  ;;  %v307_v29 = vrot.slane %v6079_v26, %v306_v25 }
 0x1a4   :  { %v260_v34 = vpop.f32.mrb[0].mxu0 }
 0x1a5   :  { %v261_v35 = vadd.f32 %v4320_v33, %v260_v34  ;;  %v4601_v36 = vpop.f32.mrb[1].mxu0  ;;  %v311_v34 = vrot.slane %v6079_v26, %v310_v28 }
 0x1a6   :  { %v263_v37 = vpop.f32.mrb[2].mxu0 }
 0x1a7   :  { %v264_v38 = vadd.f32 %v4320_v33, %v263_v37  ;;  %v4602_v39 = vpop.f32.mrb[3].mxu0  ;;  %v267_v42 = vmax.f32 %v261_v35, 0.0  ;;  %v291_v33 = vrot.slane %v6079_v26, %v6082_v27  ;;  %v5531_v37 = vmov 1983009808  }
 0x1a9   :  { %v268_v43 = vmax.f32 %v264_v38, 0.0  ;;  %v607_v38 = vunpack.c.l.s4 %v5531_v37 }
 0x1ab   :  { %v269_v44 = vpack.c.bf16 %v268_v43, %v267_v42 }
 0x1ad   :  { %4341 = vmatmul.mubr.msk.bf16.vlgmr.msra.gmra.mrb[0].mxu1 %vm408_vm4, %v269_v44  ;;  %4343 = vmatmul.mubr.msk.bf16.vlgmr.msra.gmra.mrb[4].mxu0 %vm408_vm4, %v269_v44 }
 0x1ae   :  { %456 = vmatpush1.bf16.msra.mxu1 %v4327_v30  ;;  %487 = vmatprep.mubr.bf16.mxu1 %v7196_v31  ;;  %v6087_v30 = vsub.s32 1, %v6076_v24 }
 0x1af   :  { %457 = vmatprep.subr.bf16.mxu1 %v4336_v45  ;;  %1009 = vmatpush1.bf16.msra.mxu0 %v5835_v46 }
 0x1b0   :  { %1010 = vmatprep.subr.bf16.mxu0 %v5846_v49  ;;  %1040 = vmatprep.mubr.bf16.mxu0 %v7196_v31  ;;  %7229 = vst [vmem:[#allocation36_spill] sm:$0xff] %v6087_v30  ;;  %v295_v40 = vrot.slane %v6079_v26, %v6087_v30 }
 0x1b2   :  { %458 = vmatpush1.bf16.msra.mxu1 %v4335_v50  ;;  %v302_v50 = vsub.s32 3, %v6076_v24 }
 0x1b3   :  { %541 = vmatprep.subr.bf16.mxu1 %v4332_v51  ;;  %1011 = vmatpush1.bf16.msra.mxu0 %v5855_v52 }
 0x1b4   :  { %1012 = vmatprep.subr.bf16.mxu0 %v5867_v55 }
 0x1b5   :  { %4342 = vmatmul.mubr.msk.bf16.vlgmr.msra.gmra.mrb[4].mxu1 %vm408_vm4, %v269_v44 }
 0x1b6   :  { %542 = vmatpush1.bf16.msra.mxu1 %v4331_v56  ;;  %573 = vmatprep.mubr.bf16.mxu1 %v7196_v31 }
 0x1b7   :  { %543 = vmatprep.subr.bf16.mxu1 %v4340_v57  ;;  %1013 = vmatpush1.bf16.msra.mxu0 %v5874_v58 }
 0x1b8   :  { %1014 = vmatprep.subr.bf16.mxu0 %v5880_v59 }
 0x1ba   :  { %544 = vmatpush1.bf16.msra.mxu1 %v4339_v60 }
 0x1bb   :  { %1049 = vmatprep.subr.bf16.mxu1 %v5887_v61  ;;  %1015 = vmatpush1.bf16.msra.mxu0 %v5893_v62 }
 0x1bc   :  { %1016 = vmatprep.subr.bf16.mxu0 %v5899_v63 }
 0x1bd   :  { %4344 = vmatmul.mubr.msk.bf16.vlgmr.msra.gmra.mrb[8].mxu1 %vm408_vm4, %v269_v44 }
 0x1be   :  { %1050 = vmatpush1.bf16.msra.mxu1 %v5904_v1  ;;  %1081 = vmatprep.mubr.bf16.mxu1 %v7196_v31 }
 0x1bf   :  { %1051 = vmatprep.subr.bf16.mxu1 %v5910_v2  ;;  %1017 = vmatpush1.bf16.msra.mxu0 %v5916_v3 }
 0x1c0   :  { %1018 = vmatprep.subr.bf16.mxu0 %v5922_v4 }
 0x1c2   :  { %1052 = vmatpush1.bf16.msra.mxu1 %v5929_v5 }
 0x1c3   :  { %1053 = vmatprep.subr.bf16.mxu1 %v5936_v6  ;;  %1019 = vmatpush1.bf16.msra.mxu0 %v5942_v7 }
 0x1c4   :  { %1020 = vmatprep.subr.bf16.mxu0 %v5948_v8 }
 0x1c6   :  { %1054 = vmatpush1.bf16.msra.mxu1 %v5954_v9 }
 0x1c7   :  { %1055 = vmatprep.subr.bf16.mxu1 %v5960_v10  ;;  %1021 = vmatpush1.bf16.msra.mxu0 %v5966_v11 }
 0x1c8   :  { %1022 = vmatprep.subr.bf16.mxu0 %v5972_v12 }
 0x1ca   :  { %1056 = vmatpush1.bf16.msra.mxu1 %v5978_v13 }
 0x1cb   :  { %1057 = vmatprep.subr.bf16.mxu1 %v5984_v14  ;;  %1023 = vmatpush1.bf16.msra.mxu0 %v5990_v15 }
 0x1cc   :  { %1155 = vmatprep.subr.bf16.mxu0 %v5820_v32 }
 0x1ce   :  { %1058 = vmatpush1.bf16.msra.mxu1 %v5997_v16  ;;  %1041 = vmatmul.mubr.bf16.vlgmr.msra.gmra.mrb[8].mxu0 %v7196_v31 }
 0x1cf   :  { %1059 = vmatprep.subr.bf16.mxu1 %v6003_v17  ;;  %1156 = vmatpush1.bf16.msra.mxu0 %v5835_v46 }
 0x1d0   :  { %1157 = vmatprep.subr.bf16.mxu0 %v5846_v49  ;;  %1187 = vmatprep.mubr.bf16.mxu0 %v7196_v31 }
 0x1d2   :  { %1060 = vmatpush1.bf16.msra.mxu1 %v6011_v18 }
 0x1d3   :  { %1061 = vmatprep.subr.bf16.mxu1 %v6018_v19  ;;  %1158 = vmatpush1.bf16.msra.mxu0 %v5855_v52 }
 0x1d4   :  { %1159 = vmatprep.subr.bf16.mxu0 %v5867_v55 }
 0x1d6   :  { %1062 = vmatpush1.bf16.msra.mxu1 %v6027_v20 }
 0x1d7   :  { %1063 = vmatprep.subr.bf16.mxu1 %v6033_v21  ;;  %1160 = vmatpush1.bf16.msra.mxu0 %v5874_v58 }
 0x1d8   :  { %1161 = vmatprep.subr.bf16.mxu0 %v5880_v59 }
 0x1da   :  { %1064 = vmatpush1.bf16.msra.mxu1 %v6041_v22 }
 0x1db   :  { %1196 = vmatprep.subr.bf16.mxu1 %v5887_v61  ;;  %1162 = vmatpush1.bf16.msra.mxu0 %v5893_v62 }
 0x1dc   :  { %1163 = vmatprep.subr.bf16.mxu0 %v5899_v63 }
 0x1dd   :  { %1082 = vmatmul.mubr.bf16.vlgmr.msra.gmra.mrb[12].mxu1 %v7196_v31 }
 0x1de   :  { %1197 = vmatpush1.bf16.msra.mxu1 %v5904_v1  ;;  %1228 = vmatprep.mubr.bf16.mxu1 %v7196_v31 }
 0x1df   :  { %1198 = vmatprep.subr.bf16.mxu1 %v5910_v2  ;;  %1164 = vmatpush1.bf16.msra.mxu0 %v5916_v3 }
 0x1e0   :  { %1165 = vmatprep.subr.bf16.mxu0 %v5922_v4 }
 0x1e2   :  { %1199 = vmatpush1.bf16.msra.mxu1 %v5929_v5 }
 0x1e3   :  { %1200 = vmatprep.subr.bf16.mxu1 %v5936_v6  ;;  %1166 = vmatpush1.bf16.msra.mxu0 %v5942_v7 }
 0x1e4   :  { %1167 = vmatprep.subr.bf16.mxu0 %v5948_v8 }
 0x1e6   :  { %1201 = vmatpush1.bf16.msra.mxu1 %v5954_v9 }
 0x1e7   :  { %1202 = vmatprep.subr.bf16.mxu1 %v5960_v10  ;;  %1168 = vmatpush1.bf16.msra.mxu0 %v5966_v11 }
 0x1e8   :  { %1169 = vmatprep.subr.bf16.mxu0 %v5972_v12 }
 0x1ea   :  { %1203 = vmatpush1.bf16.msra.mxu1 %v5978_v13 }
 0x1eb   :  { %1204 = vmatprep.subr.bf16.mxu1 %v5984_v14  ;;  %1170 = vmatpush1.bf16.msra.mxu0 %v5990_v15 }
 0x1ec   :  { %1297 = vmatprep.subr.bf16.mxu0 %v5820_v32 }
 0x1ee   :  { %1205 = vmatpush1.bf16.msra.mxu1 %v5997_v16 }
 0x1ef   :  { %1206 = vmatprep.subr.bf16.mxu1 %v6003_v17 }
 0x1f2   :  { %1207 = vmatpush1.bf16.msra.mxu1 %v6011_v18 }
 0x1f3   :  { %1208 = vmatprep.subr.bf16.mxu1 %v6018_v19 }
 0x1f6   :  { %1209 = vmatpush1.bf16.msra.mxu1 %v6027_v20 }
 0x1f7   :  { %1210 = vmatprep.subr.bf16.mxu1 %v6033_v21 }
 0x1fa   :  { %1211 = vmatpush1.bf16.msra.mxu1 %v6041_v22 }
 0x1fb   :  { %1338 = vmatprep.subr.bf16.mxu1 %v5887_v61 }
 0x280   :  { %v446_v35 = vpop.f32.mrb[0].mxu1  ;;  %v532_v36 = vpop.f32.mrb[4].mxu0 }
 0x281   :  { %v533_v39 = vadd.f32 %v532_v36, %v307_v29  ;;  %v448_v41 = vpop.f32.mrb[1].mxu1  ;;  %v534_v42 = vpop.f32.mrb[5].mxu0  ;;  %v447_v43 = vadd.f32 %v446_v35, %v291_v33 }
 0x282   :  { %v535_v44 = vadd.f32 %v534_v42, %v311_v34  ;;  %v450_v45 = vpop.f32.mrb[2].mxu1  ;;  %v536_v47 = vpop.f32.mrb[6].mxu0  ;;  %v449_v32 = vadd.f32 %v448_v41, %v295_v40 }
 0x283   :  { %v703_v51 = vrot.slane %v533_v39, 6  ;;  %v739_v53 = vrot.slane %v533_v39, 2  ;;  %v451_v54 = vadd.f32 %v450_v45, %v291_v33  ;;  %v537_v56 = vadd.f32 %v536_v47, %v307_v29  ;;  %v452_v57 = vpop.f32.mrb[3].mxu1  ;;  %v538_v60 = vpop.f32.mrb[7].mxu0 }
 0x284   :  { %v704_v23 = vrot.slane %v535_v44, 6  ;;  %v740_v25 = vrot.slane %v535_v44, 2  ;;  %v453_v28 = vadd.f32 %v452_v57, %v295_v40  ;;  %v539_v36 = vadd.f32 %v538_v60, %v311_v34 }
 0x285   :  { %v711_v37 = vadd.f32 %v703_v51, %v451_v54  ;;  %v747_v0 = vadd.f32 %v739_v53, %v451_v54  ;;  %v588_v35 = vrot.slane %v537_v56, 6  ;;  %v623_v42 = vrot.slane %v537_v56, 2 }
 0x286   :  { %v712_v31 = vadd.f32 %v704_v23, %v453_v28  ;;  %v748_v30 = vadd.f32 %v740_v25, %v453_v28  ;;  %v589_v27 = vrot.slane %v539_v36, 6  ;;  %v624_v61 = vrot.slane %v539_v36, 2 }
 0x287   :  { %v596_v22 = vadd.f32 %v588_v35, %v447_v43  ;;  %v631_v15 = vadd.f32 %v623_v42, %v447_v43  ;;  %v314_v34 = vsub.s32 6, %v6076_v24  ;;  %v608_v51 = vunpack.c.0.s8 %v607_v38 }
 0x288   :  { %v719_v39 = vcombine.low %v711_v37, %v712_v31  ;;  %v755_v33 = vcombine.low %v747_v0, %v748_v30  ;;  %v775_v29 = vcombine.high %v711_v37, %v712_v31  ;;  %v795_v45 = vcombine.high %v747_v0, %v748_v30  ;;  %v489_v47 = vpop.f32.mrb[4].mxu1 }
 0x289   :  { %v597_v21 = vadd.f32 %v589_v27, %v449_v32  ;;  %v632_v44 = vadd.f32 %v624_v61, %v449_v32  ;;  %v491_v57 = vpop.f32.mrb[5].mxu1  ;;  %v299_v53 = vrot.slane %v6079_v26, %v298_v48  ;;  %v303_v54 = vrot.slane %v6079_v26, %v302_v50 }
 0x28a   :  { %v493_v56 = vpop.f32.mrb[6].mxu1  ;;  %v318_v40 = vsub.s32 7, %v6076_v24  ;;  %v315_v32 = vrot.slane %v6079_v26, %v314_v34  ;;  %v6102_v61 = vsub.s32 %v608_v51, %v6076_v24 }
 0x28b   :  { %v604_v41 = vcombine.low %v596_v22, %v597_v21  ;;  %v639_v43 = vcombine.low %v631_v15, %v632_v44  ;;  %v659_v60 = vcombine.high %v596_v22, %v597_v21  ;;  %v679_v23 = vcombine.high %v631_v15, %v632_v44  ;;  %v495_v31 = vpop.f32.mrb[7].mxu1 }
 0x28c   :  { %v494_v0 = vadd.f32 %v493_v56, %v299_v53  ;;  %v496_v30 = vadd.f32 %v495_v31, %v303_v54  ;;  %v319_v27 = vrot.slane %v6079_v26, %v318_v40  ;;  %v490_v48 = vadd.f32 %v489_v47, %v299_v53 }
 0x28d   :  { %v6106_v28 = vrot.slane %v719_v39, %v6102_v61  ;;  %v6109_v21 = vrot.slane %v755_v33, %v6102_v61  ;;  %v6112_v15 = vrot.slane %v775_v29, %v6102_v61  ;;  %v6115_v24 = vrot.slane %v795_v45, %v6102_v61 }
 0x28e   :  { %v492_v47 = vadd.f32 %v491_v57, %v303_v54  ;;  %v6119_v45 = vrot.slane %v639_v43, %v6102_v61 }
 0x28f   :  { %7230 = vst [vmem:[#allocation37_spill] sm:$0xff] %v6115_v24 }
 0x290   :  { %v575_v38 = vpop.f32.mrb[8].mxu1 }
 0x291   :  { %v576_v50 = vadd.f32 %v575_v38, %v315_v32  ;;  %v577_v25 = vpop.f32.mrb[9].mxu1 }
 0x292   :  { %v578_v22 = vadd.f32 %v577_v25, %v319_v27  ;;  %v579_v36 = vpop.f32.mrb[10].mxu1  ;;  %v612_v25 = vrot.slane %v604_v41, %v6102_v61 }
 0x293   :  { %v705_v37 = vrot.slane %v576_v50, 6  ;;  %v741_v26 = vrot.slane %v576_v50, 2  ;;  %v580_v35 = vadd.f32 %v579_v36, %v315_v32  ;;  %v581_v42 = vpop.f32.mrb[11].mxu1 }
 0x294   :  { %v706_v44 = vrot.slane %v578_v22, 6  ;;  %v742_v34 = vrot.slane %v578_v22, 2  ;;  %v582_v39 = vadd.f32 %v581_v42, %v319_v27  ;;  %v6122_v27 = vrot.slane %v659_v60, %v6102_v61 }
 0x295   :  { %v713_v51 = vadd.f32 %v705_v37, %v494_v0  ;;  %v749_v53 = vadd.f32 %v741_v26, %v494_v0  ;;  %v590_v33 = vrot.slane %v580_v35, 6  ;;  %v625_v56 = vrot.slane %v580_v35, 2 }
 0x296   :  { %v714_v40 = vadd.f32 %v706_v44, %v496_v30  ;;  %v750_v29 = vadd.f32 %v742_v34, %v496_v30  ;;  %v591_v31 = vrot.slane %v582_v39, 6  ;;  %v626_v38 = vrot.slane %v582_v39, 2 }
 0x297   :  { %v598_v50 = vadd.f32 %v590_v33, %v490_v48  ;;  %v633_v32 = vadd.f32 %v625_v56, %v490_v48  ;;  %v6125_v0 = vrot.slane %v679_v23, %v6102_v61 }
 0x298   :  { %v720_v36 = vcombine.low %v713_v51, %v714_v40  ;;  %v756_v57 = vcombine.low %v749_v53, %v750_v29  ;;  %v776_v54 = vcombine.high %v713_v51, %v714_v40  ;;  %v796_v22 = vcombine.high %v749_v53, %v750_v29 }
 0x299   :  { %v599_v30 = vadd.f32 %v591_v31, %v492_v47  ;;  %v634_v37 = vadd.f32 %v626_v38, %v492_v47 }
 0x29a   :  { %v6128_v26 = vrot.slane %v720_v36, %v6102_v61  ;;  %v6131_v41 = vrot.slane %v756_v57, %v6102_v61  ;;  %v6134_v43 = vrot.slane %v776_v54, %v6102_v61  ;;  %v6137_v48 = vrot.slane %v796_v22, %v6102_v61 }
 0x29b   :  { %v605_v35 = vcombine.low %v598_v50, %v599_v30  ;;  %v640_v60 = vcombine.low %v633_v32, %v634_v37  ;;  %v660_v42 = vcombine.high %v598_v50, %v599_v30  ;;  %v680_v44 = vcombine.high %v633_v32, %v634_v37 }
 0x29c   :  { %7231 = vst [vmem:[#allocation38_spill] sm:$0xff] %v6134_v43  ;;  %7232 = vst [vmem:[#allocation39_spill] sm:$0xff] %v6137_v48 }
 0x29d   :  { %v619_v51 = vrot.slane %v605_v35, %v6102_v61  ;;  %v6149_v53 = vrot.slane %v640_v60, %v6102_v61  ;;  %v6152_v33 = vrot.slane %v660_v42, %v6102_v61  ;;  %v6155_v56 = vrot.slane %v680_v44, %v6102_v61 }
 0x29f   :  { %v620_v40 = vcombine.low %v612_v25, %v619_v51  ;;  %v655_v29 = vcombine.high %v6119_v45, %v6149_v53 }
 0x2a1   :  { %v1042_v50 = vpop.f32.mrb[8].mxu0 }
 0x2a2   :  { %v1044_v32 = vpop.f32.mrb[9].mxu0 }
 0x2a3   :  { %v1094_v36 = vcombine.low %v1042_v50, %v1044_v32  ;;  %v1046_v57 = vpop.f32.mrb[10].mxu0 }
 0x2a4   :  { %v1047_v54 = vpop.f32.mrb[11].mxu0 }
 0x2a5   :  { %v1102_v37 = vrot.slane %v1094_v36, %v6102_v61 }
 0x2b0   :  { %v1083_v22 = vpop.f32.mrb[12].mxu1 }
 0x2b1   :  { %v1085_v30 = vpop.f32.mrb[13].mxu1 }
 0x2b2   :  { %v1095_v35 = vcombine.low %v1083_v22, %v1085_v30  ;;  %v1087_v25 = vpop.f32.mrb[14].mxu1 }
 0x2b3   :  { %v1088_v60 = vpop.f32.mrb[15].mxu1 }
 0x2b4   :  { %v1109_v42 = vrot.slane %v1095_v35, %v6102_v61 }
 0x2b6   :  { %v1110_v44 = vcombine.low %v1102_v37, %v1109_v42  ;;  %v7233_v42 = vmov 0  }
 0x2b8   :  { %v1112_v51 = vadd.f32 %v1110_v44, %v620_v40  ;;  %v7234_v44 = vld [vmem:[#allocation33_spill] sm:$0xff] }
 0x2ba   :  { %v4377_v39 = vmul.f32 -1.442695, %v1112_v51  ;;  %v1120_v34 = vrot.slane %v1112_v51, 2  ;;  %v1131_v23 = vrot.slane %v1112_v51, 6  ;;  %v1128_v57 = vrot.slane %v1112_v51, 4  ;;  %v7235_v51 = vld [vmem:[#allocation32_spill] sm:$0xff] }
 0x2bc   :  { %5061 = vpow2.f32 %v4377_v39  ;;  %v4378_v47 = vmul.f32 -1.442695, %v1120_v34  ;;  %v4379_v50 = vmul.f32 -1.442695, %v1131_v23 }
 0x2be   :  { %5063 = vpow2.f32 %v4378_v47 }
 0x2bf   :  { %5065 = vpow2.f32 %v4379_v50  ;;  %v7236_v50 = vld [vmem:[#allocation34_spill] sm:$0xff] }
 0x2c6   :  { %v5062_v32 = vpop.eup %5061 }
 0x2c7   :  { %v1116_v54 = vadd.f32 1.0, %v5062_v32  ;;  %v7237_v32 = vld [vmem:[#allocation30_spill] sm:$0xff] }
 0x2c8   :  { %v5064_v38 = vpop.eup %5063 }
 0x2c9   :  { %5067 = vrcp.f32 %v1116_v54  ;;  %v1125_v36 = vadd.f32 1.0, %v5064_v38  ;;  %v5066_v22 = vpop.eup %5065 }
 0x2ca   :  { %5069 = vtanh.f32 %v1128_v57  ;;  %v1136_v35 = vadd.f32 1.0, %v5066_v22  ;;  %v7238_v57 = vld [vmem:[#allocation31_spill] sm:$0xff] }
 0x2cb   :  { %5071 = vrcp.f32 %v1125_v36 }
 0x2cc   :  { %5073 = vrcp.f32 %v1136_v35 }
 0x2d3   :  { %v5068_v30 = vpop.eup %5067 }
 0x2d4   :  { %v5070_v37 = vpop.eup %5069 }
 0x2d5   :  { %v5072_v40 = vpop.eup %5071  ;;  %v1140_v39 = vmul.f32 %v5070_v37, %v5068_v30 }
 0x2d6   :  { %v1139_v25 = vmul.f32 0.0, %v5072_v40  ;;  %v5074_v23 = vpop.eup %5073 }
 0x2d8   :  { %v6165_v34 = vadd.f32 %v1140_v39, %v1139_v25 }
 0x2da   :  { %5075 = vtanh.f32 %v6165_v34 }
 0x2e4   :  { %v5076_v47 = vpop.eup %5075 }
 0x2e5   :  { %v1143_v38 = vmul.f32 %v5076_v47, %v5074_v23 }
 0x2e7   :  { %1145 = vst.msk [vmem:[#allocation3] sm:$0x1] %vm1144_vm5, %v1143_v38  ;;  %v1154_v60 = vpack.c.bf16 %v1143_v38, %v1143_v38 }
 0x2e8   :  { %1147 = vst.msk [vmem:[#allocation3 + $0x7] sm:$0x1] %vm1146_vm6, %v1143_v38 }
 0x2e9   :  { %1150 = vst.msk [vmem:[#allocation3 + $0x7] sm:$0x2] %vm1149_vm7, %v1143_v38  ;;  %1188 = vmatmul.mubr.bf16.vlgmr.msra.gmra.mrb[12].mxu0 %v1154_v60  ;;  %1229 = vmatmul.mubr.bf16.vlgmr.msra.gmra.mrb[16].mxu1 %v1154_v60 }
 0x2ea   :  { %1152 = vst.msk [vmem:[#allocation3 + $0xe] sm:$0x2] %vm1151_vm8, %v1143_v38  ;;  %1298 = vmatpush1.bf16.msra.mxu0 %v5835_v46  ;;  %1339 = vmatpush1.bf16.msra.mxu1 %v5904_v1 }
 0x2eb   :  { %1299 = vmatprep.subr.bf16.mxu0 %v5846_v49  ;;  %1340 = vmatprep.subr.bf16.mxu1 %v5910_v2 }
 0x2ec   :  { %1329 = vmatprep.mubr.bf16.mxu0 %v7233_v42  ;;  %1370 = vmatprep.mubr.bf16.mxu1 %v7233_v42 }
 0x2ee   :  { %1300 = vmatpush1.bf16.msra.mxu0 %v5855_v52  ;;  %1341 = vmatpush1.bf16.msra.mxu1 %v5929_v5 }
 0x2ef   :  { %1301 = vmatprep.subr.bf16.mxu0 %v5867_v55  ;;  %1342 = vmatprep.subr.bf16.mxu1 %v5936_v6 }
 0x2f2   :  { %1302 = vmatpush1.bf16.msra.mxu0 %v5874_v58  ;;  %1343 = vmatpush1.bf16.msra.mxu1 %v5954_v9 }
 0x2f3   :  { %1303 = vmatprep.subr.bf16.mxu0 %v5880_v59  ;;  %1344 = vmatprep.subr.bf16.mxu1 %v5960_v10 }
 0x2f6   :  { %1304 = vmatpush1.bf16.msra.mxu0 %v5893_v62  ;;  %1345 = vmatpush1.bf16.msra.mxu1 %v5978_v13 }
 0x2f7   :  { %1305 = vmatprep.subr.bf16.mxu0 %v5899_v63  ;;  %1346 = vmatprep.subr.bf16.mxu1 %v5984_v14 }
 0x2fa   :  { %1306 = vmatpush1.bf16.msra.mxu0 %v5916_v3  ;;  %1347 = vmatpush1.bf16.msra.mxu1 %v5997_v16 }
 0x2fb   :  { %1307 = vmatprep.subr.bf16.mxu0 %v5922_v4  ;;  %1348 = vmatprep.subr.bf16.mxu1 %v6003_v17 }
 0x2fe   :  { %1308 = vmatpush1.bf16.msra.mxu0 %v5942_v7  ;;  %1349 = vmatpush1.bf16.msra.mxu1 %v6011_v18 }
 0x2ff   :  { %1309 = vmatprep.subr.bf16.mxu0 %v5948_v8  ;;  %1350 = vmatprep.subr.bf16.mxu1 %v6018_v19 }
 0x302   :  { %1310 = vmatpush1.bf16.msra.mxu0 %v5966_v11  ;;  %1351 = vmatpush1.bf16.msra.mxu1 %v6027_v20 }
 0x303   :  { %1311 = vmatprep.subr.bf16.mxu0 %v5972_v12  ;;  %1352 = vmatprep.subr.bf16.mxu1 %v7234_v44 }
 0x306   :  { %1312 = vmatpush1.bf16.msra.mxu0 %v7235_v51  ;;  %1353 = vmatpush1.bf16.msra.mxu1 %v7236_v50 }
 0x307   :  { %1439 = vmatprep.subr.bf16.mxu0 %v7237_v32  ;;  %1480 = vmatprep.subr.bf16.mxu1 %v7238_v57 }
 0x3bc   :  { %v1189_v54 = vpop.f32.mrb[12].mxu0  ;;  %v1230_v36 = vpop.f32.mrb[16].mxu1 }
 0x3bd   :  { %v1191_v22 = vpop.f32.mrb[13].mxu0  ;;  %v1232_v30 = vpop.f32.mrb[17].mxu1 }
 0x3be   :  { %v1241_v37 = vcombine.low %v1189_v54, %v1191_v22  ;;  %v1242_v40 = vcombine.low %v1230_v36, %v1232_v30  ;;  %v1193_v35 = vpop.f32.mrb[14].mxu0  ;;  %v1234_v25 = vpop.f32.mrb[18].mxu1 }
 0x3bf   :  { %v1194_v39 = vpop.f32.mrb[15].mxu0  ;;  %v1235_v23 = vpop.f32.mrb[19].mxu1 }
 0x3c0   :  { %v1249_v47 = vrot.slane %v1241_v37, %v6102_v61  ;;  %v1256_v38 = vrot.slane %v1242_v40, %v6102_v61 }
 0x3c2   :  { %v1257_v60 = vcombine.low %v1249_v47, %v1256_v38 }
 0x3c4   :  { %v1259_v31 = vadd.f32 %v1257_v60, %v655_v29 }
 0x3c6   :  { %v4380_v48 = vmul.f32 -1.442695, %v1259_v31  ;;  %v1267_v24 = vrot.slane %v1259_v31, 2  ;;  %v1278_v54 = vrot.slane %v1259_v31, 6  ;;  %v1275_v30 = vrot.slane %v1259_v31, 4 }
 0x3c8   :  { %5077 = vpow2.f32 %v4380_v48  ;;  %v4381_v43 = vmul.f32 -1.442695, %v1267_v24  ;;  %v4382_v36 = vmul.f32 -1.442695, %v1278_v54 }
 0x3ca   :  { %5079 = vpow2.f32 %v4381_v43 }
 0x3cb   :  { %5081 = vpow2.f32 %v4382_v36 }
 0x3d2   :  { %v5078_v22 = vpop.eup %5077 }
 0x3d3   :  { %v1263_v35 = vadd.f32 1.0, %v5078_v22 }
 0x3d4   :  { %v5080_v25 = vpop.eup %5079 }
 0x3d5   :  { %5083 = vrcp.f32 %v1263_v35  ;;  %v1272_v37 = vadd.f32 1.0, %v5080_v25  ;;  %v5082_v40 = vpop.eup %5081 }
 0x3d6   :  { %5085 = vtanh.f32 %v1275_v30  ;;  %v1283_v29 = vadd.f32 1.0, %v5082_v40 }
 0x3d7   :  { %5087 = vrcp.f32 %v1272_v37 }
 0x3d8   :  { %5089 = vrcp.f32 %v1283_v29 }
 0x3df   :  { %v5084_v39 = vpop.eup %5083 }
 0x3e0   :  { %v5086_v45 = vpop.eup %5085 }
 0x3e1   :  { %v5088_v53 = vpop.eup %5087  ;;  %v1287_v24 = vmul.f32 %v5086_v45, %v5084_v39 }
 0x3e2   :  { %v1286_v48 = vmul.f32 %v5088_v53, %v6165_v34  ;;  %v5090_v31 = vpop.eup %5089 }
 0x3e4   :  { %v6212_v43 = vadd.f32 %v1287_v24, %v1286_v48 }
 0x3e6   :  { %5091 = vtanh.f32 %v6212_v43 }
 0x3f0   :  { %v5092_v23 = vpop.eup %5091 }
 0x3f1   :  { %v1290_v47 = vmul.f32 %v5092_v23, %v5090_v31 }
 0x3f3   :  { %1291 = vst.msk [vmem:[#allocation3 + $0x1] sm:$0x1] %vm1144_vm5, %v1290_v47  ;;  %v1296_v38 = vpack.c.bf16 %v1290_v47, %v1290_v47 }
 0x3f4   :  { %1292 = vst.msk [vmem:[#allocation3 + $0x6] sm:$0x1] %vm1146_vm6, %v1290_v47 }
 0x3f5   :  { %1293 = vst.msk [vmem:[#allocation3 + $0x8] sm:$0x2] %vm1149_vm7, %v1290_v47  ;;  %1330 = vmatmul.mubr.bf16.vlgmr.msra.gmra.mrb[16].mxu0 %v1296_v38  ;;  %1371 = vmatmul.mubr.bf16.vlgmr.msra.gmra.mrb[20].mxu1 %v1296_v38 }
 0x3f6   :  { %1294 = vst.msk [vmem:[#allocation3 + $0xd] sm:$0x2] %vm1151_vm8, %v1290_v47  ;;  %1440 = vmatpush1.bf16.msra.mxu0 %v5835_v46  ;;  %1481 = vmatpush1.bf16.msra.mxu1 %v5904_v1 }
 0x3f7   :  { %1441 = vmatprep.subr.bf16.mxu0 %v5846_v49  ;;  %1482 = vmatprep.subr.bf16.mxu1 %v5910_v2 }
 0x3f8   :  { %1471 = vmatprep.mubr.bf16.mxu0 %v7233_v42  ;;  %1512 = vmatprep.mubr.bf16.mxu1 %v7233_v42 }
 0x3fa   :  { %1442 = vmatpush1.bf16.msra.mxu0 %v5855_v52  ;;  %1483 = vmatpush1.bf16.msra.mxu1 %v5929_v5 }
 0x3fb   :  { %1443 = vmatprep.subr.bf16.mxu0 %v5867_v55  ;;  %1484 = vmatprep.subr.bf16.mxu1 %v5936_v6 }
 0x3fe   :  { %1444 = vmatpush1.bf16.msra.mxu0 %v5874_v58  ;;  %1485 = vmatpush1.bf16.msra.mxu1 %v5954_v9 }
 0x3ff   :  { %1445 = vmatprep.subr.bf16.mxu0 %v5880_v59  ;;  %1486 = vmatprep.subr.bf16.mxu1 %v5960_v10 }
 0x402   :  { %1446 = vmatpush1.bf16.msra.mxu0 %v5893_v62  ;;  %1487 = vmatpush1.bf16.msra.mxu1 %v5978_v13 }
 0x403   :  { %1447 = vmatprep.subr.bf16.mxu0 %v5899_v63  ;;  %1488 = vmatprep.subr.bf16.mxu1 %v5984_v14 }
 0x406   :  { %1448 = vmatpush1.bf16.msra.mxu0 %v5916_v3  ;;  %1489 = vmatpush1.bf16.msra.mxu1 %v5997_v16 }
 0x407   :  { %1449 = vmatprep.subr.bf16.mxu0 %v5922_v4  ;;  %1490 = vmatprep.subr.bf16.mxu1 %v6003_v17 }
 0x40a   :  { %1450 = vmatpush1.bf16.msra.mxu0 %v5942_v7  ;;  %1491 = vmatpush1.bf16.msra.mxu1 %v6011_v18 }
 0x40b   :  { %1451 = vmatprep.subr.bf16.mxu0 %v5948_v8  ;;  %1492 = vmatprep.subr.bf16.mxu1 %v6018_v19 }
 0x40e   :  { %1452 = vmatpush1.bf16.msra.mxu0 %v5966_v11  ;;  %1493 = vmatpush1.bf16.msra.mxu1 %v6027_v20 }
 0x40f   :  { %1453 = vmatprep.subr.bf16.mxu0 %v5972_v12  ;;  %1494 = vmatprep.subr.bf16.mxu1 %v7234_v44 }
 0x412   :  { %1454 = vmatpush1.bf16.msra.mxu0 %v7235_v51  ;;  %1495 = vmatpush1.bf16.msra.mxu1 %v7236_v50 }
 0x413   :  { %1581 = vmatprep.subr.bf16.mxu0 %v7237_v32  ;;  %1622 = vmatprep.subr.bf16.mxu1 %v7238_v57  ;;  %v7239_v32 = vcombine.low %v6122_v27, %v6152_v33 }
 0x4c8   :  { %v1331_v34 = vpop.f32.mrb[16].mxu0  ;;  %v1372_v60 = vpop.f32.mrb[20].mxu1 }
 0x4c9   :  { %v1333_v54 = vpop.f32.mrb[17].mxu0  ;;  %v1374_v36 = vpop.f32.mrb[21].mxu1 }
 0x4ca   :  { %v1383_v22 = vcombine.low %v1331_v34, %v1333_v54  ;;  %v1384_v30 = vcombine.low %v1372_v60, %v1374_v36  ;;  %v1335_v35 = vpop.f32.mrb[18].mxu0  ;;  %v1376_v25 = vpop.f32.mrb[22].mxu1 }
 0x4cb   :  { %v1336_v37 = vpop.f32.mrb[19].mxu0  ;;  %v1377_v40 = vpop.f32.mrb[23].mxu1 }
 0x4cc   :  { %v1391_v39 = vrot.slane %v1383_v22, %v6102_v61  ;;  %v1398_v45 = vrot.slane %v1384_v30, %v6102_v61 }
 0x4ce   :  { %v1399_v53 = vcombine.low %v1391_v39, %v1398_v45 }
 0x4d0   :  { %v1401_v29 = vadd.f32 %v1399_v53, %v7239_v32 }
 0x4d2   :  { %v4383_v48 = vmul.f32 -1.442695, %v1401_v29  ;;  %v1409_v24 = vrot.slane %v1401_v29, 2  ;;  %v1420_v23 = vrot.slane %v1401_v29, 6  ;;  %v1417_v34 = vrot.slane %v1401_v29, 4 }
 0x4d4   :  { %5093 = vpow2.f32 %v4383_v48  ;;  %v4384_v31 = vmul.f32 -1.442695, %v1409_v24  ;;  %v4385_v47 = vmul.f32 -1.442695, %v1420_v23 }
 0x4d6   :  { %5095 = vpow2.f32 %v4384_v31 }
 0x4d7   :  { %5097 = vpow2.f32 %v4385_v47 }
 0x4de   :  { %v5094_v38 = vpop.eup %5093 }
 0x4df   :  { %v1405_v60 = vadd.f32 1.0, %v5094_v38 }
 0x4e0   :  { %v5096_v54 = vpop.eup %5095 }
 0x4e1   :  { %5099 = vrcp.f32 %v1405_v60  ;;  %v1414_v36 = vadd.f32 1.0, %v5096_v54  ;;  %v5098_v22 = vpop.eup %5097 }
 0x4e2   :  { %5101 = vtanh.f32 %v1417_v34  ;;  %v1425_v35 = vadd.f32 1.0, %v5098_v22 }
 0x4e3   :  { %5103 = vrcp.f32 %v1414_v36 }
 0x4e4   :  { %5105 = vrcp.f32 %v1425_v35  ;;  %v6333_v35 = vld [vmem:[%s7176_s5 + $0x24] ss:$16 sps:$4 sm:$0xff]  }
 0x4eb   :  { %v5100_v30 = vpop.eup %5099 }
 0x4ec   :  { %v5102_v27 = vpop.eup %5101 }
 0x4ed   :  { %v5104_v33 = vpop.eup %5103  ;;  %v1429_v37 = vmul.f32 %v5102_v27, %v5100_v30  ;;  %v6321_v27 = vld [vmem:[%s7176_s5] ss:$16 sps:$4 sm:$0xff]  }
 0x4ee   :  { %v1428_v25 = vmul.f32 %v5104_v33, %v6212_v43  ;;  %v5106_v39 = vpop.eup %5105  ;;  %v6327_v33 = vld [vmem:[%s7176_s5 + $0x8] ss:$16 sps:$4 sm:$0xff]  }
 0x4f0   :  { %v6259_v40 = vadd.f32 %v1429_v37, %v1428_v25  ;;  %v6339_v25 = vld [vmem:[%s7176_s5 + $0x2c] ss:$16 sps:$4 sm:$0xff]   ;;  %v6347_v37 = vld [vmem:[%s7176_s5 + $0x20] ss:$16 sps:$4 sm:$0xff]  }
 0x4f2   :  { %5107 = vtanh.f32 %v6259_v40 }
 0x4fc   :  { %v5108_v45 = vpop.eup %5107 }
 0x4fd   :  { %v1432_v53 = vmul.f32 %v5108_v45, %v5106_v39  ;;  %v6359_v39 = vld [vmem:[%s7176_s5 + $0x44] ss:$16 sps:$4 sm:$0xff]   ;;  %v6365_v45 = vld [vmem:[%s7176_s5 + $0x4c] ss:$16 sps:$4 sm:$0xff]  }
 0x4ff   :  { %1433 = vst.msk [vmem:[#allocation3 + $0x2] sm:$0x1] %vm1144_vm5, %v1432_v53  ;;  %v1438_v32 = vpack.c.bf16 %v1432_v53, %v1432_v53 }
 0x500   :  { %1434 = vst.msk [vmem:[#allocation3 + $0x5] sm:$0x1] %vm1146_vm6, %v1432_v53 }
 0x501   :  { %1435 = vst.msk [vmem:[#allocation3 + $0x9] sm:$0x2] %vm1149_vm7, %v1432_v53  ;;  %1472 = vmatmul.mubr.bf16.vlgmr.msra.gmra.mrb[20].mxu0 %v1438_v32  ;;  %1513 = vmatmul.mubr.bf16.vlgmr.msra.gmra.mrb[24].mxu1 %v1438_v32  ;;  %v6377_v32 = vld [vmem:[%s7176_s5 + $0x48] ss:$16 sps:$4 sm:$0xff]  }
 0x502   :  { %1436 = vst.msk [vmem:[#allocation3 + $0xc] sm:$0x2] %vm1151_vm8, %v1432_v53  ;;  %1582 = vmatpush1.bf16.msra.mxu0 %v5835_v46  ;;  %1623 = vmatpush1.bf16.msra.mxu1 %v5904_v1  ;;  %v6301_v46 = vld [vmem:[%s7176_s5 + $0x4] ss:$16 sps:$4 sm:$0xff]   ;;  %v6371_v53 = vld [vmem:[%s7176_s5 + $0x40] ss:$16 sps:$4 sm:$0xff]  }
 0x503   :  { %1583 = vmatprep.subr.bf16.mxu0 %v5846_v49  ;;  %1624 = vmatprep.subr.bf16.mxu1 %v5910_v2 }
 0x504   :  { %1613 = vmatprep.mubr.bf16.mxu0 %v7233_v42  ;;  %1654 = vmatprep.mubr.bf16.mxu1 %v7233_v42 }
 0x506   :  { %1584 = vmatpush1.bf16.msra.mxu0 %v5855_v52  ;;  %1625 = vmatpush1.bf16.msra.mxu1 %v5929_v5 }
 0x507   :  { %1585 = vmatprep.subr.bf16.mxu0 %v5867_v55  ;;  %1626 = vmatprep.subr.bf16.mxu1 %v5936_v6 }
 0x50a   :  { %1586 = vmatpush1.bf16.msra.mxu0 %v5874_v58  ;;  %1627 = vmatpush1.bf16.msra.mxu1 %v5954_v9 }
 0x50b   :  { %1587 = vmatprep.subr.bf16.mxu0 %v5880_v59  ;;  %1628 = vmatprep.subr.bf16.mxu1 %v5960_v10 }
 0x50e   :  { %1588 = vmatpush1.bf16.msra.mxu0 %v5893_v62  ;;  %1629 = vmatpush1.bf16.msra.mxu1 %v5978_v13 }
 0x50f   :  { %1589 = vmatprep.subr.bf16.mxu0 %v5899_v63  ;;  %1630 = vmatprep.subr.bf16.mxu1 %v5984_v14 }
 0x512   :  { %1590 = vmatpush1.bf16.msra.mxu0 %v5916_v3  ;;  %1631 = vmatpush1.bf16.msra.mxu1 %v5997_v16 }
 0x513   :  { %1591 = vmatprep.subr.bf16.mxu0 %v5922_v4  ;;  %1632 = vmatprep.subr.bf16.mxu1 %v6003_v17 }
 0x516   :  { %1592 = vmatpush1.bf16.msra.mxu0 %v5942_v7  ;;  %1633 = vmatpush1.bf16.msra.mxu1 %v6011_v18  ;;  %v7240_v7 = vcombine.high %v6125_v0, %v6155_v56 }
 0x517   :  { %1593 = vmatprep.subr.bf16.mxu0 %v5948_v8  ;;  %1634 = vmatprep.subr.bf16.mxu1 %v6018_v19 }
 0x51a   :  { %1594 = vmatpush1.bf16.msra.mxu0 %v5966_v11  ;;  %1635 = vmatpush1.bf16.msra.mxu1 %v6027_v20 }
 0x51b   :  { %1595 = vmatprep.subr.bf16.mxu0 %v5972_v12  ;;  %1636 = vmatprep.subr.bf16.mxu1 %v7234_v44 }
 0x51e   :  { %1596 = vmatpush1.bf16.msra.mxu0 %v7235_v51  ;;  %1637 = vmatpush1.bf16.msra.mxu1 %v7236_v50 }
 0x51f   :  { %1723 = vmatprep.subr.bf16.mxu0 %v6301_v46  ;;  %1764 = vmatprep.subr.bf16.mxu1 %v7238_v57 }
 0x5d4   :  { %v1473_v49 = vpop.f32.mrb[20].mxu0  ;;  %v1514_v52 = vpop.f32.mrb[24].mxu1 }
 0x5d5   :  { %v1475_v55 = vpop.f32.mrb[21].mxu0  ;;  %v1516_v58 = vpop.f32.mrb[25].mxu1 }
 0x5d6   :  { %v1525_v59 = vcombine.low %v1473_v49, %v1475_v55  ;;  %v1526_v62 = vcombine.low %v1514_v52, %v1516_v58  ;;  %v1477_v63 = vpop.f32.mrb[22].mxu0  ;;  %v1518_v1 = vpop.f32.mrb[26].mxu1  ;;  %v6383_v49 = vld [vmem:[%s7176_s5 + $0x64] ss:$16 sps:$4 sm:$0xff]   ;;  %v6389_v52 = vld [vmem:[%s7176_s5 + $0x6c] ss:$16 sps:$4 sm:$0xff]  }
 0x5d7   :  { %v1478_v2 = vpop.f32.mrb[23].mxu0  ;;  %v1519_v3 = vpop.f32.mrb[27].mxu1  ;;  %v6395_v55 = vld [vmem:[%s7176_s5 + $0x60] ss:$16 sps:$4 sm:$0xff]   ;;  %v6402_v58 = vld [vmem:[%s7176_s5 + $0x84] ss:$16 sps:$4 sm:$0xff]  }
 0x5d8   :  { %v1533_v4 = vrot.slane %v1525_v59, %v6102_v61  ;;  %v1540_v5 = vrot.slane %v1526_v62, %v6102_v61  ;;  %v6409_v59 = vld [vmem:[%s7176_s5 + $0x80] ss:$16 sps:$4 sm:$0xff]  }
 0x5da   :  { %v1541_v6 = vcombine.low %v1533_v4, %v1540_v5 }
 0x5dc   :  { %v1543_v8 = vadd.f32 %v1541_v6, %v7240_v7 }
 0x5de   :  { %v4386_v9 = vmul.f32 -1.442695, %v1543_v8  ;;  %v1551_v10 = vrot.slane %v1543_v8, 2  ;;  %v1562_v12 = vrot.slane %v1543_v8, 6  ;;  %v1559_v43 = vrot.slane %v1543_v8, 4 }
 0x5e0   :  { %5109 = vpow2.f32 %v4386_v9  ;;  %v4387_v11 = vmul.f32 -1.442695, %v1551_v10  ;;  %v4388_v51 = vmul.f32 -1.442695, %v1562_v12  ;;  %v7241_v10 = vcombine.low %v6106_v28, %v6128_v26 }
 0x5e2   :  { %5111 = vpow2.f32 %v4387_v11 }
 0x5e3   :  { %5113 = vpow2.f32 %v4388_v51 }
 0x5ea   :  { %v5110_v57 = vpop.eup %5109 }
 0x5eb   :  { %v1547_v29 = vadd.f32 1.0, %v5110_v57 }
 0x5ec   :  { %v5112_v48 = vpop.eup %5111 }
 0x5ed   :  { %5115 = vrcp.f32 %v1547_v29  ;;  %v1556_v24 = vadd.f32 1.0, %v5112_v48  ;;  %v5114_v31 = vpop.eup %5113 }
 0x5ee   :  { %5117 = vtanh.f32 %v1559_v43  ;;  %v1567_v47 = vadd.f32 1.0, %v5114_v31 }
 0x5ef   :  { %5119 = vrcp.f32 %v1556_v24 }
 0x5f0   :  { %5121 = vrcp.f32 %v1567_v47 }
 0x5f7   :  { %v5116_v23 = vpop.eup %5115 }
 0x5f8   :  { %v5118_v0 = vpop.eup %5117 }
 0x5f9   :  { %v5120_v56 = vpop.eup %5119  ;;  %v1571_v34 = vmul.f32 %v5118_v0, %v5116_v23 }
 0x5fa   :  { %v1570_v38 = vmul.f32 %v5120_v56, %v6259_v40  ;;  %v5122_v54 = vpop.eup %5121  ;;  %v6353_v40 = vld [vmem:[%s7176_s5 + $0x28] ss:$16 sps:$4 sm:$0xff]  }
 0x5fc   :  { %v6311_v60 = vadd.f32 %v1571_v34, %v1570_v38 }
 0x5fe   :  { %5123 = vtanh.f32 %v6311_v60 }
 0x608   :  { %v5124_v36 = vpop.eup %5123 }
 0x609   :  { %v1574_v22 = vmul.f32 %v5124_v36, %v5122_v54 }
 0x60b   :  { %1575 = vst.msk [vmem:[#allocation3 + $0x3] sm:$0x1] %vm1144_vm5, %v1574_v22  ;;  %v1580_v30 = vpack.c.bf16 %v1574_v22, %v1574_v22 }
 0x60c   :  { %1576 = vst.msk [vmem:[#allocation3 + $0x4] sm:$0x1] %vm1146_vm6, %v1574_v22 }
 0x60d   :  { %1577 = vst.msk [vmem:[#allocation3 + $0xa] sm:$0x2] %vm1149_vm7, %v1574_v22  ;;  %1614 = vmatmul.mubr.bf16.vlgmr.msra.gmra.mrb[24].mxu0 %v1580_v30  ;;  %1655 = vmatmul.mubr.bf16.vlgmr.msra.gmra.mrb[28].mxu1 %v1580_v30 }
 0x60e   :  { %1578 = vst.msk [vmem:[#allocation3 + $0xb] sm:$0x2] %vm1151_vm8, %v1574_v22  ;;  %1724 = vmatpush1.bf16.msra.mxu0 %v6321_v27  ;;  %1765 = vmatpush1.bf16.msra.mxu1 %v6327_v33 }
 0x60f   :  { %1725 = vmatprep.subr.bf16.mxu0 %v6333_v35  ;;  %1766 = vmatprep.subr.bf16.mxu1 %v6339_v25 }
 0x610   :  { %1755 = vmatprep.mubr.bf16.mxu0 %v7233_v42  ;;  %1796 = vmatprep.mubr.bf16.mxu1 %v7233_v42 }
 0x612   :  { %1726 = vmatpush1.bf16.msra.mxu0 %v6347_v37  ;;  %1767 = vmatpush1.bf16.msra.mxu1 %v6353_v40 }
 0x613   :  { %1727 = vmatprep.subr.bf16.mxu0 %v6359_v39  ;;  %1768 = vmatprep.subr.bf16.mxu1 %v6365_v45 }
 0x616   :  { %1728 = vmatpush1.bf16.msra.mxu0 %v6371_v53  ;;  %1769 = vmatpush1.bf16.msra.mxu1 %v6377_v32 }
 0x617   :  { %1729 = vmatprep.subr.bf16.mxu0 %v6383_v49  ;;  %1770 = vmatprep.subr.bf16.mxu1 %v6389_v52 }
 0x61a   :  { %1730 = vmatpush1.bf16.msra.mxu0 %v6395_v55  ;;  %1771 = vmatpush1.bf16.msra.mxu1 %v5978_v13  ;;  %v6416_v13 = vld [vmem:[%s7176_s5 + $0xa4] ss:$16 sps:$4 sm:$0xff]  }
 0x61b   :  { %1731 = vmatprep.subr.bf16.mxu0 %v6402_v58  ;;  %1772 = vmatprep.subr.bf16.mxu1 %v5984_v14  ;;  %v6423_v14 = vld [vmem:[%s7176_s5 + $0xa0] ss:$16 sps:$4 sm:$0xff]  }
 0x61e   :  { %1732 = vmatpush1.bf16.msra.mxu0 %v6409_v59  ;;  %1773 = vmatpush1.bf16.msra.mxu1 %v5997_v16  ;;  %v6430_v16 = vld [vmem:[%s7176_s5 + $0xc4] ss:$16 sps:$4 sm:$0xff]  }
 0x61f   :  { %1733 = vmatprep.subr.bf16.mxu0 %v6416_v13  ;;  %1774 = vmatprep.subr.bf16.mxu1 %v6003_v17  ;;  %v6437_v17 = vld [vmem:[%s7176_s5 + $0xc0] ss:$16 sps:$4 sm:$0xff]  }
 0x622   :  { %1734 = vmatpush1.bf16.msra.mxu0 %v6423_v14  ;;  %1775 = vmatpush1.bf16.msra.mxu1 %v6011_v18  ;;  %v6444_v18 = vld [vmem:[%s7176_s5 + $0xe4] ss:$16 sps:$4 sm:$0xff]  }
 0x623   :  { %1735 = vmatprep.subr.bf16.mxu0 %v6430_v16  ;;  %1776 = vmatprep.subr.bf16.mxu1 %v6018_v19  ;;  %v6451_v19 = vld [vmem:[%s7176_s5 + $0xe0] ss:$16 sps:$4 sm:$0xff]  }
 0x626   :  { %1736 = vmatpush1.bf16.msra.mxu0 %v6437_v17  ;;  %1777 = vmatpush1.bf16.msra.mxu1 %v6027_v20  ;;  %v6459_v20 = vld [vmem:[%s7176_s5 + $0xc] ss:$16 sps:$4 sm:$0xff]  }
 0x627   :  { %1737 = vmatprep.subr.bf16.mxu0 %v6444_v18  ;;  %1778 = vmatprep.subr.bf16.mxu1 %v7234_v44 }
 0x62a   :  { %1738 = vmatpush1.bf16.msra.mxu0 %v6451_v19  ;;  %1779 = vmatpush1.bf16.msra.mxu1 %v7236_v50 }
 0x62b   :  { %1865 = vmatprep.subr.bf16.mxu0 %v6301_v46  ;;  %1906 = vmatprep.subr.bf16.mxu1 %v6459_v20 }
 0x6e0   :  { %v1615_v62 = vpop.f32.mrb[24].mxu0  ;;  %v1656_v44 = vpop.f32.mrb[28].mxu1 }
 0x6e1   :  { %v1617_v63 = vpop.f32.mrb[25].mxu0  ;;  %v1658_v1 = vpop.f32.mrb[29].mxu1 }
 0x6e2   :  { %v1667_v2 = vcombine.low %v1615_v62, %v1617_v63  ;;  %v1668_v3 = vcombine.low %v1656_v44, %v1658_v1  ;;  %v1619_v4 = vpop.f32.mrb[26].mxu0  ;;  %v1660_v5 = vpop.f32.mrb[30].mxu1  ;;  %v6500_v63 = vld [vmem:[%s7176_s5 + $0x8c] ss:$16 sps:$4 sm:$0xff]   ;;  %v6507_v1 = vld [vmem:[%s7176_s5 + $0x88] ss:$16 sps:$4 sm:$0xff]  }
 0x6e3   :  { %v1620_v6 = vpop.f32.mrb[27].mxu0  ;;  %v1661_v7 = vpop.f32.mrb[31].mxu1  ;;  %v6528_v4 = vld [vmem:[%s7176_s5 + $0xcc] ss:$16 sps:$4 sm:$0xff]   ;;  %v6535_v5 = vld [vmem:[%s7176_s5 + $0xc8] ss:$16 sps:$4 sm:$0xff]  }
 0x6e4   :  { %v1675_v50 = vrot.slane %v1667_v2, %v6102_v61  ;;  %v1682_v8 = vrot.slane %v1668_v3, %v6102_v61  ;;  %v6514_v2 = vld [vmem:[%s7176_s5 + $0xac] ss:$16 sps:$4 sm:$0xff]   ;;  %v6521_v3 = vld [vmem:[%s7176_s5 + $0xa8] ss:$16 sps:$4 sm:$0xff]  }
 0x6e5   :  { %v6542_v6 = vld [vmem:[%s7176_s5 + $0xec] ss:$16 sps:$4 sm:$0xff]   ;;  %v6549_v7 = vld [vmem:[%s7176_s5 + $0xe8] ss:$16 sps:$4 sm:$0xff]  }
 0x6e6   :  { %v1683_v9 = vcombine.low %v1675_v50, %v1682_v8 }
 0x6e8   :  { %v1685_v11 = vadd.f32 %v1683_v9, %v7241_v10 }
 0x6ea   :  { %v4389_v12 = vmul.f32 -1.442695, %v1685_v11  ;;  %v1693_v51 = vrot.slane %v1685_v11, 2  ;;  %v1704_v43 = vrot.slane %v1685_v11, 6  ;;  %v1701_v24 = vrot.slane %v1685_v11, 4 }
 0x6ec   :  { %5125 = vpow2.f32 %v4389_v12  ;;  %v4390_v57 = vmul.f32 -1.442695, %v1693_v51  ;;  %v4391_v29 = vmul.f32 -1.442695, %v1704_v43 }
 0x6ee   :  { %5127 = vpow2.f32 %v4390_v57 }
 0x6ef   :  { %5129 = vpow2.f32 %v4391_v29 }
 0x6f6   :  { %v5126_v48 = vpop.eup %5125 }
 0x6f7   :  { %v1689_v31 = vadd.f32 1.0, %v5126_v48 }
 0x6f8   :  { %v5128_v23 = vpop.eup %5127 }
 0x6f9   :  { %5131 = vrcp.f32 %v1689_v31  ;;  %v1698_v0 = vadd.f32 1.0, %v5128_v23  ;;  %v5130_v56 = vpop.eup %5129 }
 0x6fa   :  { %5133 = vtanh.f32 %v1701_v24  ;;  %v1709_v38 = vadd.f32 1.0, %v5130_v56 }
 0x6fb   :  { %5135 = vrcp.f32 %v1698_v0 }
 0x6fc   :  { %5137 = vrcp.f32 %v1709_v38 }
 0x703   :  { %v5132_v47 = vpop.eup %5131 }
 0x704   :  { %v5134_v28 = vpop.eup %5133 }
 0x705   :  { %v5136_v26 = vpop.eup %5135  ;;  %v1713_v54 = vmul.f32 %v5134_v28, %v5132_v47 }
 0x706   :  { %v1712_v34 = vmul.f32 %v5136_v26, %v6311_v60  ;;  %v5138_v22 = vpop.eup %5137  ;;  %v6493_v60 = vld [vmem:[%s7176_s5 + $0x68] ss:$16 sps:$4 sm:$0xff]  }
 0x708   :  { %v6468_v36 = vadd.f32 %v1713_v54, %v1712_v34 }
 0x70a   :  { %5139 = vtanh.f32 %v6468_v36 }
 0x714   :  { %v5140_v30 = vpop.eup %5139 }
 0x715   :  { %v1716_v62 = vmul.f32 %v5140_v30, %v5138_v22 }
 0x717   :  { %1717 = vst.msk [vmem:[#allocation3 + $0x4] sm:$0x1] %vm1144_vm5, %v1716_v62  ;;  %v1722_v44 = vpack.c.bf16 %v1716_v62, %v1716_v62 }
 0x718   :  { %1718 = vst.msk [vmem:[#allocation3 + $0x3] sm:$0x1] %vm1146_vm6, %v1716_v62 }
 0x719   :  { %1719 = vst.msk [vmem:[#allocation3 + $0xb] sm:$0x2] %vm1149_vm7, %v1716_v62  ;;  %1756 = vmatmul.mubr.bf16.vlgmr.msra.gmra.mrb[28].mxu0 %v1722_v44  ;;  %1797 = vmatmul.mubr.bf16.vlgmr.msra.gmra.mrb[32].mxu1 %v1722_v44 }
 0x71a   :  { %1720 = vst.msk [vmem:[#allocation3 + $0xa] sm:$0x2] %vm1151_vm8, %v1716_v62  ;;  %1866 = vmatpush1.bf16.msra.mxu0 %v6321_v27  ;;  %1907 = vmatpush1.bf16.msra.mxu1 %v6327_v33 }
 0x71b   :  { %1867 = vmatprep.subr.bf16.mxu0 %v6333_v35  ;;  %1908 = vmatprep.subr.bf16.mxu1 %v6339_v25 }
 0x71c   :  { %1897 = vmatprep.mubr.bf16.mxu0 %v7233_v42  ;;  %1938 = vmatprep.mubr.bf16.mxu1 %v7233_v42 }
 0x71e   :  { %1868 = vmatpush1.bf16.msra.mxu0 %v6347_v37  ;;  %1909 = vmatpush1.bf16.msra.mxu1 %v6353_v40 }
 0x71f   :  { %1869 = vmatprep.subr.bf16.mxu0 %v6359_v39  ;;  %1910 = vmatprep.subr.bf16.mxu1 %v6365_v45 }
 0x722   :  { %1870 = vmatpush1.bf16.msra.mxu0 %v6371_v53  ;;  %1911 = vmatpush1.bf16.msra.mxu1 %v6377_v32 }
 0x723   :  { %1871 = vmatprep.subr.bf16.mxu0 %v6383_v49  ;;  %1912 = vmatprep.subr.bf16.mxu1 %v6389_v52 }
 0x726   :  { %1872 = vmatpush1.bf16.msra.mxu0 %v6395_v55  ;;  %1913 = vmatpush1.bf16.msra.mxu1 %v6493_v60 }
 0x727   :  { %1873 = vmatprep.subr.bf16.mxu0 %v6402_v58  ;;  %1914 = vmatprep.subr.bf16.mxu1 %v6500_v63 }
 0x72a   :  { %1874 = vmatpush1.bf16.msra.mxu0 %v6409_v59  ;;  %1915 = vmatpush1.bf16.msra.mxu1 %v6507_v1 }
 0x72b   :  { %1875 = vmatprep.subr.bf16.mxu0 %v6416_v13  ;;  %1916 = vmatprep.subr.bf16.mxu1 %v6514_v2 }
 0x72e   :  { %1876 = vmatpush1.bf16.msra.mxu0 %v6423_v14  ;;  %1917 = vmatpush1.bf16.msra.mxu1 %v6521_v3 }
 0x72f   :  { %1877 = vmatprep.subr.bf16.mxu0 %v6430_v16  ;;  %1918 = vmatprep.subr.bf16.mxu1 %v6528_v4 }
 0x732   :  { %1878 = vmatpush1.bf16.msra.mxu0 %v6437_v17  ;;  %1919 = vmatpush1.bf16.msra.mxu1 %v6535_v5 }
 0x733   :  { %1879 = vmatprep.subr.bf16.mxu0 %v6444_v18  ;;  %1920 = vmatprep.subr.bf16.mxu1 %v6542_v6 }
 0x736   :  { %1880 = vmatpush1.bf16.msra.mxu0 %v6451_v19  ;;  %1921 = vmatpush1.bf16.msra.mxu1 %v6549_v7 }
 0x737   :  { %2007 = vmatprep.subr.bf16.mxu0 %v6301_v46  ;;  %2048 = vmatprep.subr.bf16.mxu1 %v6459_v20  ;;  %v7242_v46 = vcombine.high %v6109_v21, %v6131_v41 }
 0x7ec   :  { %v1757_v50 = vpop.f32.mrb[28].mxu0  ;;  %v1798_v8 = vpop.f32.mrb[32].mxu1 }
 0x7ed   :  { %v1759_v9 = vpop.f32.mrb[29].mxu0  ;;  %v1800_v10 = vpop.f32.mrb[33].mxu1 }
 0x7ee   :  { %v1809_v11 = vcombine.low %v1757_v50, %v1759_v9  ;;  %v1810_v12 = vcombine.low %v1798_v8, %v1800_v10  ;;  %v1761_v51 = vpop.f32.mrb[30].mxu0  ;;  %v1802_v57 = vpop.f32.mrb[34].mxu1 }
 0x7ef   :  { %v1762_v43 = vpop.f32.mrb[31].mxu0  ;;  %v1803_v29 = vpop.f32.mrb[35].mxu1 }
 0x7f0   :  { %v1817_v48 = vrot.slane %v1809_v11, %v6102_v61  ;;  %v1824_v24 = vrot.slane %v1810_v12, %v6102_v61 }
 0x7f2   :  { %v1825_v31 = vcombine.low %v1817_v48, %v1824_v24 }
 0x7f4   :  { %v1827_v23 = vadd.f32 %v1825_v31, %v7242_v46 }
 0x7f6   :  { %v4392_v20 = vmul.f32 -1.442695, %v1827_v23  ;;  %v1835_v0 = vrot.slane %v1827_v23, 2  ;;  %v1846_v47 = vrot.slane %v1827_v23, 6  ;;  %v1843_v38 = vrot.slane %v1827_v23, 4 }
 0x7f7   :  { %v6616_v23 = vld [vmem:[#allocation10 + $0x4] ss:$8 sps:$4 sm:$0xff]  }
 0x7f8   :  { %5141 = vpow2.f32 %v4392_v20  ;;  %v4393_v56 = vmul.f32 -1.442695, %v1835_v0  ;;  %v4394_v28 = vmul.f32 -1.442695, %v1846_v47  ;;  %v6618_v20 = vld [vmem:[#allocation10] ss:$8 sps:$4 sm:$0xff]  }
 0x7f9   :  { %v6622_v0 = vld [vmem:[#allocation10 + $0x14] ss:$8 sps:$4 sm:$0xff]   ;;  %v6629_v47 = vld [vmem:[%s7177_s6] sm:$0xff]  }
 0x7fa   :  { %5143 = vpow2.f32 %v4393_v56  ;;  %v6624_v56 = vld [vmem:[#allocation10 + $0x10] ss:$8 sps:$4 sm:$0xff]  }
 0x7fb   :  { %5145 = vpow2.f32 %v4394_v28  ;;  %v6634_v28 = vld [vmem:[#allocation10 + $0x24] ss:$8 sps:$4 sm:$0xff]  }
 0x802   :  { %v5142_v26 = vpop.eup %5141 }
 0x803   :  { %v1831_v34 = vadd.f32 1.0, %v5142_v26  ;;  %v6637_v26 = vld [vmem:[#allocation10 + $0x20] ss:$8 sps:$4 sm:$0xff]  }
 0x804   :  { %v5144_v54 = vpop.eup %5143 }
 0x805   :  { %5147 = vrcp.f32 %v1831_v34  ;;  %v1840_v22 = vadd.f32 1.0, %v5144_v54  ;;  %v5146_v30 = vpop.eup %5145  ;;  %v6647_v34 = vld [vmem:[#allocation10 + $0x34] ss:$8 sps:$4 sm:$0xff]   ;;  %v6650_v54 = vld [vmem:[#allocation10 + $0x30] ss:$8 sps:$4 sm:$0xff]  }
 0x806   :  { %5149 = vtanh.f32 %v1843_v38  ;;  %v1851_v44 = vadd.f32 1.0, %v5146_v30  ;;  %v6642_v38 = vld [vmem:[%s7177_s6 + $0x8] sm:$0xff]  }
 0x807   :  { %5151 = vrcp.f32 %v1840_v22  ;;  %v6655_v22 = vld [vmem:[%s7177_s6 + $0x10] sm:$0xff]   ;;  %v6660_v30 = vld [vmem:[#allocation10 + $0x44] ss:$8 sps:$4 sm:$0xff]  }
 0x808   :  { %5153 = vrcp.f32 %v1851_v44  ;;  %v6676_v44 = vld [vmem:[#allocation10 + $0x50] ss:$8 sps:$4 sm:$0xff]  }
 0x80f   :  { %v5148_v62 = vpop.eup %5147 }
 0x810   :  { %v5150_v21 = vpop.eup %5149 }
 0x811   :  { %v5152_v41 = vpop.eup %5151  ;;  %v1855_v8 = vmul.f32 %v5150_v21, %v5148_v62  ;;  %v6663_v62 = vld [vmem:[#allocation10 + $0x40] ss:$8 sps:$4 sm:$0xff]  }
 0x812   :  { %v1854_v50 = vmul.f32 %v5152_v41, %v6468_v36  ;;  %v5154_v10 = vpop.eup %5153  ;;  %v6668_v21 = vld [vmem:[%s7177_s6 + $0x18] sm:$0xff]  }
 0x813   :  { %v6673_v41 = vld [vmem:[#allocation10 + $0x54] ss:$8 sps:$4 sm:$0xff]  }
 0x814   :  { %v6560_v9 = vadd.f32 %v1855_v8, %v1854_v50  ;;  %v6681_v50 = vld [vmem:[%s7177_s6 + $0x20] sm:$0xff]  }
 0x815   :  { %v6686_v8 = vld [vmem:[#allocation10 + $0x60] ss:$8 sps:$4 sm:$0xff]  }
 0x816   :  { %5155 = vtanh.f32 %v6560_v9 }
 0x820   :  { %v5156_v11 = vpop.eup %5155 }
 0x821   :  { %v1858_v12 = vmul.f32 %v5156_v11, %v5154_v10  ;;  %v6693_v10 = vld [vmem:[%s7177_s6 + $0x28] sm:$0xff]  }
 0x822   :  { %v6696_v11 = vld [vmem:[#allocation10 + $0x74] ss:$8 sps:$4 sm:$0xff]  }
 0x823   :  { %1859 = vst.msk [vmem:[#allocation3 + $0x5] sm:$0x1] %vm1144_vm5, %v1858_v12  ;;  %v1864_v51 = vpack.c.bf16 %v1858_v12, %v1858_v12 }
 0x824   :  { %1860 = vst.msk [vmem:[#allocation3 + $0x2] sm:$0x1] %vm1146_vm6, %v1858_v12 }
 0x825   :  { %1861 = vst.msk [vmem:[#allocation3 + $0xc] sm:$0x2] %vm1149_vm7, %v1858_v12  ;;  %1898 = vmatmul.mubr.bf16.vlgmr.msra.gmra.mrb[32].mxu0 %v1864_v51  ;;  %1939 = vmatmul.mubr.bf16.vlgmr.msra.gmra.mrb[36].mxu1 %v1864_v51  ;;  %v6706_v51 = vld [vmem:[%s7177_s6 + $0x30] sm:$0xff]  }
 0x826   :  { %1862 = vst.msk [vmem:[#allocation3 + $0x9] sm:$0x2] %vm1151_vm8, %v1858_v12  ;;  %2008 = vmatpush1.bf16.msra.mxu0 %v6321_v27  ;;  %2049 = vmatpush1.bf16.msra.mxu1 %v6327_v33  ;;  %v7243_v27 = vmov 0.0   ;;  %v6701_v12 = vld [vmem:[#allocation10 + $0x70] ss:$8 sps:$4 sm:$0xff]  }
 0x827   :  { %2009 = vmatprep.subr.bf16.mxu0 %v6333_v35  ;;  %2050 = vmatprep.subr.bf16.mxu1 %v6339_v25 }
 0x828   :  { %2039 = vmatprep.mubr.bf16.mxu0 %v7233_v42  ;;  %2080 = vmatprep.mubr.bf16.mxu1 %v7233_v42 }
 0x82a   :  { %2010 = vmatpush1.bf16.msra.mxu0 %v6347_v37  ;;  %2051 = vmatpush1.bf16.msra.mxu1 %v6353_v40 }
 0x82b   :  { %2011 = vmatprep.subr.bf16.mxu0 %v6359_v39  ;;  %2052 = vmatprep.subr.bf16.mxu1 %v6365_v45 }
 0x82e   :  { %2012 = vmatpush1.bf16.msra.mxu0 %v6371_v53  ;;  %2053 = vmatpush1.bf16.msra.mxu1 %v6377_v32 }
 0x82f   :  { %2013 = vmatprep.subr.bf16.mxu0 %v6383_v49  ;;  %2054 = vmatprep.subr.bf16.mxu1 %v6389_v52 }
 0x832   :  { %2014 = vmatpush1.bf16.msra.mxu0 %v6395_v55  ;;  %2055 = vmatpush1.bf16.msra.mxu1 %v6493_v60 }
 0x833   :  { %2015 = vmatprep.subr.bf16.mxu0 %v6402_v58  ;;  %2056 = vmatprep.subr.bf16.mxu1 %v6500_v63 }
 0x836   :  { %2016 = vmatpush1.bf16.msra.mxu0 %v6409_v59  ;;  %2057 = vmatpush1.bf16.msra.mxu1 %v6507_v1  ;;  %v7244_v59 = vld [vmem:[#allocation38_spill] sm:$0xff] }
 0x837   :  { %2017 = vmatprep.subr.bf16.mxu0 %v6416_v13  ;;  %2058 = vmatprep.subr.bf16.mxu1 %v6514_v2  ;;  %v7245_v13 = vcombine.low %v6112_v15, %v7244_v59 }
 0x83a   :  { %2018 = vmatpush1.bf16.msra.mxu0 %v6423_v14  ;;  %2059 = vmatpush1.bf16.msra.mxu1 %v6521_v3 }
 0x83b   :  { %2019 = vmatprep.subr.bf16.mxu0 %v6430_v16  ;;  %2060 = vmatprep.subr.bf16.mxu1 %v6528_v4 }
 0x83e   :  { %2020 = vmatpush1.bf16.msra.mxu0 %v6437_v17  ;;  %2061 = vmatpush1.bf16.msra.mxu1 %v6535_v5 }
 0x83f   :  { %2021 = vmatprep.subr.bf16.mxu0 %v6444_v18  ;;  %2062 = vmatprep.subr.bf16.mxu1 %v6542_v6 }
 0x842   :  { %2022 = vmatpush1.bf16.msra.mxu0 %v6451_v19  ;;  %2063 = vmatpush1.bf16.msra.mxu1 %v6549_v7 }
 0x843   :  { %4603 = vmatprep.subr.bf16.mxu1 %v7243_v27  ;;  %2290 = vmatprep.subr.bf16.mxu0 %v6616_v23 }
 0x8f8   :  { %v1899_v33 = vpop.f32.mrb[32].mxu0  ;;  %v1940_v35 = vpop.f32.mrb[36].mxu1 }
 0x8f9   :  { %v1901_v25 = vpop.f32.mrb[33].mxu0  ;;  %v1942_v37 = vpop.f32.mrb[37].mxu1 }
 0x8fa   :  { %v1951_v40 = vcombine.low %v1899_v33, %v1901_v25  ;;  %v1952_v39 = vcombine.low %v1940_v35, %v1942_v37  ;;  %v1903_v45 = vpop.f32.mrb[34].mxu0  ;;  %v1944_v53 = vpop.f32.mrb[38].mxu1  ;;  %v6717_v33 = vld [vmem:[%s7177_s6 + $0x38] sm:$0xff]  }
 0x8fb   :  { %v1904_v32 = vpop.f32.mrb[35].mxu0  ;;  %v1945_v49 = vpop.f32.mrb[39].mxu1 }
 0x8fc   :  { %v1959_v52 = vrot.slane %v1951_v40, %v6102_v61  ;;  %v1966_v55 = vrot.slane %v1952_v39, %v6102_v61 }
 0x8fe   :  { %v1967_v58 = vcombine.low %v1959_v52, %v1966_v55 }
 0x900   :  { %v1969_v14 = vadd.f32 %v1967_v58, %v7245_v13  ;;  %v7246_v13 = vld [vmem:[#allocation37_spill] sm:$0xff] }
 0x902   :  { %v4395_v16 = vmul.f32 -1.442695, %v1969_v14  ;;  %v1977_v17 = vrot.slane %v1969_v14, 2  ;;  %v1988_v19 = vrot.slane %v1969_v14, 6  ;;  %v1985_v63 = vrot.slane %v1969_v14, 4  ;;  %v7247_v14 = vld [vmem:[#allocation39_spill] sm:$0xff] }
 0x904   :  { %5157 = vpow2.f32 %v4395_v16  ;;  %v4396_v18 = vmul.f32 -1.442695, %v1977_v17  ;;  %v4397_v36 = vmul.f32 -1.442695, %v1988_v19  ;;  %v7248_v16 = vcombine.high %v7246_v13, %v7247_v14 }
 0x906   :  { %5159 = vpow2.f32 %v4396_v18 }
 0x907   :  { %5161 = vpow2.f32 %v4397_v36 }
 0x90e   :  { %v5158_v60 = vpop.eup %5157 }
 0x90f   :  { %v1973_v1 = vadd.f32 1.0, %v5158_v60 }
 0x910   :  { %v5160_v2 = vpop.eup %5159 }
 0x911   :  { %5163 = vrcp.f32 %v1973_v1  ;;  %v1982_v3 = vadd.f32 1.0, %v5160_v2  ;;  %v5162_v4 = vpop.eup %5161 }
 0x912   :  { %5165 = vtanh.f32 %v1985_v63  ;;  %v1993_v7 = vadd.f32 1.0, %v5162_v4 }
 0x913   :  { %5167 = vrcp.f32 %v1982_v3 }
 0x914   :  { %5169 = vrcp.f32 %v1993_v7 }
 0x91b   :  { %v5164_v5 = vpop.eup %5163 }
 0x91c   :  { %v5166_v15 = vpop.eup %5165 }
 0x91d   :  { %v5168_v6 = vpop.eup %5167  ;;  %v1997_v43 = vmul.f32 %v5166_v15, %v5164_v5 }
 0x91e   :  { %v1996_v57 = vmul.f32 %v5168_v6, %v6560_v9  ;;  %v5170_v48 = vpop.eup %5169  ;;  %v6688_v9 = vld [vmem:[#allocation10 + $0x64] ss:$8 sps:$4 sm:$0xff]  }
 0x920   :  { %v6606_v29 = vadd.f32 %v1997_v43, %v1996_v57 }
 0x922   :  { %5171 = vtanh.f32 %v6606_v29 }
 0x92c   :  { %v5172_v24 = vpop.eup %5171 }
 0x92d   :  { %v2000_v31 = vmul.f32 %v5172_v24, %v5170_v48 }
 0x92f   :  { %2001 = vst.msk [vmem:[#allocation3 + $0x6] sm:$0x1] %vm1144_vm5, %v2000_v31  ;;  %v2006_v46 = vpack.c.bf16 %v2000_v31, %v2000_v31 }
 0x930   :  { %2002 = vst.msk [vmem:[#allocation3 + $0x1] sm:$0x1] %vm1146_vm6, %v2000_v31 }
 0x931   :  { %2003 = vst.msk [vmem:[#allocation3 + $0xd] sm:$0x2] %vm1149_vm7, %v2000_v31  ;;  %2040 = vmatmul.mubr.bf16.vlgmr.msra.gmra.mrb[36].mxu0 %v2006_v46  ;;  %2081 = vmatmul.mubr.bf16.vlgmr.msra.gmra.mrb[40].mxu1 %v2006_v46 }
 0x932   :  { %2004 = vst.msk [vmem:[#allocation3 + $0x8] sm:$0x2] %vm1151_vm8, %v2000_v31  ;;  %2322 = vmatprep.mubr.bf16.mxu0 %v7233_v42  ;;  %4619 = vmatprep.mubr.msk.bf16.mxu1 %vm5528_vm0, %v7243_v27 }
 0x933   :  { %2291 = vmatpush1.bf16.msra.mxu0 %v6618_v20  ;;  %4604 = vmatpush3.bf16.msra.mxu1 %v6629_v47 }
 0x934   :  { %2292 = vmatprep.subr.bf16.mxu0 %v6622_v0  ;;  %4605 = vmatprep.subr.bf16.mxu1 %v7243_v27 }
 0x937   :  { %2293 = vmatpush1.bf16.msra.mxu0 %v6624_v56  ;;  %4606 = vmatpush3.bf16.msra.mxu1 %v6642_v38 }
 0x938   :  { %2294 = vmatprep.subr.bf16.mxu0 %v6634_v28  ;;  %4607 = vmatprep.subr.bf16.mxu1 %v7243_v27 }
 0x93b   :  { %2295 = vmatpush1.bf16.msra.mxu0 %v6637_v26  ;;  %4608 = vmatpush3.bf16.msra.mxu1 %v6655_v22 }
 0x93c   :  { %2296 = vmatprep.subr.bf16.mxu0 %v6647_v34  ;;  %4609 = vmatprep.subr.bf16.mxu1 %v7243_v27 }
 0x93f   :  { %2297 = vmatpush1.bf16.msra.mxu0 %v6650_v54  ;;  %4610 = vmatpush3.bf16.msra.mxu1 %v6668_v21 }
 0x940   :  { %2298 = vmatprep.subr.bf16.mxu0 %v6660_v30  ;;  %4611 = vmatprep.subr.bf16.mxu1 %v7243_v27 }
 0x943   :  { %2299 = vmatpush1.bf16.msra.mxu0 %v6663_v62  ;;  %4612 = vmatpush3.bf16.msra.mxu1 %v6681_v50 }
 0x944   :  { %2300 = vmatprep.subr.bf16.mxu0 %v6673_v41  ;;  %4613 = vmatprep.subr.bf16.mxu1 %v7243_v27 }
 0x947   :  { %2301 = vmatpush1.bf16.msra.mxu0 %v6676_v44  ;;  %4614 = vmatpush3.bf16.msra.mxu1 %v6693_v10 }
 0x948   :  { %2302 = vmatprep.subr.bf16.mxu0 %v6688_v9  ;;  %4615 = vmatprep.subr.bf16.mxu1 %v7243_v27 }
 0x94b   :  { %2303 = vmatpush1.bf16.msra.mxu0 %v6686_v8  ;;  %4616 = vmatpush3.bf16.msra.mxu1 %v6706_v51 }
 0x94c   :  { %2304 = vmatprep.subr.bf16.mxu0 %v6696_v11  ;;  %4617 = vmatprep.subr.bf16.mxu1 %v7243_v27 }
 0x94f   :  { %2305 = vmatpush1.bf16.msra.mxu0 %v6701_v12  ;;  %4618 = vmatpush3.bf16.msra.mxu1 %v6717_v33 }
 0x950   :  { %4623 = vmatprep.subr.bf16.mxu0 %v7243_v27  ;;  %4629 = vmatprep.subr.bf16.mxu1 %v7243_v27 }
 0xa04   :  { %v2041_v35 = vpop.f32.mrb[36].mxu0  ;;  %v2082_v25 = vpop.f32.mrb[40].mxu1 }
 0xa05   :  { %v2043_v37 = vpop.f32.mrb[37].mxu0  ;;  %v2084_v40 = vpop.f32.mrb[41].mxu1 }
 0xa06   :  { %v2093_v39 = vcombine.low %v2041_v35, %v2043_v37  ;;  %v2094_v45 = vcombine.low %v2082_v25, %v2084_v40  ;;  %v2045_v53 = vpop.f32.mrb[38].mxu0  ;;  %v2086_v32 = vpop.f32.mrb[42].mxu1  ;;  %v3101_v25 = vstv %s7183_s12 }
 0xa07   :  { %v2046_v49 = vpop.f32.mrb[39].mxu0  ;;  %v2087_v52 = vpop.f32.mrb[43].mxu1  ;;  %v2198_v32 = vld [vmem:[#allocation11] sm:$0x3] }
 0xa08   :  { %v2101_v55 = vrot.slane %v2093_v39, %v6102_v61  ;;  %v2108_v58 = vrot.slane %v2094_v45, %v6102_v61  ;;  %v7249_v49 = vld [vmem:[#allocation35_spill] sm:$0xff] }
 0xa09   :  { %v2203_v52 = vrot.slane %v2198_v32, %v7249_v49 }
 0xa0a   :  { %v2109_v59 = vcombine.low %v2101_v55, %v2108_v58  ;;  %v7250_v55 = vld [vmem:[#allocation36_spill] sm:$0xff] }
 0xa0b   :  { %v2207_v58 = vrot.slane %v2198_v32, %v7250_v55 }
 0xa0c   :  { %v2111_v17 = vadd.f32 %v2109_v59, %v7248_v16 }
 0xa0e   :  { %v4398_v18 = vmul.f32 -1.442695, %v2111_v17  ;;  %v2119_v19 = vrot.slane %v2111_v17, 2  ;;  %v2130_v60 = vrot.slane %v2111_v17, 6  ;;  %v2127_v2 = vrot.slane %v2111_v17, 4 }
 0xa10   :  { %5173 = vpow2.f32 %v4398_v18  ;;  %v4399_v36 = vmul.f32 -1.442695, %v2119_v19  ;;  %v4400_v63 = vmul.f32 -1.442695, %v2130_v60  ;;  %v2333_v18 = vld [vmem:[#allocation8] sm:$0x1] }
 0xa12   :  { %5175 = vpow2.f32 %v4399_v36 }
 0xa13   :  { %5177 = vpow2.f32 %v4400_v63 }
 0xa1a   :  { %v5174_v1 = vpop.eup %5173 }
 0xa1b   :  { %v2115_v3 = vadd.f32 1.0, %v5174_v1 }
 0xa1c   :  { %v5176_v4 = vpop.eup %5175 }
 0xa1d   :  { %5179 = vrcp.f32 %v2115_v3  ;;  %v2124_v5 = vadd.f32 1.0, %v5176_v4  ;;  %v5178_v61 = vpop.eup %5177 }
 0xa1e   :  { %5181 = vtanh.f32 %v2127_v2  ;;  %v2135_v57 = vadd.f32 1.0, %v5178_v61 }
 0xa1f   :  { %5183 = vrcp.f32 %v2124_v5 }
 0xa20   :  { %5185 = vrcp.f32 %v2135_v57 }
 0xa27   :  { %v5180_v15 = vpop.eup %5179 }
 0xa28   :  { %v5182_v6 = vpop.eup %5181 }
 0xa29   :  { %v5184_v7 = vpop.eup %5183  ;;  %v2139_v48 = vmul.f32 %v5182_v6, %v5180_v15 }
 0xa2a   :  { %v2138_v43 = vmul.f32 %v5184_v7, %v6606_v29  ;;  %v5186_v31 = vpop.eup %5185 }
 0xa2c   :  { %v2140_v24 = vadd.f32 %v2139_v48, %v2138_v43 }
 0xa2e   :  { %5187 = vtanh.f32 %v2140_v24 }
 0xa38   :  { %v5188_v46 = vpop.eup %5187 }
 0xa39   :  { %v2142_v35 = vmul.f32 %v5188_v46, %v5186_v31 }
 0xa3b   :  { %2143 = vst.msk [vmem:[#allocation3 + $0x7] sm:$0x1] %vm1144_vm5, %v2142_v35 }
 0xa3c   :  { %2144 = vst.msk [vmem:[#allocation3] sm:$0x1] %vm1146_vm6, %v2142_v35 }
 0xa3d   :  { %2145 = vst.msk [vmem:[#allocation3 + $0xe] sm:$0x2] %vm1149_vm7, %v2142_v35 }
 0xa3e   :  { %2146 = vst.msk [vmem:[#allocation3 + $0x7] sm:$0x2] %vm1151_vm8, %v2142_v35 }
 0xa43   :  { %v6734_v29 = vld [vmem:[#allocation3] sm:$0xff] }
 0xa44   :  { %v2197_v40 = vpack.c.bf16 %v6734_v29, %v6734_v29 }
 0xa45   :  { %v6736_v37 = vld [vmem:[#allocation3 + $0x8] sm:$0xff] }
 0xa46   :  { %v6745_v39 = vmul.f32 %v6736_v37, %v3101_v25  ;;  %2323 = vmatmul.mubr.bf16.vlgmr.msra.gmra.mrb[40].mxu0 %v2197_v40  ;;  %v2335_v45 = vshrl.u32 %v2197_v40, 16 }
 0xa47   :  { %4625 = vmatprep.mubr.msk.bf16.mxu0 %vm5528_vm0, %v7243_v27 }
 0xa48   :  { %v2337_v53 = vrot.slane %v2335_v45, 3 }
 0xa4a   :  { %4620 = vmatmul.mubr.bf16.vlgmr.msra.gmra.mrb[44].mxu1 %v2337_v53  ;;  %v6779_v53 = vld [vmem:[#allocation13] sm:$0xff]  }
 0xa4b   :  { %4631 = vmatprep.mubr.msk.bf16.mxu1 %vm5528_vm0, %v7243_v27 }
 0xb19   :  { %v2324_v59 = vpop.f32.mrb[40].mxu0 }
 0xb1a   :  { %v2325_v13 = vadd.f32 %v2324_v59, %v2203_v52  ;;  %v2326_v14 = vpop.f32.mrb[41].mxu0 }
 0xb1b   :  { %v2327_v16 = vadd.f32 %v2326_v14, %v2207_v58  ;;  %v2328_v17 = vpop.f32.mrb[42].mxu0 }
 0xb1c   :  { %v6753_v19 = vpack.c.bf16 %v2325_v13, %v2325_v13  ;;  %v2329_v36 = vpop.f32.mrb[43].mxu0 }
 0xb1d   :  { %v6755_v60 = vpack.c.bf16 %v2327_v16, %v2327_v16  ;;  %v2421_v63 = vpop.f32.mrb[44].mxu1 }
 0xb1e   :  { %v2422_v1 = vadd.f32 %v2421_v63, %v2333_v18  ;;  %v4621_v2 = vpop.f32.mrb[45].mxu1  ;;  %2598 = vrot.lane.b32.xlu1 %v6753_v19, %s5532_s21  ;;  %v2433_v3 = vsel %vm408_vm4, %v6753_v19, 0  ;;  %v6796_v63 = vld [vmem:[#allocation13 + $0x8] sm:$0xff]  }
 0xb1f   :  { %v2424_v4 = vpop.f32.mrb[46].mxu1  ;;  %4624 = vmatpush3.bf16.xpose.msra.mxu0 %v2433_v3  ;;  %v2495_v5 = vsel %vm2493_vm9, %v6755_v60, 0 }
 0xb20   :  { %v6763_v61 = vpack.c.bf16 %v2422_v1, %v2422_v1  ;;  %v4622_v15 = vpop.f32.mrb[47].mxu1  ;;  %4630 = vmatpush3.bf16.msra.mxu1 %v2495_v5  ;;  %4635 = vmatprep.subr.bf16.mxu0 %v7243_v27 }
 0xb21   :  { %4643 = vmatprep.subr.bf16.mxu1 %v7243_v27 }
 0xb22   :  { %2595 = vrot.lane.b32.xlu1 %v6763_v61, %s5532_s21 }
 0xb26   :  { %2765 = vrot.lane.b32.xlu1 %v6763_v61, %s5522_s8  ;;  %4626 = vmatmul.mubr.msk.bf16.vlgmr.msra.gmra.mrb[44].mxu0 %vm408_vm4, %v6763_v61 }
 0xb27   :  { %4639 = vmatprep.mubr.msk.bf16.mxu0 %vm5528_vm0, %v7243_v27  ;;  %4636 = vmatpush3.bf16.msra.mxu0 %v6779_v53 }
 0xb28   :  { %4637 = vmatprep.subr.bf16.mxu0 %v7243_v27 }
 0xb2b   :  { %4638 = vmatpush3.bf16.msra.mxu0 %v6796_v63 }
 0xb2c   :  { %4649 = vmatprep.subr.bf16.mxu0 %v7243_v27 }
 0xb90   :  { %v2599_v59 = vpop.permute.xlu1 %2598 }
 0xb91   :  { %v2604_v14 = vsel %vm408_vm4, %v2599_v59, 0 }
 0xb94   :  { %v2596_v17 = vpop.permute.xlu1 %2595 }
 0xb98   :  { %v2766_v36 = vpop.permute.xlu1 %2765 }
 0xbf9   :  { %v2469_v6 = vpop.f32.mrb[44].mxu0 }
 0xbfa   :  { %v2475_v7 = vmul.f32 0.17677669, %v2469_v6  ;;  %v4627_v57 = vpop.f32.mrb[45].mxu0 }
 0xbfb   :  { %v2472_v43 = vpop.f32.mrb[46].mxu0 }
 0xbfc   :  { %v4628_v48 = vpop.f32.mrb[47].mxu0  ;;  %v2477_v24 = vsel %vm2476_vm10, %v2475_v7, -inf }
 0xbfd   :  { %2478 = vmax.xlane.f32.xlu0 %v2477_v24 }
 0xc8a   :  { %v2479_v31 = vpop.xlane.xlu0 %2478 }
 0xc8b   :  { %v2480_v46 = vsub.f32 %v2475_v7, %v2479_v31 }
 0xc8d   :  { %v2481_v35 = vmul.f32 1.442695, %v2480_v46 }
 0xc8f   :  { %5189 = vpow2.f32 %v2481_v35 }
 0xc99   :  { %v5190_v40 = vpop.eup %5189 }
 0xc9a   :  { %v2483_v45 = vsel %vm2476_vm10, %v5190_v40, 0.0 }
 0xc9b   :  { %2484 = vadd.xlane.f32.xlu0 %v2483_v45 }
 0xcb1   :  { %2767 = vrot.lane.b32.xlu0 %v6753_v19, %s5522_s8 }
 0xd28   :  { %v2485_v32 = vpop.xlane.xlu0 %2484 }
 0xd29   :  { %5191 = vrcp.f32 %v2485_v32 }
 0xd2c   :  { %v2768_v16 = vpop.permute.xlu0 %2767 }
 0xd2d   :  { %v2773_v18 = vsel %vm408_vm4, %v2768_v16, 0 }
 0xd33   :  { %v5192_v52 = vpop.eup %5191 }
 0xd34   :  { %v2487_v58 = vmul.f32 %v5192_v52, %v5190_v40 }
 0xd36   :  { %v2488_v13 = vpack.c.bf16 %v2487_v58, %v2487_v58 }
 0xd38   :  { %4632 = vmatmul.mubr.msk.bf16.vlgmr.msra.gmra.mrb[48].mxu1 %vm2489_vm11, %v2488_v13 }
 0xd39   :  { %4644 = vmatpush3.bf16.xpose.msra.mxu1 %v2604_v14  ;;  %4645 = vmatprep.mubr.msk.bf16.mxu1 %vm5528_vm0, %v7243_v27 }
 0xd3a   :  { %4663 = vmatprep.subr.bf16.mxu1 %v7243_v27 }
 0xd40   :  { %4646 = vmatmul.mubr.msk.bf16.vlgmr.msra.gmra.mrb[52].mxu1 %vm408_vm4, %v2596_v17 }
 0xd41   :  { %4664 = vmatpush3.bf16.xpose.msra.mxu1 %v2773_v18  ;;  %4665 = vmatprep.mubr.msk.bf16.mxu1 %vm5528_vm0, %v7243_v27 }
 0xd42   :  { %4669 = vmatprep.subr.bf16.mxu1 %v7243_v27 }
 0xd48   :  { %4666 = vmatmul.mubr.msk.bf16.vlgmr.msra.gmra.mrb[56].mxu1 %vm408_vm4, %v2766_v36 }
 0xd49   :  { %4671 = vmatprep.mubr.msk.bf16.mxu1 %vm5528_vm0, %v7243_v27 }
 0xe0b   :  { %v2531_v1 = vpop.f32.mrb[48].mxu1 }
 0xe0c   :  { %v2537_v2 = vpack.c.bf16 %v2531_v1, %v2531_v1  ;;  %v4633_v3 = vpop.f32.mrb[49].mxu1 }
 0xe0d   :  { %v2534_v4 = vpop.f32.mrb[50].mxu1 }
 0xe0e   :  { %v4634_v5 = vpop.f32.mrb[51].mxu1  ;;  %4640 = vmatmul.mubr.msk.bf16.vlgmr.msra.gmra.mrb[48].mxu0 %vm408_vm4, %v2537_v2 }
 0xe0f   :  { %4651 = vmatprep.mubr.msk.bf16.mxu0 %vm5528_vm0, %v7243_v27 }
 0xe13   :  { %v2640_v15 = vpop.f32.mrb[52].mxu1 }
 0xe14   :  { %v4647_v6 = vpop.f32.mrb[53].mxu1  ;;  %v2646_v40 = vmul.f32 0.17677669, %v2640_v15 }
 0xe15   :  { %v2643_v7 = vpop.f32.mrb[54].mxu1 }
 0xe16   :  { %v4648_v57 = vpop.f32.mrb[55].mxu1  ;;  %v2647_v45 = vsel %vm2476_vm10, %v2646_v40, -inf }
 0xe1b   :  { %v2809_v43 = vpop.f32.mrb[56].mxu1 }
 0xe1c   :  { %v2815_v48 = vmul.f32 0.17677669, %v2809_v43  ;;  %v4667_v24 = vpop.f32.mrb[57].mxu1 }
 0xe1d   :  { %v2812_v31 = vpop.f32.mrb[58].mxu1 }
 0xe1e   :  { %v4668_v46 = vpop.f32.mrb[59].mxu1  ;;  %v2816_v35 = vsel %vm2476_vm10, %v2815_v48, -inf }
 0xe1f   :  { %2817 = vmax.xlane.f32.xlu1 %v2816_v35  ;;  %v6830_v46 = vld [vmem:[#allocation13 + $0x10] sm:$0xff]   ;;  %v6834_v35 = vld [vmem:[#allocation13 + $0x18] sm:$0xff]  }
 0xe30   :  { %2828 = vrot.lane.b32.xlu1 %v6755_v60, %s5522_s8 }
 0xe34   :  { %2933 = vrot.lane.b32.xlu1 %v6763_v61, %s5533_s11 }
 0xe58   :  { %2648 = vmax.xlane.f32.xlu1 %v2647_v45 }
 0xe69   :  { %2660 = vrot.lane.b32.xlu1 %v6755_v60, %s5532_s21 }
 0xeac   :  { %v2818_v32 = vpop.xlane.xlu1 %2817 }
 0xead   :  { %v2819_v52 = vsub.f32 %v2815_v48, %v2818_v32 }
 0xeaf   :  { %v2820_v58 = vmul.f32 1.442695, %v2819_v52 }
 0xeb0   :  { %v2829_v59 = vpop.permute.xlu1 %2828 }
 0xeb1   :  { %5193 = vpow2.f32 %v2820_v58  ;;  %v2834_v13 = vsel %vm2493_vm9, %v2829_v59, 0 }
 0xeb2   :  { %4670 = vmatpush3.bf16.msra.mxu1 %v2834_v13 }
 0xeb3   :  { %4683 = vmatprep.subr.bf16.mxu1 %v7243_v27 }
 0xeb4   :  { %v2934_v16 = vpop.permute.xlu1 %2933 }
 0xebb   :  { %v5194_v14 = vpop.eup %5193 }
 0xebc   :  { %v2822_v61 = vsel %vm2476_vm10, %v5194_v14, 0.0 }
 0xebd   :  { %2823 = vadd.xlane.f32.xlu0 %v2822_v61 }
 0xed3   :  { %2935 = vrot.lane.b32.xlu0 %v6753_v19, %s5533_s11 }
 0xee5   :  { %v2649_v17 = vpop.xlane.xlu1 %2648 }
 0xee6   :  { %v2650_v18 = vsub.f32 %v2646_v40, %v2649_v17 }
 0xee8   :  { %v2651_v36 = vmul.f32 1.442695, %v2650_v18  ;;  %v6839_v18 = vld [vmem:[#allocation13 + $0x20] sm:$0xff]  }
 0xee9   :  { %v2661_v1 = vpop.permute.xlu1 %2660 }
 0xeea   :  { %5195 = vpow2.f32 %v2651_v36  ;;  %v2666_v2 = vsel %vm2493_vm9, %v2661_v1, 0 }
 0xeeb   :  { %4650 = vmatpush3.bf16.msra.mxu0 %v2666_v2 }
 0xeec   :  { %4655 = vmatprep.subr.bf16.mxu0 %v7243_v27 }
 0xef4   :  { %v5196_v3 = vpop.eup %5195 }
 0xef5   :  { %v2653_v4 = vsel %vm2476_vm10, %v5196_v3, 0.0 }
 0xef6   :  { %2654 = vadd.xlane.f32.xlu0 %v2653_v4  ;;  %v6843_v4 = vld [vmem:[#allocation13 + $0x28] sm:$0xff]  }
 0xf4a   :  { %v2824_v5 = vpop.xlane.xlu0 %2823 }
 0xf4b   :  { %5197 = vrcp.f32 %v2824_v5 }
 0xf4e   :  { %v2936_v19 = vpop.permute.xlu0 %2935 }
 0xf4f   :  { %v2941_v57 = vsel %vm408_vm4, %v2936_v19, 0 }
 0xf55   :  { %v5198_v15 = vpop.eup %5197 }
 0xf56   :  { %v2826_v6 = vmul.f32 %v5198_v15, %v5194_v14 }
 0xf58   :  { %v2827_v7 = vpack.c.bf16 %v2826_v6, %v2826_v6 }
 0xf5a   :  { %4672 = vmatmul.mubr.msk.bf16.vlgmr.msra.gmra.mrb[60].mxu1 %vm2489_vm11, %v2827_v7 }
 0xf5b   :  { %4684 = vmatpush3.bf16.xpose.msra.mxu1 %v2941_v57  ;;  %4685 = vmatprep.mubr.msk.bf16.mxu1 %vm5528_vm0, %v7243_v27 }
 0xf5c   :  { %4703 = vmatprep.subr.bf16.mxu1 %v7243_v27 }
 0xf62   :  { %4686 = vmatmul.mubr.msk.bf16.vlgmr.msra.gmra.mrb[64].mxu1 %vm408_vm4, %v2934_v16 }
 0xf63   :  { %4719 = vmatprep.mubr.msk.bf16.mxu1 %vm5528_vm0, %v7243_v27 }
 0xf83   :  { %v2655_v43 = vpop.xlane.xlu0 %2654 }
 0xf84   :  { %5199 = vrcp.f32 %v2655_v43 }
 0xf8e   :  { %v5200_v48 = vpop.eup %5199 }
 0xf8f   :  { %v2657_v24 = vmul.f32 %v5200_v48, %v5196_v3 }
 0xf91   :  { %v2658_v31 = vpack.c.bf16 %v2657_v24, %v2657_v24 }
 0xf93   :  { %4652 = vmatmul.mubr.msk.bf16.vlgmr.msra.gmra.mrb[52].mxu0 %vm2489_vm11, %v2658_v31 }
 0xf94   :  { %4659 = vmatprep.mubr.msk.bf16.mxu0 %vm5528_vm0, %v7243_v27  ;;  %4656 = vmatpush3.bf16.msra.mxu0 %v6830_v46 }
 0xf95   :  { %4657 = vmatprep.subr.bf16.mxu0 %v7243_v27 }
 0xf98   :  { %4658 = vmatpush3.bf16.msra.mxu0 %v6834_v35 }
 0xf99   :  { %4675 = vmatprep.subr.bf16.mxu0 %v7243_v27 }
0x102d   :  { %v2870_v40 = vpop.f32.mrb[60].mxu1 }
0x102e   :  { %v4673_v45 = vpop.f32.mrb[61].mxu1  ;;  %v2876_v5 = vpack.c.bf16 %v2870_v40, %v2870_v40 }
0x102f   :  { %v2873_v32 = vpop.f32.mrb[62].mxu1  ;;  %v6858_v45 = vld [vmem:[#allocation13 + $0x30] sm:$0xff]  }
0x1030   :  { %v4674_v52 = vpop.f32.mrb[63].mxu1 }
0x1035   :  { %v2977_v58 = vpop.f32.mrb[64].mxu1 }
0x1036   :  { %v2983_v59 = vmul.f32 0.17677669, %v2977_v58  ;;  %v4687_v13 = vpop.f32.mrb[65].mxu1 }
0x1037   :  { %v2980_v14 = vpop.f32.mrb[66].mxu1 }
0x1038   :  { %v4688_v61 = vpop.f32.mrb[67].mxu1  ;;  %v2984_v16 = vsel %vm2476_vm10, %v2983_v59, -inf }
0x1039   :  { %2985 = vmax.xlane.f32.xlu0 %v2984_v16  ;;  %v2428_v61 = vld [vmem:[#allocation14] sm:$0x1] }
0x1066   :  { %v2702_v17 = vpop.f32.mrb[52].mxu0 }
0x1067   :  { %v2708_v36 = vpack.c.bf16 %v2702_v17, %v2702_v17  ;;  %v4653_v1 = vpop.f32.mrb[53].mxu0  ;;  %v6874_v17 = vstv %s3103_s24 }
0x1068   :  { %v2705_v2 = vpop.f32.mrb[54].mxu0 }
0x1069   :  { %v4654_v3 = vpop.f32.mrb[55].mxu0  ;;  %4660 = vmatmul.mubr.msk.bf16.vlgmr.msra.gmra.mrb[48].mxu0 %vm408_vm4, %v2708_v36 }
0x106a   :  { %4676 = vmatpush3.bf16.msra.mxu0 %v6839_v18  ;;  %4679 = vmatprep.mubr.msk.bf16.mxu0 %vm5528_vm0, %v7243_v27 }
0x106b   :  { %4677 = vmatprep.subr.bf16.mxu0 %v7243_v27 }
0x106e   :  { %4678 = vmatpush3.bf16.msra.mxu0 %v6843_v4 }
0x106f   :  { %4689 = vmatprep.subr.bf16.mxu0 %v7243_v27 }
0x1075   :  { %4680 = vmatmul.mubr.msk.bf16.vlgmr.msra.gmra.mrb[48].mxu0 %vm408_vm4, %v2876_v5 }
0x1076   :  { %4691 = vmatprep.mubr.msk.bf16.mxu0 %vm5528_vm0, %v7243_v27 }
0x10c6   :  { %v2986_v15 = vpop.xlane.xlu0 %2985 }
0x10c7   :  { %v2987_v6 = vsub.f32 %v2983_v59, %v2986_v15  ;;  %v3102_v15 = vmul.f32 %v3101_v25, %v6734_v29 }
0x10c9   :  { %v2988_v19 = vmul.f32 1.442695, %v2987_v6 }
0x10cb   :  { %5201 = vpow2.f32 %v2988_v19 }
0x10d5   :  { %v5202_v7 = vpop.eup %5201 }
0x10d6   :  { %v2990_v57 = vsel %vm2476_vm10, %v5202_v7, 0.0 }
0x10d7   :  { %2991 = vadd.xlane.f32.xlu0 %v2990_v57  ;;  %v5045_v57 = vld [vmem:[%s7186_s15] sm:$0xff]  }
0x10d8   :  { %4704 = vmatpush3.bf16.msra.mxu1 %v5045_v57 }
0x10d9   :  { %4705 = vmatprep.subr.bf16.mxu1 %v7243_v27 }
0x10ed   :  { %2996 = vrot.lane.b32.xlu0 %v6755_v60, %s5533_s11  ;;  %v6865_v60 = vld [vmem:[#allocation13 + $0x38] sm:$0xff]  }
0x1164   :  { %v2992_v43 = vpop.xlane.xlu0 %2991 }
0x1165   :  { %5203 = vrcp.f32 %v2992_v43  ;;  %v5046_v43 = vld [vmem:[%s7186_s15 + $0x8] sm:$0xff]  }
0x1166   :  { %4706 = vmatpush3.bf16.msra.mxu1 %v5046_v43 }
0x1167   :  { %4707 = vmatprep.subr.bf16.mxu1 %v7243_v27 }
0x1168   :  { %v2997_v48 = vpop.permute.xlu0 %2996 }
0x1169   :  { %v3002_v24 = vsel %vm2493_vm9, %v2997_v48, 0 }
0x116a   :  { %4690 = vmatpush3.bf16.msra.mxu0 %v3002_v24 }
0x116b   :  { %4695 = vmatprep.subr.bf16.mxu0 %v7243_v27 }
0x116f   :  { %v5204_v31 = vpop.eup %5203 }
0x1170   :  { %v2994_v40 = vmul.f32 %v5204_v31, %v5202_v7 }
0x1172   :  { %v2995_v32 = vpack.c.bf16 %v2994_v40, %v2994_v40  ;;  %v5047_v40 = vld [vmem:[%s7186_s15 + $0x10] sm:$0xff]  }
0x1173   :  { %4708 = vmatpush3.bf16.msra.mxu1 %v5047_v40 }
0x1174   :  { %4692 = vmatmul.mubr.msk.bf16.vlgmr.msra.gmra.mrb[56].mxu0 %vm2489_vm11, %v2995_v32  ;;  %4709 = vmatprep.subr.bf16.mxu1 %v7243_v27  ;;  %v5048_v32 = vld [vmem:[%s7186_s15 + $0x18] sm:$0xff]  }
0x1175   :  { %4696 = vmatpush3.bf16.msra.mxu0 %v6858_v45  ;;  %4699 = vmatprep.mubr.msk.bf16.mxu0 %vm5528_vm0, %v7243_v27 }
0x1176   :  { %4697 = vmatprep.subr.bf16.mxu0 %v7243_v27 }
0x1177   :  { %4710 = vmatpush3.bf16.msra.mxu1 %v5048_v32 }
0x1178   :  { %4711 = vmatprep.subr.bf16.mxu1 %v7243_v27 }
0x1179   :  { %4698 = vmatpush3.bf16.msra.mxu0 %v6865_v60 }
0x1247   :  { %v3038_v52 = vpop.f32.mrb[56].mxu0 }
0x1248   :  { %v3044_v58 = vpack.c.bf16 %v3038_v52, %v3038_v52  ;;  %v4693_v59 = vpop.f32.mrb[57].mxu0  ;;  %v5049_v52 = vld [vmem:[%s7186_s15 + $0x20] sm:$0xff]  }
0x1249   :  { %v3041_v13 = vpop.f32.mrb[58].mxu0  ;;  %4712 = vmatpush3.bf16.msra.mxu1 %v5049_v52  ;;  %v5051_v59 = vld [vmem:[%s7186_s15 + $0x30] sm:$0xff]  }
0x124a   :  { %v4694_v14 = vpop.f32.mrb[59].mxu0  ;;  %4700 = vmatmul.mubr.msk.bf16.vlgmr.msra.gmra.mrb[48].mxu0 %vm408_vm4, %v3044_v58  ;;  %4713 = vmatprep.subr.bf16.mxu1 %v7243_v27  ;;  %v5050_v58 = vld [vmem:[%s7186_s15 + $0x28] sm:$0xff]   ;;  %v5052_v13 = vld [vmem:[%s7186_s15 + $0x38] sm:$0xff]  }
0x124b   :  { %4739 = vmatprep.mubr.msk.f32.mxu0 %vm5528_vm0, %v7243_v27  ;;  %v3256_v14 = vld [vmem:[%s7188_s17] sm:$0xff] }
0x124d   :  { %4714 = vmatpush3.bf16.msra.mxu1 %v5050_v58 }
0x124e   :  { %4715 = vmatprep.subr.bf16.mxu1 %v7243_v27 }
0x1251   :  { %4716 = vmatpush3.bf16.msra.mxu1 %v5051_v59 }
0x1252   :  { %4717 = vmatprep.subr.bf16.mxu1 %v7243_v27 }
0x1255   :  { %4718 = vmatpush3.bf16.msra.mxu1 %v5052_v13 }
0x1256   :  { %4742 = vmatprep.subr.bf16.mxu1 %v7243_v27 }
0x131d   :  { %v3094_v16 = vpop.f32.mrb[48].mxu0 }
0x131e   :  { %v4905_v36 = vadd.f32 %v3094_v16, %v2428_v61  ;;  %v4701_v1 = vpop.f32.mrb[49].mxu0  ;;  %v3257_v61 = vld [vmem:[%s7188_s17 + $0x8] sm:$0xff]  ;;  %v3258_v16 = vld [vmem:[%s7188_s17 + $0x10] sm:$0xff] }
0x131f   :  { %v3097_v2 = vpop.f32.mrb[50].mxu0  ;;  %v6927_v1 = vpack.c.bf16 %v3257_v61, %v3256_v14 }
0x1320   :  { %v3105_v3 = vmul.f32 %v4905_v36, %v6874_v17  ;;  %v4702_v5 = vpop.f32.mrb[51].mxu0  ;;  %v5534_v36 = vmov 0.0|0.0   ;;  %v3259_v2 = vld [vmem:[%s7188_s17 + $0x18] sm:$0xff] }
0x1321   :  { %4881 = vmatprep.subr.bf16.mxu0 %v5534_v36  ;;  %v3260_v5 = vld [vmem:[%s7188_s17 + $0x20] sm:$0xff] }
0x1322   :  { %v3110_v6 = vrot.slane %v3105_v3, %v7249_v49  ;;  %4883 = vmatpush3.bf16.msra.mxu0 %v6927_v1  ;;  %v6933_v3 = vpack.c.bf16 %v3259_v2, %v3258_v16 }
0x1323   :  { %4884 = vmatprep.subr.bf16.mxu0 %v5534_v36 }
0x1324   :  { %v3112_v19 = vadd.f32 %v3110_v6, %v3102_v15  ;;  %v3261_v15 = vld [vmem:[%s7188_s17 + $0x28] sm:$0xff] }
0x1325   :  { %v6943_v6 = vpack.c.bf16 %v3261_v15, %v3260_v5 }
0x1326   :  { %v3114_v7 = vsel %vm3113_vm12, %v3112_v19, 0.0  ;;  %4886 = vmatpush3.bf16.msra.mxu0 %v6933_v3 }
0x1327   :  { %3115 = vadd.xlane.f32.xlu1 %v3114_v7  ;;  %4887 = vmatprep.subr.bf16.mxu0 %v5534_v36 }
0x132a   :  { %4889 = vmatpush3.bf16.msra.mxu0 %v6943_v6 }
0x132b   :  { %4890 = vmatprep.subr.bf16.mxu0 %v5534_v36 }
0x13b4   :  { %v3116_v25 = vpop.xlane.xlu1 %3115 }
0x13b5   :  { %v3118_v29 = vmul.f32 0.0078125, %v3116_v25  ;;  %v6948_v25 = vld [vmem:[#allocation16] ss:$0 sm:$0xff] }
0x13b7   :  { %v3119_v48 = vsub.f32 %v3112_v19, %v3118_v29 }
0x13b9   :  { %v3120_v24 = vmul.f32 %v3119_v48, %v3119_v48 }
0x13bb   :  { %v3121_v31 = vsel %vm3113_vm12, %v3120_v24, 0.0  ;;  %v6950_v24 = vld [vmem:[#allocation17] ss:$0 sm:$0xff] }
0x13bc   :  { %3122 = vadd.xlane.f32.xlu0 %v3121_v31 }
0x1449   :  { %v3123_v19 = vpop.xlane.xlu0 %3122 }
0x144a   :  { %v3124_v7 = vmul.f32 0.0078125, %v3123_v19 }
0x144c   :  { %v3125_v57 = vadd.f32 1e-05, %v3124_v7 }
0x144e   :  { %5205 = vrsqrt.f32 %v3125_v57 }
0x1458   :  { %v5206_v43 = vpop.eup %5205 }
0x1459   :  { %v3127_v29 = vmul.f32 %v5206_v43, %v3119_v48 }
0x145b   :  { %v3135_v31 = vmul.f32 %v6948_v25, %v3127_v29 }
0x145d   :  { %v3143_v40 = vadd.f32 %v6950_v24, %v3135_v31 }
0x145f   :  { %v3144_v32 = vpack.c.bf16 %v3143_v40, %v3143_v40 }
0x1461   :  { %v3163_v52 = vshrl.u32 %v3144_v32, 16 }
0x1463   :  { %v3165_v58 = vrot.slane %v3163_v52, 3 }
0x1465   :  { %4720 = vmatmul.mubr.bf16.vlgmr.msra.gmra.mrb[68].mxu1 %v3165_v58 }
0x1466   :  { %4743 = vmatpush3.bf16.msra.mxu1 %v6629_v47  ;;  %4758 = vmatprep.mubr.msk.bf16.mxu1 %vm5528_vm0, %v7243_v27  ;;  %v3342_v47 = vpack.c.bf16 %v6736_v37, %v6736_v37 }
0x1467   :  { %4744 = vmatprep.subr.bf16.mxu1 %v7243_v27 }
0x146a   :  { %4745 = vmatpush3.bf16.msra.mxu1 %v6642_v38  ;;  %v3400_v38 = vshrl.u32 %v3342_v47, 16 }
0x146b   :  { %4746 = vmatprep.subr.bf16.mxu1 %v7243_v27 }
0x146e   :  { %4747 = vmatpush3.bf16.msra.mxu1 %v6655_v22  ;;  %v3402_v22 = vrot.slane %v3400_v38, 3 }
0x146f   :  { %4748 = vmatprep.subr.bf16.mxu1 %v7243_v27 }
0x1472   :  { %4749 = vmatpush3.bf16.msra.mxu1 %v6668_v21  ;;  %v3262_v21 = vld [vmem:[%s7188_s17 + $0x30] sm:$0xff] }
0x1473   :  { %4750 = vmatprep.subr.bf16.mxu1 %v7243_v27 }
0x1476   :  { %4751 = vmatpush3.bf16.msra.mxu1 %v6681_v50  ;;  %v3263_v50 = vld [vmem:[%s7188_s17 + $0x38] sm:$0xff] }
0x1477   :  { %4752 = vmatprep.subr.bf16.mxu1 %v7243_v27 }
0x147a   :  { %4753 = vmatpush3.bf16.msra.mxu1 %v6693_v10  ;;  %v6982_v10 = vpack.c.bf16 %v3263_v50, %v3262_v21 }
0x147b   :  { %4754 = vmatprep.subr.bf16.mxu1 %v7243_v27 }
0x147c   :  { %4892 = vmatpush3.bf16.msra.mxu0 %v6982_v10 }
0x147d   :  { %3355 = vmatprep.subr.bf16.mxu0 %v6616_v23 }
0x147e   :  { %4755 = vmatpush3.bf16.msra.mxu1 %v6706_v51  ;;  %v3161_v51 = vld [vmem:[#allocation19] sm:$0x1] }
0x147f   :  { %4756 = vmatprep.subr.bf16.mxu1 %v7243_v27 }
0x1482   :  { %4757 = vmatpush3.bf16.msra.mxu1 %v6717_v33 }
0x1483   :  { %4768 = vmatprep.subr.bf16.mxu1 %v7243_v27 }
0x1485   :  { %4759 = vmatmul.mubr.bf16.vlgmr.msra.gmra.mrb[72].mxu1 %v3402_v22 }
0x1486   :  { %4770 = vmatprep.mubr.msk.bf16.mxu1 %vm5528_vm0, %v7243_v27 }
0x1538   :  { %v3249_v33 = vpop.f32.mrb[68].mxu1 }
0x1539   :  { %v3250_v37 = vadd.f32 %v3249_v33, %v3161_v51  ;;  %v4721_v48 = vpop.f32.mrb[69].mxu1 }
0x153a   :  { %v3252_v59 = vpop.f32.mrb[70].mxu1 }
0x153b   :  { %v3255_v13 = vmax.f32 %v3250_v37, 0.0  ;;  %v4722_v14 = vpop.f32.mrb[71].mxu1 }
0x153d   :  { %4740 = vmatmul.mubr.msk.f32.vlgmr.msra.gmra.mrb[60].mxu0 %vm3265_vm13, %v3255_v13 }
0x153e   :  { %3356 = vmatpush1.bf16.msra.mxu0 %v6618_v20  ;;  %3387 = vmatprep.mubr.bf16.mxu0 %v7233_v42  ;;  %v3398_v42 = vld [vmem:[#allocation8] sm:$0x1] }
0x153f   :  { %3357 = vmatprep.subr.bf16.mxu0 %v6622_v0 }
0x1542   :  { %3358 = vmatpush1.bf16.msra.mxu0 %v6624_v56 }
0x1543   :  { %3359 = vmatprep.subr.bf16.mxu0 %v6634_v28 }
0x1546   :  { %3360 = vmatpush1.bf16.msra.mxu0 %v6637_v26 }
0x1547   :  { %3361 = vmatprep.subr.bf16.mxu0 %v6647_v34  ;;  %v3264_v34 = vld [vmem:[#allocation20] sm:$0x1] }
0x154a   :  { %3362 = vmatpush1.bf16.msra.mxu0 %v6650_v54 }
0x154b   :  { %3363 = vmatprep.subr.bf16.mxu0 %v6660_v30 }
0x154e   :  { %3364 = vmatpush1.bf16.msra.mxu0 %v6663_v62 }
0x154f   :  { %3365 = vmatprep.subr.bf16.mxu0 %v6673_v41  ;;  %v3343_v41 = vld [vmem:[#allocation11] sm:$0x3] }
0x1552   :  { %3366 = vmatpush1.bf16.msra.mxu0 %v6676_v44  ;;  %v3348_v44 = vrot.slane %v3343_v41, %v7249_v49 }
0x1553   :  { %3367 = vmatprep.subr.bf16.mxu0 %v6688_v9 }
0x1556   :  { %3368 = vmatpush1.bf16.msra.mxu0 %v6686_v8  ;;  %v3352_v8 = vrot.slane %v3343_v41, %v7250_v55 }
0x1557   :  { %3369 = vmatprep.subr.bf16.mxu0 %v6696_v11 }
0x1558   :  { %v3438_v23 = vpop.f32.mrb[72].mxu1 }
0x1559   :  { %v3439_v20 = vadd.f32 %v3438_v23, %v3398_v42  ;;  %v4760_v0 = vpop.f32.mrb[73].mxu1 }
0x155a   :  { %3370 = vmatpush1.bf16.msra.mxu0 %v6701_v12  ;;  %v3441_v56 = vpop.f32.mrb[74].mxu1 }
0x155b   :  { %v7003_v28 = vpack.c.bf16 %v3439_v20, %v3439_v20  ;;  %v4761_v26 = vpop.f32.mrb[75].mxu1  ;;  %4762 = vmatprep.subr.bf16.mxu0 %v7243_v27 }
0x155d   :  { %3388 = vmatmul.mubr.bf16.vlgmr.msra.gmra.mrb[64].mxu0 %v3342_v47  ;;  %3597 = vrot.lane.b32.xlu0 %v7003_v28, %s5532_s21 }
0x155e   :  { %4764 = vmatprep.mubr.msk.bf16.mxu0 %vm5528_vm0, %v7243_v27 }
0x15cf   :  { %v3598_v37 = vpop.permute.xlu0 %3597 }
0x1610   :  { %v3335_v54 = vpop.f32.mrb[60].mxu0 }
0x1611   :  { %v3336_v30 = vadd.f32 %v3335_v54, %v3264_v34  ;;  %v4741_v62 = vpop.f32.mrb[61].mxu0 }
0x1613   :  { %3340 = vst.msk [vmem:[#allocation22] sm:$0x1] %vm3339_vm14, %v3336_v30 }
0x1630   :  { %v3389_v9 = vpop.f32.mrb[64].mxu0 }
0x1631   :  { %v3390_v11 = vadd.f32 %v3389_v9, %v3348_v44  ;;  %v3391_v12 = vpop.f32.mrb[65].mxu0 }
0x1632   :  { %v3392_v61 = vadd.f32 %v3391_v12, %v3352_v8  ;;  %v3393_v16 = vpop.f32.mrb[66].mxu0 }
0x1633   :  { %v7013_v2 = vpack.c.bf16 %v3390_v11, %v3390_v11  ;;  %v3394_v5 = vpop.f32.mrb[67].mxu0 }
0x1634   :  { %v7015_v15 = vpack.c.bf16 %v3392_v61, %v3392_v61 }
0x1635   :  { %v3450_v19 = vsel %vm408_vm4, %v7013_v2, 0 }
0x1636   :  { %4763 = vmatpush3.bf16.xpose.msra.mxu0 %v3450_v19  ;;  %v3509_v7 = vsel %vm2493_vm9, %v7015_v15, 0 }
0x1637   :  { %4769 = vmatpush3.bf16.msra.mxu1 %v3509_v7  ;;  %4774 = vmatprep.subr.bf16.mxu0 %v7243_v27 }
0x1638   :  { %4782 = vmatprep.subr.bf16.mxu1 %v7243_v27 }
0x163d   :  { %4765 = vmatmul.mubr.msk.bf16.vlgmr.msra.gmra.mrb[68].mxu0 %vm408_vm4, %v7003_v28 }
0x163e   :  { %4775 = vmatpush3.bf16.msra.mxu0 %v6779_v53  ;;  %4778 = vmatprep.mubr.msk.bf16.mxu0 %vm5528_vm0, %v7243_v27 }
0x163f   :  { %4776 = vmatprep.subr.bf16.mxu0 %v7243_v27 }
0x1642   :  { %4777 = vmatpush3.bf16.msra.mxu0 %v6796_v63 }
0x1643   :  { %4788 = vmatprep.subr.bf16.mxu0 %v7243_v27 }
0x1710   :  { %v3486_v55 = vpop.f32.mrb[68].mxu0 }
0x1711   :  { %v3492_v57 = vmul.f32 0.17677669, %v3486_v55  ;;  %v4766_v43 = vpop.f32.mrb[69].mxu0 }
0x1712   :  { %v3489_v29 = vpop.f32.mrb[70].mxu0 }
0x1713   :  { %v4767_v31 = vpop.f32.mrb[71].mxu0  ;;  %v3493_v40 = vsel %vm2476_vm10, %v3492_v57, -inf }
0x1714   :  { %3494 = vmax.xlane.f32.xlu1 %v3493_v40 }
0x17a1   :  { %v3495_v32 = vpop.xlane.xlu1 %3494 }
0x17a2   :  { %v3496_v52 = vsub.f32 %v3492_v57, %v3495_v32 }
0x17a4   :  { %v3497_v53 = vmul.f32 1.442695, %v3496_v52 }
0x17a6   :  { %5207 = vpow2.f32 %v3497_v53 }
0x17b0   :  { %v5208_v58 = vpop.eup %5207 }
0x17b1   :  { %v3499_v47 = vsel %vm2476_vm10, %v5208_v58, 0.0 }
0x17b2   :  { %3500 = vadd.xlane.f32.xlu1 %v3499_v47 }
0x17c3   :  { %3600 = vrot.lane.b32.xlu1 %v7013_v2, %s5532_s21 }
0x17c7   :  { %3757 = vrot.lane.b32.xlu1 %v7013_v2, %s5522_s8 }
0x17cb   :  { %3755 = vrot.lane.b32.xlu1 %v7003_v28, %s5522_s8 }
0x183f   :  { %v3501_v63 = vpop.xlane.xlu1 %3500 }
0x1840   :  { %5209 = vrcp.f32 %v3501_v63 }
0x1843   :  { %v3601_v21 = vpop.permute.xlu1 %3600 }
0x1844   :  { %v3606_v51 = vsel %vm408_vm4, %v3601_v21, 0 }
0x1847   :  { %v3758_v33 = vpop.permute.xlu1 %3757 }
0x1848   :  { %v3763_v48 = vsel %vm408_vm4, %v3758_v33, 0 }
0x184a   :  { %v5210_v38 = vpop.eup %5209 }
0x184b   :  { %v3503_v22 = vmul.f32 %v5210_v38, %v5208_v58  ;;  %v3756_v59 = vpop.permute.xlu1 %3755 }
0x184d   :  { %v3504_v50 = vpack.c.bf16 %v3503_v22, %v3503_v22 }
0x184f   :  { %4771 = vmatmul.mubr.msk.bf16.vlgmr.msra.gmra.mrb[76].mxu1 %vm2489_vm11, %v3504_v50 }
0x1850   :  { %4783 = vmatpush3.bf16.xpose.msra.mxu1 %v3606_v51  ;;  %4784 = vmatprep.mubr.msk.bf16.mxu1 %vm5528_vm0, %v7243_v27 }
0x1851   :  { %4802 = vmatprep.subr.bf16.mxu1 %v7243_v27 }
0x1857   :  { %4785 = vmatmul.mubr.msk.bf16.vlgmr.msra.gmra.mrb[80].mxu1 %vm408_vm4, %v3598_v37 }
0x1858   :  { %4803 = vmatpush3.bf16.xpose.msra.mxu1 %v3763_v48  ;;  %4804 = vmatprep.mubr.msk.bf16.mxu1 %vm5528_vm0, %v7243_v27 }
0x1859   :  { %4808 = vmatprep.subr.bf16.mxu1 %v7243_v27 }
0x185f   :  { %4805 = vmatmul.mubr.msk.bf16.vlgmr.msra.gmra.mrb[84].mxu1 %vm408_vm4, %v3756_v59 }
0x1860   :  { %4810 = vmatprep.mubr.msk.bf16.mxu1 %vm5528_vm0, %v7243_v27 }
0x1922   :  { %v3545_v13 = vpop.f32.mrb[76].mxu1 }
0x1923   :  { %v3551_v14 = vpack.c.bf16 %v3545_v13, %v3545_v13  ;;  %v4772_v42 = vpop.f32.mrb[77].mxu1 }
0x1924   :  { %v3548_v23 = vpop.f32.mrb[78].mxu1 }
0x1925   :  { %v4773_v20 = vpop.f32.mrb[79].mxu1  ;;  %4779 = vmatmul.mubr.msk.bf16.vlgmr.msra.gmra.mrb[72].mxu0 %vm408_vm4, %v3551_v14 }
0x1926   :  { %4790 = vmatprep.mubr.msk.bf16.mxu0 %vm5528_vm0, %v7243_v27 }
0x192a   :  { %v3642_v0 = vpop.f32.mrb[80].mxu1 }
0x192b   :  { %v4786_v56 = vpop.f32.mrb[81].mxu1  ;;  %v3648_v9 = vmul.f32 0.17677669, %v3642_v0 }
0x192c   :  { %v3645_v26 = vpop.f32.mrb[82].mxu1 }
0x192d   :  { %v4787_v34 = vpop.f32.mrb[83].mxu1  ;;  %v3649_v11 = vsel %vm2476_vm10, %v3648_v9, -inf }
0x1932   :  { %v3799_v54 = vpop.f32.mrb[84].mxu1 }
0x1933   :  { %v3805_v30 = vmul.f32 0.17677669, %v3799_v54  ;;  %v4806_v62 = vpop.f32.mrb[85].mxu1 }
0x1934   :  { %v3802_v41 = vpop.f32.mrb[86].mxu1 }
0x1935   :  { %v4807_v44 = vpop.f32.mrb[87].mxu1  ;;  %v3806_v8 = vsel %vm2476_vm10, %v3805_v30, -inf }
0x1936   :  { %3807 = vmax.xlane.f32.xlu1 %v3806_v8 }
0x1947   :  { %3818 = vrot.lane.b32.xlu1 %v7015_v15, %s5522_s8 }
0x194b   :  { %3911 = vrot.lane.b32.xlu1 %v7003_v28, %s5533_s11 }
0x196f   :  { %3650 = vmax.xlane.f32.xlu1 %v3649_v11 }
0x19c3   :  { %v3808_v12 = vpop.xlane.xlu1 %3807 }
0x19c4   :  { %v3809_v61 = vsub.f32 %v3805_v30, %v3808_v12 }
0x19c6   :  { %v3810_v16 = vmul.f32 1.442695, %v3809_v61 }
0x19c7   :  { %v3819_v5 = vpop.permute.xlu1 %3818 }
0x19c8   :  { %5211 = vpow2.f32 %v3810_v16  ;;  %v3824_v19 = vsel %vm2493_vm9, %v3819_v5, 0 }
0x19c9   :  { %4809 = vmatpush3.bf16.msra.mxu1 %v3824_v19 }
0x19ca   :  { %4822 = vmatprep.subr.bf16.mxu1 %v7243_v27 }
0x19cb   :  { %v3912_v28 = vpop.permute.xlu1 %3911 }
0x19d2   :  { %v5212_v7 = vpop.eup %5211 }
0x19d3   :  { %v3812_v55 = vsel %vm2476_vm10, %v5212_v7, 0.0 }
0x19d4   :  { %3813 = vadd.xlane.f32.xlu0 %v3812_v55 }
0x19ea   :  { %3913 = vrot.lane.b32.xlu0 %v7013_v2, %s5533_s11 }
0x19fc   :  { %v3651_v57 = vpop.xlane.xlu1 %3650 }
0x19fd   :  { %v3652_v43 = vsub.f32 %v3648_v9, %v3651_v57 }
0x19ff   :  { %v3653_v29 = vmul.f32 1.442695, %v3652_v43 }
0x1a01   :  { %5213 = vpow2.f32 %v3653_v29 }
0x1a0b   :  { %v5214_v31 = vpop.eup %5213 }
0x1a0c   :  { %v3655_v40 = vsel %vm2476_vm10, %v5214_v31, 0.0 }
0x1a0d   :  { %3656 = vadd.xlane.f32.xlu0 %v3655_v40 }
0x1a23   :  { %3662 = vrot.lane.b32.xlu0 %v7015_v15, %s5532_s21 }
0x1a61   :  { %v3814_v32 = vpop.xlane.xlu0 %3813 }
0x1a62   :  { %5215 = vrcp.f32 %v3814_v32 }
0x1a65   :  { %v3914_v58 = vpop.permute.xlu0 %3913 }
0x1a66   :  { %v3919_v2 = vsel %vm408_vm4, %v3914_v58, 0  ;;  %v5058_v58 = vld [vmem:[%s7186_s15 + $0x28] sm:$0xff]  }
0x1a6c   :  { %v5216_v52 = vpop.eup %5215 }
0x1a6d   :  { %v3816_v53 = vmul.f32 %v5216_v52, %v5212_v7  ;;  %v5056_v52 = vld [vmem:[%s7186_s15 + $0x18] sm:$0xff]  }
0x1a6f   :  { %v3817_v47 = vpack.c.bf16 %v3816_v53, %v3816_v53  ;;  %v5057_v53 = vld [vmem:[%s7186_s15 + $0x20] sm:$0xff]  }
0x1a71   :  { %4811 = vmatmul.mubr.msk.bf16.vlgmr.msra.gmra.mrb[88].mxu1 %vm2489_vm11, %v3817_v47  ;;  %v5059_v47 = vld [vmem:[%s7186_s15 + $0x30] sm:$0xff]  }
0x1a72   :  { %4823 = vmatpush3.bf16.xpose.msra.mxu1 %v3919_v2  ;;  %4824 = vmatprep.mubr.msk.bf16.mxu1 %vm5528_vm0, %v7243_v27  ;;  %v5060_v2 = vld [vmem:[%s7186_s15 + $0x38] sm:$0xff]  }
0x1a73   :  { %4842 = vmatprep.subr.bf16.mxu1 %v7243_v27 }
0x1a79   :  { %4825 = vmatmul.mubr.msk.bf16.vlgmr.msra.gmra.mrb[92].mxu1 %vm408_vm4, %v3912_v28 }
0x1a7a   :  { %4858 = vmatprep.mubr.msk.bf16.mxu1 %vm5528_vm0, %v7243_v27 }
0x1a9a   :  { %v3657_v63 = vpop.xlane.xlu0 %3656 }
0x1a9b   :  { %5217 = vrcp.f32 %v3657_v63 }
0x1a9e   :  { %v3663_v38 = vpop.permute.xlu0 %3662 }
0x1a9f   :  { %v3668_v22 = vsel %vm2493_vm9, %v3663_v38, 0 }
0x1aa0   :  { %4789 = vmatpush3.bf16.msra.mxu0 %v3668_v22 }
0x1aa1   :  { %4794 = vmatprep.subr.bf16.mxu0 %v7243_v27 }
0x1aa5   :  { %v5218_v21 = vpop.eup %5217 }
0x1aa6   :  { %v3659_v50 = vmul.f32 %v5218_v21, %v5214_v31 }
0x1aa8   :  { %v3660_v51 = vpack.c.bf16 %v3659_v50, %v3659_v50 }
0x1aaa   :  { %4791 = vmatmul.mubr.msk.bf16.vlgmr.msra.gmra.mrb[76].mxu0 %vm2489_vm11, %v3660_v51 }
0x1aab   :  { %4795 = vmatpush3.bf16.msra.mxu0 %v6830_v46  ;;  %4798 = vmatprep.mubr.msk.bf16.mxu0 %vm5528_vm0, %v7243_v27 }
0x1aac   :  { %4796 = vmatprep.subr.bf16.mxu0 %v7243_v27 }
0x1aaf   :  { %4797 = vmatpush3.bf16.msra.mxu0 %v6834_v35 }
0x1ab0   :  { %4814 = vmatprep.subr.bf16.mxu0 %v7243_v27 }
0x1b44   :  { %v3860_v33 = vpop.f32.mrb[88].mxu1 }
0x1b45   :  { %v4812_v37 = vpop.f32.mrb[89].mxu1  ;;  %v3866_v35 = vpack.c.bf16 %v3860_v33, %v3860_v33 }
0x1b46   :  { %v3863_v48 = vpop.f32.mrb[90].mxu1 }
0x1b47   :  { %v4813_v59 = vpop.f32.mrb[91].mxu1 }
0x1b4c   :  { %v3955_v13 = vpop.f32.mrb[92].mxu1 }
0x1b4d   :  { %v3961_v14 = vmul.f32 0.17677669, %v3955_v13  ;;  %v4826_v42 = vpop.f32.mrb[93].mxu1  ;;  %v4122_v13 = vld [vmem:[#allocation19] sm:$0x1] }
0x1b4e   :  { %v3958_v23 = vpop.f32.mrb[94].mxu1 }
0x1b4f   :  { %v4827_v20 = vpop.f32.mrb[95].mxu1  ;;  %v3962_v46 = vsel %vm2476_vm10, %v3961_v14, -inf }
0x1b50   :  { %3963 = vmax.xlane.f32.xlu1 %v3962_v46 }
0x1b7d   :  { %v3704_v0 = vpop.f32.mrb[76].mxu0 }
0x1b7e   :  { %v3710_v56 = vpack.c.bf16 %v3704_v0, %v3704_v0  ;;  %v4792_v26 = vpop.f32.mrb[77].mxu0  ;;  %v4225_v0 = vld [vmem:[#allocation20] sm:$0x1] }
0x1b7f   :  { %v3707_v34 = vpop.f32.mrb[78].mxu0 }
0x1b80   :  { %v4793_v54 = vpop.f32.mrb[79].mxu0  ;;  %4799 = vmatmul.mubr.msk.bf16.vlgmr.msra.gmra.mrb[72].mxu0 %vm408_vm4, %v3710_v56 }
0x1b81   :  { %4815 = vmatpush3.bf16.msra.mxu0 %v6839_v18  ;;  %4818 = vmatprep.mubr.msk.bf16.mxu0 %vm5528_vm0, %v7243_v27 }
0x1b82   :  { %4816 = vmatprep.subr.bf16.mxu0 %v7243_v27 }
0x1b85   :  { %4817 = vmatpush3.bf16.msra.mxu0 %v6843_v4 }
0x1b86   :  { %4828 = vmatprep.subr.bf16.mxu0 %v7243_v27 }
0x1b8c   :  { %4819 = vmatmul.mubr.msk.bf16.vlgmr.msra.gmra.mrb[72].mxu0 %vm408_vm4, %v3866_v35 }
0x1b8d   :  { %4830 = vmatprep.mubr.msk.bf16.mxu0 %vm5528_vm0, %v7243_v27 }
0x1bdd   :  { %v3964_v30 = vpop.xlane.xlu1 %3963 }
0x1bde   :  { %v3965_v62 = vsub.f32 %v3961_v14, %v3964_v30 }
0x1be0   :  { %v3966_v41 = vmul.f32 1.442695, %v3965_v62 }
0x1be2   :  { %5219 = vpow2.f32 %v3966_v41 }
0x1bec   :  { %v5220_v18 = vpop.eup %5219 }
0x1bed   :  { %v3968_v44 = vsel %vm2476_vm10, %v5220_v18, 0.0 }
0x1bee   :  { %3969 = vadd.xlane.f32.xlu1 %v3968_v44 }
0x1bff   :  { %3974 = vrot.lane.b32.xlu1 %v7015_v15, %s5533_s11 }
0x1c7b   :  { %v3970_v4 = vpop.xlane.xlu1 %3969 }
0x1c7c   :  { %5221 = vrcp.f32 %v3970_v4 }
0x1c7f   :  { %v3975_v8 = vpop.permute.xlu1 %3974 }
0x1c80   :  { %v3980_v9 = vsel %vm2493_vm9, %v3975_v8, 0 }
0x1c81   :  { %4829 = vmatpush3.bf16.msra.mxu0 %v3980_v9 }
0x1c82   :  { %4834 = vmatprep.subr.bf16.mxu0 %v7243_v27 }
0x1c86   :  { %v5222_v11 = vpop.eup %5221 }
0x1c87   :  { %v3972_v12 = vmul.f32 %v5222_v11, %v5220_v18 }
0x1c89   :  { %v3973_v61 = vpack.c.bf16 %v3972_v12, %v3972_v12 }
0x1c8b   :  { %4831 = vmatmul.mubr.msk.bf16.vlgmr.msra.gmra.mrb[80].mxu0 %vm2489_vm11, %v3973_v61 }
0x1c8c   :  { %4835 = vmatpush3.bf16.msra.mxu0 %v6858_v45  ;;  %4838 = vmatprep.mubr.msk.bf16.mxu0 %vm5528_vm0, %v7243_v27  ;;  %v3445_v45 = vld [vmem:[#allocation14] sm:$0x1] }
0x1c8d   :  { %4836 = vmatprep.subr.bf16.mxu0 %v7243_v27 }
0x1c90   :  { %4837 = vmatpush3.bf16.msra.mxu0 %v6865_v60 }
0x1c91   :  { %4893 = vmatprep.subr.bf16.mxu0 %v5534_v36 }
0x1d5e   :  { %v4016_v15 = vpop.f32.mrb[80].mxu0 }
0x1d5f   :  { %v4022_v16 = vpack.c.bf16 %v4016_v15, %v4016_v15  ;;  %v4832_v5 = vpop.f32.mrb[81].mxu0 }
0x1d60   :  { %v4019_v19 = vpop.f32.mrb[82].mxu0 }
0x1d61   :  { %v4833_v7 = vpop.f32.mrb[83].mxu0  ;;  %4839 = vmatmul.mubr.msk.bf16.vlgmr.msra.gmra.mrb[72].mxu0 %vm408_vm4, %v4022_v16 }
0x1d62   :  { %4895 = vmatpush3.bf16.msra.mxu0 %v6927_v1  ;;  %4878 = vmatprep.mubr.msk.f32.mxu0 %vm5528_vm0, %v7243_v27 }
0x1d63   :  { %4896 = vmatprep.subr.bf16.mxu0 %v5534_v36 }
0x1d66   :  { %4898 = vmatpush3.bf16.msra.mxu0 %v6933_v3 }
0x1d67   :  { %4899 = vmatprep.subr.bf16.mxu0 %v5534_v36 }
0x1d6a   :  { %4901 = vmatpush3.bf16.msra.mxu0 %v6943_v6 }
0x1d6b   :  { %4902 = vmatprep.subr.bf16.mxu0 %v5534_v36  ;;  %v5053_v36 = vld [vmem:[%s7186_s15] sm:$0xff]  }
0x1d6c   :  { %4843 = vmatpush3.bf16.msra.mxu1 %v5053_v36 }
0x1d6d   :  { %4844 = vmatprep.subr.bf16.mxu1 %v7243_v27 }
0x1d6e   :  { %4904 = vmatpush3.bf16.msra.mxu0 %v6982_v10 }
0x1e34   :  { %v4060_v60 = vpop.f32.mrb[72].mxu0 }
0x1e35   :  { %v4906_v55 = vadd.f32 %v4060_v60, %v3445_v45  ;;  %v4840_v28 = vpop.f32.mrb[73].mxu0 }
0x1e36   :  { %v4063_v1 = vpop.f32.mrb[74].mxu0 }
0x1e37   :  { %v4068_v57 = vmul.f32 %v4906_v55, %v6874_v17  ;;  %v4841_v43 = vpop.f32.mrb[75].mxu0 }
0x1e39   :  { %v4073_v29 = vrot.slane %v4068_v57, %v7249_v49  ;;  %v5055_v49 = vld [vmem:[%s7186_s15 + $0x10] sm:$0xff]  }
0x1e3b   :  { %v4075_v3 = vadd.f32 %v4073_v29, %v6745_v39  ;;  %v5054_v39 = vld [vmem:[%s7186_s15 + $0x8] sm:$0xff]   ;;  %s5535_s15 = smov [#allocation22]  }
0x1e3c   :  { %4845 = vmatpush3.bf16.msra.mxu1 %v5054_v39  ;;  %s4306_s22 = sshll.u32 %s5535_s15, 4  ;;  %s4307_s22 = int_to_ptr.vmem [resolvable:$true] %s4306_s22 }
0x1e3d   :  { %v4076_v31 = vsel %vm3113_vm12, %v4075_v3, 0.0  ;;  %4846 = vmatprep.subr.bf16.mxu1 %v7243_v27  ;;  %s5477_s26 = scalar_lea.vmem %s4307_s22, 32  ;;  %p5482_p11 = scmp.lt.s32.totalorder %s4307_s22, %s4307_s22 }
0x1e3e   :  { %4077 = vadd.xlane.f32.xlu0 %v4076_v31  ;;  %p5478_p10 = scmp.ne.s32.totalorder %s4307_s22, %s5477_s26  ;;  %p5483_p12 = scmp.lt.s32.totalorder %s5477_s26, %s5477_s26 }
0x1e40   :  { %4847 = vmatpush3.bf16.msra.mxu1 %v5055_v49  ;;  %p5484_p13 = por %p5483_p12, %p5482_p11 }
0x1e41   :  { %4848 = vmatprep.subr.bf16.mxu1 %v7243_v27 }
0x1e42   :  { %p5485_p0 = pnand %p5484_p13, %p5478_p10 }
0x1e44   :  { %4849 = vmatpush3.bf16.msra.mxu1 %v5056_v52 }
0x1e45   :  { %4850 = vmatprep.subr.bf16.mxu1 %v7243_v27 }
0x1e48   :  { %4851 = vmatpush3.bf16.msra.mxu1 %v5057_v53 }
0x1e49   :  { %4852 = vmatprep.subr.bf16.mxu1 %v7243_v27 }
0x1e4c   :  { %4853 = vmatpush3.bf16.msra.mxu1 %v5058_v58 }
0x1e4d   :  { %4854 = vmatprep.subr.bf16.mxu1 %v7243_v27 }
0x1e50   :  { %4855 = vmatpush3.bf16.msra.mxu1 %v5059_v47 }
0x1e51   :  { %4856 = vmatprep.subr.bf16.mxu1 %v7243_v27 }
0x1e54   :  { %4857 = vmatpush3.bf16.msra.mxu1 %v5060_v2 }
0x1ecb   :  { %v4078_v6 = vpop.xlane.xlu0 %4077 }
0x1ecc   :  { %v4079_v10 = vmul.f32 0.0078125, %v4078_v6 }
0x1ece   :  { %v4080_v40 = vsub.f32 %v4075_v3, %v4079_v10 }
0x1ed0   :  { %v4081_v32 = vmul.f32 %v4080_v40, %v4080_v40 }
0x1ed2   :  { %v4082_v17 = vsel %vm3113_vm12, %v4081_v32, 0.0 }
0x1ed3   :  { %4083 = vadd.xlane.f32.xlu1 %v4082_v17 }
0x1f60   :  { %v4084_v63 = vpop.xlane.xlu1 %4083 }
0x1f61   :  { %v4085_v38 = vmul.f32 0.0078125, %v4084_v63 }
0x1f63   :  { %v4086_v22 = vadd.f32 1e-05, %v4085_v38 }
0x1f65   :  { %5223 = vrsqrt.f32 %v4086_v22 }
0x1f6f   :  { %v5224_v21 = vpop.eup %5223 }
0x1f70   :  { %v4088_v50 = vmul.f32 %v5224_v21, %v4080_v40 }
0x1f72   :  { %v4096_v51 = vmul.f32 %v6948_v25, %v4088_v50 }
0x1f74   :  { %v4104_v33 = vadd.f32 %v6950_v24, %v4096_v51 }
0x1f76   :  { %v4105_v37 = vpack.c.bf16 %v4104_v33, %v4104_v33 }
0x1f78   :  { %v4124_v48 = vshrl.u32 %v4105_v37, 16 }
0x1f7a   :  { %v4126_v59 = vrot.slane %v4124_v48, 3 }
0x1f7c   :  { %4859 = vmatmul.mubr.bf16.vlgmr.msra.gmra.mrb[96].mxu1 %v4126_v59 }
0x204f   :  { %v4210_v14 = vpop.f32.mrb[96].mxu1 }
0x2050   :  { %v4211_v42 = vadd.f32 %v4210_v14, %v4122_v13  ;;  %v4860_v23 = vpop.f32.mrb[97].mxu1 }
0x2051   :  { %v4213_v27 = vpop.f32.mrb[98].mxu1 }
0x2052   :  { %v4216_v20 = vmax.f32 %v4211_v42, 0.0  ;;  %v4861_v46 = vpop.f32.mrb[99].mxu1 }
0x2054   :  { %4879 = vmatmul.mubr.msk.f32.vlgmr.msra.gmra.mrb[62].mxu0 %vm3265_vm13, %v4216_v20 }
0x2127   :  { %v4295_v56 = vpop.f32.mrb[62].mxu0 }
0x2128   :  { %v4296_v25 = vadd.f32 %v4295_v56, %v4225_v0  ;;  %v4880_v26 = vpop.f32.mrb[63].mxu0 }
0x212a   :  { %4299 = vst.msk [vmem:[#allocation22 + $0x1] sm:$0x1] %vm3339_vm14, %v4296_v25 }
0x212b   :  { %5488 = shalt.err (!%p5485_p0)
}
0x212c   :  { %s5489_s23 = scalar_lea.hbm %s7190_s19, 32 }
0x212d   :  { %p5490_p1 = scmp.ne.s32.totalorder %s7190_s19, %s5489_s23  ;;  %p5493_p2 = scmp.lt.u32.totalorder %s5489_s23, %s7190_s19 }
0x212f   :  { %p5495_p3 = pnand %p5493_p2, %p5490_p1 }
0x2131   :  { %5498 = shalt.err (!%p5495_p3)
}
0x2132   :  { %4309 = dma.vmem_to_hbm [thread:$0]  %s4307_s22, 32, %s7190_s19, [#allocation7]  }
0x2133   :  { %5511 = dma.done.wait [#allocation7], 32  }
0x2134   :  { %5512 = vsyncadd [#allocation7], 4294967264 }
0x2135   :  { %4313 = vsyncpa [#allocation6], 1 }
0x2136   :  { %4314 = vsyncpa [#allocation9], 1 }
0x2137   :  { %4315 = vsyncpa [#allocation12], 1 }
0x2138   :  { %4316 = vsyncpa [#allocation15], 1 }
0x2139   :  { %4317 = vsyncpa [#allocation18], 1 }
0x213a   :  { %4318 = vsyncpa [#allocation21], 1 }
0x213b   :  { %4319 = vsyncpa [#allocation7], 1 }

</bundles_post_ra>
